<compile_context>
chip_gen: v7x
topology: tpu7x:2x2x1
jax: 0.10.0
libtpu: 0.0.40
codegen_flags: <defaults>
</compile_context>

<pallas_src>
import functools

import numpy as np
import jax
import jax.numpy as jnp
from jax import lax
from jax.experimental import pallas as pl
from jax.experimental.pallas import tpu as pltpu


def _agent_graph_kernel(idx_ref, tpos_ref, xw_ref, eye_ref, o_ref):
    """One block of Bt graphs, with the graph/batch axis on the 128-wide lane axis.

    idx_ref  : [N, 1, Bt] int32  decoded lane index per node (-1 == invalid node)
    tpos_ref : [L, L, Bt] f32    1.0 where topo[l1, l2] >= 0 else 0.0
    xw_ref   : [N, C, Bt] f32    X @ W (precomputed in the wrapper, lane-dense)
    eye_ref  : [N, N, 1]  f32    identity (self loops)
    o_ref    : [N, C, Bt] f32    D^-1/2 A D^-1/2 (X W)     (bias added by the wrapper)
    """
    N = idx_ref.shape[0]
    L = tpos_ref.shape[0]
    Bt = idx_ref.shape[-1]

    idx = idx_ref[...]                                   # [N, 1, Bt] int32
    tpos = tpos_ref[...]                                 # [L, L, Bt]
    xw = xw_ref[...]                                     # [N, C, Bt]
    eye = eye_ref[...]                                   # [N, N, 1]

    # ---- gather stage 1: t_row[i, l2, b] = tpos[idx_i, l2, b] (all-zero row when invalid) ----
    # One scalar-compare select + add per possible source lane; at most one term matches.
    t_row = jnp.where(idx == 0, tpos[0:1, :, :], 0.0)    # [N, L, Bt]
    for l1 in range(1, L):
        t_row = t_row + jnp.where(idx == l1, tpos[l1:l1 + 1, :, :], 0.0)

    # ---- gather stage 2 + self loops + degree, fused over the N adjacency columns ----
    # col_j[i, b] = adj[i, j, b] = max(t_row[i, idx_j, b], eye[i, j]); deg = row sums of A.
    l_iota = lax.broadcasted_iota(jnp.int32, (1, L, Bt), 1)
    cols = []
    deg = None
    for j in range(N):
        hit_j = l_iota == idx[j:j + 1, :, :]                                   # [1, L, Bt]
        col_j = jnp.sum(jnp.where(hit_j, t_row, 0.0), axis=1, keepdims=True)   # [N, 1, Bt]
        col_j = jnp.maximum(col_j, eye[:, j:j + 1, :])                         # self loop
        cols.append(col_j)
        deg = col_j if deg is None else deg + col_j                            # [N, 1, Bt]

    dinv = lax.rsqrt(deg)                                # deg >= 1 (self loop) -> always finite

    # ---- out = D^-1/2 A D^-1/2 (X W): tiny N-term contraction, unrolled on the VPU ----
    xw_s = xw * dinv                                     # [N, C, Bt]
    acc = cols[0] * xw_s[0:1, :, :]                      # [N, C, Bt]
    for j in range(1, N):
        acc = acc + cols[j] * xw_s[j:j + 1, :, :]
    o_ref[...] = acc * dinv


def _round_up(x, m):
    return ((x + m - 1) // m) * m


@functools.partial(jax.jit, static_argnames=("block_b",))
def agent_graph_forward_batched(node_features, topo_outputs, w, b, *, block_b=256):
    """node_features: [B, N, P]; topo_outputs: [B, L, L]; w: [P, C]; b: [C] -> [B, N, C].

    block_b (graphs per grid step, rounded to a multiple of 128):
      * 256 (default) fits comfortably in the scoped-VMEM defaults on v5e/v6e/v7x.
      * For very large batches on v7x keep b_pad // block_b >= 2 so both TensorCores are used.
    """
    node_features = jnp.asarray(node_features, jnp.float32)
    topo_outputs = jnp.asarray(topo_outputs, jnp.float32)
    w = jnp.asarray(w, jnp.float32)
    b = jnp.asarray(b, jnp.float32)

    B, N, P = node_features.shape
    L = topo_outputs.shape[-1]
    C = w.shape[-1]

    # ---- data-independent dense stages, hoisted to XLA (free fusion, exact f32) ----
    # bin2Index: integer value of the first P-1 bits; -1 when the leading bit is negative.
    pw = jnp.asarray([2.0 ** (P - 2 - k) for k in range(P - 1)] + [0.0], jnp.float32)
    idx_f = jnp.sum(node_features * pw[None, None, :], axis=-1)                  # [B, N]
    idx = jnp.where(node_features[:, :, 0] >= 0.0, idx_f, -1.0).astype(jnp.int32)
    # GCNConv dense stage X @ W on the raw node features (kept elementwise -> exact f32).
    xw = jnp.sum(node_features[:, :, :, None] * w[None, None, :, :], axis=2)     # [B, N, C]
    # Topology reachability mask.
    tpos = (topo_outputs >= 0.0).astype(jnp.float32)                             # [B, L, L]

    # ---- pad the batch to a lane-aligned multiple of the block size ----
    bt = _round_up(max(128, min(int(block_b), _round_up(B, 128))), 128)
    b_pad = _round_up(B, bt)
    pad = b_pad - B
    if pad:
        # padded graphs decode to idx = -1 -> adj = I, finite output; sliced off below.
        idx = jnp.concatenate([idx, jnp.full((pad, N), -1, jnp.int32)], axis=0)
        xw = jnp.concatenate([xw, jnp.zeros((pad, N, C), jnp.float32)], axis=0)
        tpos = jnp.concatenate([tpos, jnp.zeros((pad, L, L), jnp.float32)], axis=0)

    # ---- batch-minor layout: graphs live on the lane axis (free XLA layout plumbing) ----
    idx_t = jnp.transpose(idx, (1, 0)).reshape(N, 1, b_pad)   # [N, 1, b_pad]
    xw_t = jnp.transpose(xw, (1, 2, 0))                       # [N, C, b_pad]
    tpos_t = jnp.transpose(tpos, (1, 2, 0))                   # [L, L, b_pad]
    eye = jnp.eye(N, dtype=jnp.float32).reshape(N, N, 1)

    out_t = pl.pallas_call(
        _agent_graph_kernel,
        out_shape=jax.ShapeDtypeStruct((N, C, b_pad), jnp.float32),
        grid=(b_pad // bt,),
        in_specs=[
            pl.BlockSpec((N, 1, bt), lambda g: (0, 0, g)),
            pl.BlockSpec((L, L, bt), lambda g: (0, 0, g)),
            pl.BlockSpec((N, C, bt), lambda g: (0, 0, g)),
            pl.BlockSpec((N, N, 1), lambda g: (0, 0, 0)),
        ],
        out_specs=pl.BlockSpec((N, C, bt), lambda g: (0, 0, g)),
        compiler_params=pltpu.CompilerParams(dimension_semantics=("parallel",)),
    )(idx_t, tpos_t, xw_t, eye)

    # Back to [B, N, C]; bias add is a free XLA epilogue.
    return jnp.transpose(out_t, (2, 0, 1))[:B] + b[None, None, :]


def agent_graph_forward(node_feature, topo_output, w, b):
    """PyTorch-module-compatible single call.
    node_feature: [1, N, P]; topo_output: [1, 1, L, L]; w: [P, C]; b: [C] -> [1, N, C]."""
    topo = jnp.asarray(topo_output)[:, 0]          # topo_output[0][0] per graph -> [1, L, L]
    return agent_graph_forward_batched(node_feature, topo, w, b)


def numpy_reference_batched(node_features, topo_outputs, w, b):
    x_all = np.asarray(node_features)
    t_all = np.asarray(topo_outputs)
    w = np.asarray(w)
    b = np.asarray(b)
    B, N, P = x_all.shape
    C = w.shape[1]
    out = np.zeros((B, N, C), np.float32)
    for g in range(B):
        x, topo = x_all[g], t_all[g]
        # bin2Index
        idx = []
        for i in range(N):
            if x[i, 0] < 0:
                idx.append(-1)
            else:
                v = 0
                for k in range(P - 1):
                    v = v * 2 + int(x[i, k])
                idx.append(v)
        # getAdj
        adj = np.zeros((N, N), np.float32)
        for i in range(N):
            for j in range(N):
                if i == j:
                    adj[i, j] = 1.0
                elif idx[i] != -1 and idx[j] != -1 and topo[idx[i], idx[j]] >= 0:
                    adj[i, j] = 1.0
        # GCN
        deg = adj.sum(axis=1)
        dinv = 1.0 / np.sqrt(deg)
        out[g] = (dinv[:, None] * adj * dinv[None, :]) @ (x @ w) + b[None, :]
    return out


if __name__ == "__main__":
    # params = {'num_pos': 5, 'num_evader': 3}
    NUM_POS = 5                       # P
    NUM_EVADER = 3                    # -> N = C = 4 nodes / output channels
    N = NUM_EVADER + 1
    L = 2 ** (NUM_POS - 1)            # 16 lanes addressable by the first P-1 bits
    B = 300                           # -> bt = 256, b_pad = 512: exercises padding + 2 grid steps

    key = jax.random.PRNGKey(0)
    k_bits, k_inval, k_topo, k_w, k_b = jax.random.split(key, 5)

    bits = jax.random.randint(k_bits, (B, N, NUM_POS), 0, 2).astype(jnp.float32)
    invalid = jax.random.bernoulli(k_inval, 0.25, (B, N))          # some nodes carry the "-1" code
    node_features = jnp.where(invalid[:, :, None], -1.0, bits)     # [B, N, P]

    topo_outputs = jax.random.uniform(k_topo, (B, L, L), minval=-1.0, maxval=1.0,
                                      dtype=jnp.float32)           # [B, L, L]

    w = jax.random.normal(k_w, (NUM_POS, N), dtype=jnp.float32) * 0.1   # GCNConv weight [P, C]
    b = jax.random.normal(k_b, (N,), dtype=jnp.float32) * 0.1           # GCNConv bias   [C]

    out = jax.block_until_ready(
        agent_graph_forward_batched(node_features, topo_outputs, w, b))
    ref = numpy_reference_batched(node_features, topo_outputs, w, b)
    np.testing.assert_allclose(np.asarray(out), ref, rtol=1e-5, atol=1e-5)

    # Module-compatible single-graph path ([1,N,P] / [1,1,L,L] exactly like the PyTorch forward).
    out1 = jax.block_until_ready(
        agent_graph_forward(node_features[:1], topo_outputs[:1].reshape(1, 1, L, L), w, b))
    np.testing.assert_allclose(np.asarray(out1), ref[:1], rtol=1e-5, atol=1e-5)

    print("KERNEL_OK")
</pallas_src>

<mosaic_0001>
module attributes {stable_mosaic.version = 11 : i64} {
  func.func @_agent_graph_kernel(%arg0: i32, %arg1: memref<4x1x256xi32, #tpu.memory_space<vmem>>, %arg2: memref<16x16x256xf32, #tpu.memory_space<vmem>>, %arg3: memref<4x4x256xf32, #tpu.memory_space<vmem>>, %arg4: memref<4x4x1xf32, #tpu.memory_space<vmem>>, %arg5: memref<4x4x256xf32, #tpu.memory_space<vmem>>) attributes {dimension_semantics = [#tpu.dimension_semantics<parallel>], iteration_bounds = array<i64: 2>, scalar_prefetch = 0 : i64, scratch_operands = 0 : i64, tpu.core_type = #tpu.core_type<tc>, window_params = [{transform_indices = @transform_0, window_bounds = array<i64: 4, 1, 256>}, {transform_indices = @transform_1, window_bounds = array<i64: 16, 16, 256>}, {transform_indices = @transform_2, window_bounds = array<i64: 4, 4, 256>}, {pipeline_mode = #tpu.pipeline_mode<synchronous>, transform_indices = @transform_3, window_bounds = array<i64: 4, 4, 1>}, {transform_indices = @transform_4, window_bounds = array<i64: 4, 4, 256>}]} {
    %c0 = arith.constant 0 : index
    %c0_0 = arith.constant 0 : index
    %c0_1 = arith.constant 0 : index
    %0 = vector.load %arg1[%c0, %c0_0, %c0_1] : memref<4x1x256xi32, #tpu.memory_space<vmem>>, vector<4x1x256xi32>
    %c0_2 = arith.constant 0 : index
    %c0_3 = arith.constant 0 : index
    %c0_4 = arith.constant 0 : index
    %1 = vector.load %arg2[%c0_2, %c0_3, %c0_4] : memref<16x16x256xf32, #tpu.memory_space<vmem>>, vector<16x16x256xf32>
    %c0_5 = arith.constant 0 : index
    %c0_6 = arith.constant 0 : index
    %c0_7 = arith.constant 0 : index
    %2 = vector.load %arg3[%c0_5, %c0_6, %c0_7] : memref<4x4x256xf32, #tpu.memory_space<vmem>>, vector<4x4x256xf32>
    %c0_8 = arith.constant 0 : index
    %c0_9 = arith.constant 0 : index
    %c0_10 = arith.constant 0 : index
    %3 = vector.load %arg4[%c0_8, %c0_9, %c0_10] : memref<4x4x1xf32, #tpu.memory_space<vmem>>, vector<4x4x1xf32>
    %c0_i32 = arith.constant 0 : i32
    %4 = vector.broadcast %c0_i32 : i32 to vector<4x1x256xi32>
    %5 = arith.cmpi eq, %0, %4 : vector<4x1x256xi32>
    %6 = vector.extract_strided_slice %1 {offsets = [0, 0, 0], sizes = [1, 16, 256], strides = [1, 1, 1]} : vector<16x16x256xf32> to vector<1x16x256xf32>
    %cst = arith.constant 0.000000e+00 : f32
    %7 = vector.shape_cast %5 : vector<4x1x256xi1> to vector<4x1x256xi1>
    %8 = vector.broadcast %7 : vector<4x1x256xi1> to vector<4x16x256xi1>
    %9 = vector.shape_cast %6 : vector<1x16x256xf32> to vector<1x16x256xf32>
    %10 = vector.broadcast %9 : vector<1x16x256xf32> to vector<4x16x256xf32>
    %11 = vector.broadcast %cst : f32 to vector<4x16x256xf32>
    %12 = arith.select %8, %10, %11 : vector<4x16x256xi1>, vector<4x16x256xf32>
    %c1_i32 = arith.constant 1 : i32
    %13 = vector.broadcast %c1_i32 : i32 to vector<4x1x256xi32>
    %14 = arith.cmpi eq, %0, %13 : vector<4x1x256xi32>
    %15 = vector.extract_strided_slice %1 {offsets = [1, 0, 0], sizes = [1, 16, 256], strides = [1, 1, 1]} : vector<16x16x256xf32> to vector<1x16x256xf32>
    %cst_11 = arith.constant 0.000000e+00 : f32
    %16 = vector.shape_cast %14 : vector<4x1x256xi1> to vector<4x1x256xi1>
    %17 = vector.broadcast %16 : vector<4x1x256xi1> to vector<4x16x256xi1>
    %18 = vector.shape_cast %15 : vector<1x16x256xf32> to vector<1x16x256xf32>
    %19 = vector.broadcast %18 : vector<1x16x256xf32> to vector<4x16x256xf32>
    %20 = vector.broadcast %cst_11 : f32 to vector<4x16x256xf32>
    %21 = arith.select %17, %19, %20 : vector<4x16x256xi1>, vector<4x16x256xf32>
    %22 = arith.addf %12, %21 : vector<4x16x256xf32>
    %c2_i32 = arith.constant 2 : i32
    %23 = vector.broadcast %c2_i32 : i32 to vector<4x1x256xi32>
    %24 = arith.cmpi eq, %0, %23 : vector<4x1x256xi32>
    %25 = vector.extract_strided_slice %1 {offsets = [2, 0, 0], sizes = [1, 16, 256], strides = [1, 1, 1]} : vector<16x16x256xf32> to vector<1x16x256xf32>
    %cst_12 = arith.constant 0.000000e+00 : f32
    %26 = vector.shape_cast %24 : vector<4x1x256xi1> to vector<4x1x256xi1>
    %27 = vector.broadcast %26 : vector<4x1x256xi1> to vector<4x16x256xi1>
    %28 = vector.shape_cast %25 : vector<1x16x256xf32> to vector<1x16x256xf32>
    %29 = vector.broadcast %28 : vector<1x16x256xf32> to vector<4x16x256xf32>
    %30 = vector.broadcast %cst_12 : f32 to vector<4x16x256xf32>
    %31 = arith.select %27, %29, %30 : vector<4x16x256xi1>, vector<4x16x256xf32>
    %32 = arith.addf %22, %31 : vector<4x16x256xf32>
    %c3_i32 = arith.constant 3 : i32
    %33 = vector.broadcast %c3_i32 : i32 to vector<4x1x256xi32>
    %34 = arith.cmpi eq, %0, %33 : vector<4x1x256xi32>
    %35 = vector.extract_strided_slice %1 {offsets = [3, 0, 0], sizes = [1, 16, 256], strides = [1, 1, 1]} : vector<16x16x256xf32> to vector<1x16x256xf32>
    %cst_13 = arith.constant 0.000000e+00 : f32
    %36 = vector.shape_cast %34 : vector<4x1x256xi1> to vector<4x1x256xi1>
    %37 = vector.broadcast %36 : vector<4x1x256xi1> to vector<4x16x256xi1>
    %38 = vector.shape_cast %35 : vector<1x16x256xf32> to vector<1x16x256xf32>
    %39 = vector.broadcast %38 : vector<1x16x256xf32> to vector<4x16x256xf32>
    %40 = vector.broadcast %cst_13 : f32 to vector<4x16x256xf32>
    %41 = arith.select %37, %39, %40 : vector<4x16x256xi1>, vector<4x16x256xf32>
    %42 = arith.addf %32, %41 : vector<4x16x256xf32>
    %c4_i32 = arith.constant 4 : i32
    %43 = vector.broadcast %c4_i32 : i32 to vector<4x1x256xi32>
    %44 = arith.cmpi eq, %0, %43 : vector<4x1x256xi32>
    %45 = vector.extract_strided_slice %1 {offsets = [4, 0, 0], sizes = [1, 16, 256], strides = [1, 1, 1]} : vector<16x16x256xf32> to vector<1x16x256xf32>
    %cst_14 = arith.constant 0.000000e+00 : f32
    %46 = vector.shape_cast %44 : vector<4x1x256xi1> to vector<4x1x256xi1>
    %47 = vector.broadcast %46 : vector<4x1x256xi1> to vector<4x16x256xi1>
    %48 = vector.shape_cast %45 : vector<1x16x256xf32> to vector<1x16x256xf32>
    %49 = vector.broadcast %48 : vector<1x16x256xf32> to vector<4x16x256xf32>
    %50 = vector.broadcast %cst_14 : f32 to vector<4x16x256xf32>
    %51 = arith.select %47, %49, %50 : vector<4x16x256xi1>, vector<4x16x256xf32>
    %52 = arith.addf %42, %51 : vector<4x16x256xf32>
    %c5_i32 = arith.constant 5 : i32
    %53 = vector.broadcast %c5_i32 : i32 to vector<4x1x256xi32>
    %54 = arith.cmpi eq, %0, %53 : vector<4x1x256xi32>
    %55 = vector.extract_strided_slice %1 {offsets = [5, 0, 0], sizes = [1, 16, 256], strides = [1, 1, 1]} : vector<16x16x256xf32> to vector<1x16x256xf32>
    %cst_15 = arith.constant 0.000000e+00 : f32
    %56 = vector.shape_cast %54 : vector<4x1x256xi1> to vector<4x1x256xi1>
    %57 = vector.broadcast %56 : vector<4x1x256xi1> to vector<4x16x256xi1>
    %58 = vector.shape_cast %55 : vector<1x16x256xf32> to vector<1x16x256xf32>
    %59 = vector.broadcast %58 : vector<1x16x256xf32> to vector<4x16x256xf32>
    %60 = vector.broadcast %cst_15 : f32 to vector<4x16x256xf32>
    %61 = arith.select %57, %59, %60 : vector<4x16x256xi1>, vector<4x16x256xf32>
    %62 = arith.addf %52, %61 : vector<4x16x256xf32>
    %c6_i32 = arith.constant 6 : i32
    %63 = vector.broadcast %c6_i32 : i32 to vector<4x1x256xi32>
    %64 = arith.cmpi eq, %0, %63 : vector<4x1x256xi32>
    %65 = vector.extract_strided_slice %1 {offsets = [6, 0, 0], sizes = [1, 16, 256], strides = [1, 1, 1]} : vector<16x16x256xf32> to vector<1x16x256xf32>
    %cst_16 = arith.constant 0.000000e+00 : f32
    %66 = vector.shape_cast %64 : vector<4x1x256xi1> to vector<4x1x256xi1>
    %67 = vector.broadcast %66 : vector<4x1x256xi1> to vector<4x16x256xi1>
    %68 = vector.shape_cast %65 : vector<1x16x256xf32> to vector<1x16x256xf32>
    %69 = vector.broadcast %68 : vector<1x16x256xf32> to vector<4x16x256xf32>
    %70 = vector.broadcast %cst_16 : f32 to vector<4x16x256xf32>
    %71 = arith.select %67, %69, %70 : vector<4x16x256xi1>, vector<4x16x256xf32>
    %72 = arith.addf %62, %71 : vector<4x16x256xf32>
    %c7_i32 = arith.constant 7 : i32
    %73 = vector.broadcast %c7_i32 : i32 to vector<4x1x256xi32>
    %74 = arith.cmpi eq, %0, %73 : vector<4x1x256xi32>
    %75 = vector.extract_strided_slice %1 {offsets = [7, 0, 0], sizes = [1, 16, 256], strides = [1, 1, 1]} : vector<16x16x256xf32> to vector<1x16x256xf32>
    %cst_17 = arith.constant 0.000000e+00 : f32
    %76 = vector.shape_cast %74 : vector<4x1x256xi1> to vector<4x1x256xi1>
    %77 = vector.broadcast %76 : vector<4x1x256xi1> to vector<4x16x256xi1>
    %78 = vector.shape_cast %75 : vector<1x16x256xf32> to vector<1x16x256xf32>
    %79 = vector.broadcast %78 : vector<1x16x256xf32> to vector<4x16x256xf32>
    %80 = vector.broadcast %cst_17 : f32 to vector<4x16x256xf32>
    %81 = arith.select %77, %79, %80 : vector<4x16x256xi1>, vector<4x16x256xf32>
    %82 = arith.addf %72, %81 : vector<4x16x256xf32>
    %c8_i32 = arith.constant 8 : i32
    %83 = vector.broadcast %c8_i32 : i32 to vector<4x1x256xi32>
    %84 = arith.cmpi eq, %0, %83 : vector<4x1x256xi32>
    %85 = vector.extract_strided_slice %1 {offsets = [8, 0, 0], sizes = [1, 16, 256], strides = [1, 1, 1]} : vector<16x16x256xf32> to vector<1x16x256xf32>
    %cst_18 = arith.constant 0.000000e+00 : f32
    %86 = vector.shape_cast %84 : vector<4x1x256xi1> to vector<4x1x256xi1>
    %87 = vector.broadcast %86 : vector<4x1x256xi1> to vector<4x16x256xi1>
    %88 = vector.shape_cast %85 : vector<1x16x256xf32> to vector<1x16x256xf32>
    %89 = vector.broadcast %88 : vector<1x16x256xf32> to vector<4x16x256xf32>
    %90 = vector.broadcast %cst_18 : f32 to vector<4x16x256xf32>
    %91 = arith.select %87, %89, %90 : vector<4x16x256xi1>, vector<4x16x256xf32>
    %92 = arith.addf %82, %91 : vector<4x16x256xf32>
    %c9_i32 = arith.constant 9 : i32
    %93 = vector.broadcast %c9_i32 : i32 to vector<4x1x256xi32>
    %94 = arith.cmpi eq, %0, %93 : vector<4x1x256xi32>
    %95 = vector.extract_strided_slice %1 {offsets = [9, 0, 0], sizes = [1, 16, 256], strides = [1, 1, 1]} : vector<16x16x256xf32> to vector<1x16x256xf32>
    %cst_19 = arith.constant 0.000000e+00 : f32
    %96 = vector.shape_cast %94 : vector<4x1x256xi1> to vector<4x1x256xi1>
    %97 = vector.broadcast %96 : vector<4x1x256xi1> to vector<4x16x256xi1>
    %98 = vector.shape_cast %95 : vector<1x16x256xf32> to vector<1x16x256xf32>
    %99 = vector.broadcast %98 : vector<1x16x256xf32> to vector<4x16x256xf32>
    %100 = vector.broadcast %cst_19 : f32 to vector<4x16x256xf32>
    %101 = arith.select %97, %99, %100 : vector<4x16x256xi1>, vector<4x16x256xf32>
    %102 = arith.addf %92, %101 : vector<4x16x256xf32>
    %c10_i32 = arith.constant 10 : i32
    %103 = vector.broadcast %c10_i32 : i32 to vector<4x1x256xi32>
    %104 = arith.cmpi eq, %0, %103 : vector<4x1x256xi32>
    %105 = vector.extract_strided_slice %1 {offsets = [10, 0, 0], sizes = [1, 16, 256], strides = [1, 1, 1]} : vector<16x16x256xf32> to vector<1x16x256xf32>
    %cst_20 = arith.constant 0.000000e+00 : f32
    %106 = vector.shape_cast %104 : vector<4x1x256xi1> to vector<4x1x256xi1>
    %107 = vector.broadcast %106 : vector<4x1x256xi1> to vector<4x16x256xi1>
    %108 = vector.shape_cast %105 : vector<1x16x256xf32> to vector<1x16x256xf32>
    %109 = vector.broadcast %108 : vector<1x16x256xf32> to vector<4x16x256xf32>
    %110 = vector.broadcast %cst_20 : f32 to vector<4x16x256xf32>
    %111 = arith.select %107, %109, %110 : vector<4x16x256xi1>, vector<4x16x256xf32>
    %112 = arith.addf %102, %111 : vector<4x16x256xf32>
    %c11_i32 = arith.constant 11 : i32
    %113 = vector.broadcast %c11_i32 : i32 to vector<4x1x256xi32>
    %114 = arith.cmpi eq, %0, %113 : vector<4x1x256xi32>
    %115 = vector.extract_strided_slice %1 {offsets = [11, 0, 0], sizes = [1, 16, 256], strides = [1, 1, 1]} : vector<16x16x256xf32> to vector<1x16x256xf32>
    %cst_21 = arith.constant 0.000000e+00 : f32
    %116 = vector.shape_cast %114 : vector<4x1x256xi1> to vector<4x1x256xi1>
    %117 = vector.broadcast %116 : vector<4x1x256xi1> to vector<4x16x256xi1>
    %118 = vector.shape_cast %115 : vector<1x16x256xf32> to vector<1x16x256xf32>
    %119 = vector.broadcast %118 : vector<1x16x256xf32> to vector<4x16x256xf32>
    %120 = vector.broadcast %cst_21 : f32 to vector<4x16x256xf32>
    %121 = arith.select %117, %119, %120 : vector<4x16x256xi1>, vector<4x16x256xf32>
    %122 = arith.addf %112, %121 : vector<4x16x256xf32>
    %c12_i32 = arith.constant 12 : i32
    %123 = vector.broadcast %c12_i32 : i32 to vector<4x1x256xi32>
    %124 = arith.cmpi eq, %0, %123 : vector<4x1x256xi32>
    %125 = vector.extract_strided_slice %1 {offsets = [12, 0, 0], sizes = [1, 16, 256], strides = [1, 1, 1]} : vector<16x16x256xf32> to vector<1x16x256xf32>
    %cst_22 = arith.constant 0.000000e+00 : f32
    %126 = vector.shape_cast %124 : vector<4x1x256xi1> to vector<4x1x256xi1>
    %127 = vector.broadcast %126 : vector<4x1x256xi1> to vector<4x16x256xi1>
    %128 = vector.shape_cast %125 : vector<1x16x256xf32> to vector<1x16x256xf32>
    %129 = vector.broadcast %128 : vector<1x16x256xf32> to vector<4x16x256xf32>
    %130 = vector.broadcast %cst_22 : f32 to vector<4x16x256xf32>
    %131 = arith.select %127, %129, %130 : vector<4x16x256xi1>, vector<4x16x256xf32>
    %132 = arith.addf %122, %131 : vector<4x16x256xf32>
    %c13_i32 = arith.constant 13 : i32
    %133 = vector.broadcast %c13_i32 : i32 to vector<4x1x256xi32>
    %134 = arith.cmpi eq, %0, %133 : vector<4x1x256xi32>
    %135 = vector.extract_strided_slice %1 {offsets = [13, 0, 0], sizes = [1, 16, 256], strides = [1, 1, 1]} : vector<16x16x256xf32> to vector<1x16x256xf32>
    %cst_23 = arith.constant 0.000000e+00 : f32
    %136 = vector.shape_cast %134 : vector<4x1x256xi1> to vector<4x1x256xi1>
    %137 = vector.broadcast %136 : vector<4x1x256xi1> to vector<4x16x256xi1>
    %138 = vector.shape_cast %135 : vector<1x16x256xf32> to vector<1x16x256xf32>
    %139 = vector.broadcast %138 : vector<1x16x256xf32> to vector<4x16x256xf32>
    %140 = vector.broadcast %cst_23 : f32 to vector<4x16x256xf32>
    %141 = arith.select %137, %139, %140 : vector<4x16x256xi1>, vector<4x16x256xf32>
    %142 = arith.addf %132, %141 : vector<4x16x256xf32>
    %c14_i32 = arith.constant 14 : i32
    %143 = vector.broadcast %c14_i32 : i32 to vector<4x1x256xi32>
    %144 = arith.cmpi eq, %0, %143 : vector<4x1x256xi32>
    %145 = vector.extract_strided_slice %1 {offsets = [14, 0, 0], sizes = [1, 16, 256], strides = [1, 1, 1]} : vector<16x16x256xf32> to vector<1x16x256xf32>
    %cst_24 = arith.constant 0.000000e+00 : f32
    %146 = vector.shape_cast %144 : vector<4x1x256xi1> to vector<4x1x256xi1>
    %147 = vector.broadcast %146 : vector<4x1x256xi1> to vector<4x16x256xi1>
    %148 = vector.shape_cast %145 : vector<1x16x256xf32> to vector<1x16x256xf32>
    %149 = vector.broadcast %148 : vector<1x16x256xf32> to vector<4x16x256xf32>
    %150 = vector.broadcast %cst_24 : f32 to vector<4x16x256xf32>
    %151 = arith.select %147, %149, %150 : vector<4x16x256xi1>, vector<4x16x256xf32>
    %152 = arith.addf %142, %151 : vector<4x16x256xf32>
    %c15_i32 = arith.constant 15 : i32
    %153 = vector.broadcast %c15_i32 : i32 to vector<4x1x256xi32>
    %154 = arith.cmpi eq, %0, %153 : vector<4x1x256xi32>
    %155 = vector.extract_strided_slice %1 {offsets = [15, 0, 0], sizes = [1, 16, 256], strides = [1, 1, 1]} : vector<16x16x256xf32> to vector<1x16x256xf32>
    %cst_25 = arith.constant 0.000000e+00 : f32
    %156 = vector.shape_cast %154 : vector<4x1x256xi1> to vector<4x1x256xi1>
    %157 = vector.broadcast %156 : vector<4x1x256xi1> to vector<4x16x256xi1>
    %158 = vector.shape_cast %155 : vector<1x16x256xf32> to vector<1x16x256xf32>
    %159 = vector.broadcast %158 : vector<1x16x256xf32> to vector<4x16x256xf32>
    %160 = vector.broadcast %cst_25 : f32 to vector<4x16x256xf32>
    %161 = arith.select %157, %159, %160 : vector<4x16x256xi1>, vector<4x16x256xf32>
    %162 = arith.addf %152, %161 : vector<4x16x256xf32>
    %163 = tpu.iota {dimensions = array<i32: 1>} : vector<1x16x256xi32>
    %164 = vector.extract_strided_slice %0 {offsets = [0, 0, 0], sizes = [1, 1, 256], strides = [1, 1, 1]} : vector<4x1x256xi32> to vector<1x1x256xi32>
    %165 = vector.broadcast %164 : vector<1x1x256xi32> to vector<1x16x256xi32>
    %166 = arith.cmpi eq, %163, %165 : vector<1x16x256xi32>
    %cst_26 = arith.constant 0.000000e+00 : f32
    %167 = vector.shape_cast %166 : vector<1x16x256xi1> to vector<1x16x256xi1>
    %168 = vector.broadcast %167 : vector<1x16x256xi1> to vector<4x16x256xi1>
    %169 = vector.broadcast %cst_26 : f32 to vector<4x16x256xf32>
    %170 = arith.select %168, %162, %169 : vector<4x16x256xi1>, vector<4x16x256xf32>
    %cst_27 = arith.constant dense<0.000000e+00> : vector<4x256xf32>
    %171 = vector.multi_reduction <add>, %170, %cst_27 [1] : vector<4x16x256xf32> to vector<4x256xf32>
    %172 = vector.shape_cast %171 : vector<4x256xf32> to vector<4x1x256xf32>
    %173 = vector.extract_strided_slice %3 {offsets = [0, 0, 0], sizes = [4, 1, 1], strides = [1, 1, 1]} : vector<4x4x1xf32> to vector<4x1x1xf32>
    %174 = vector.broadcast %173 : vector<4x1x1xf32> to vector<4x1x256xf32>
    %175 = arith.maximumf %172, %174 : vector<4x1x256xf32>
    %176 = vector.extract_strided_slice %0 {offsets = [1, 0, 0], sizes = [1, 1, 256], strides = [1, 1, 1]} : vector<4x1x256xi32> to vector<1x1x256xi32>
    %177 = vector.broadcast %176 : vector<1x1x256xi32> to vector<1x16x256xi32>
    %178 = arith.cmpi eq, %163, %177 : vector<1x16x256xi32>
    %cst_28 = arith.constant 0.000000e+00 : f32
    %179 = vector.shape_cast %178 : vector<1x16x256xi1> to vector<1x16x256xi1>
    %180 = vector.broadcast %179 : vector<1x16x256xi1> to vector<4x16x256xi1>
    %181 = vector.broadcast %cst_28 : f32 to vector<4x16x256xf32>
    %182 = arith.select %180, %162, %181 : vector<4x16x256xi1>, vector<4x16x256xf32>
    %cst_29 = arith.constant dense<0.000000e+00> : vector<4x256xf32>
    %183 = vector.multi_reduction <add>, %182, %cst_29 [1] : vector<4x16x256xf32> to vector<4x256xf32>
    %184 = vector.shape_cast %183 : vector<4x256xf32> to vector<4x1x256xf32>
    %185 = vector.extract_strided_slice %3 {offsets = [0, 1, 0], sizes = [4, 1, 1], strides = [1, 1, 1]} : vector<4x4x1xf32> to vector<4x1x1xf32>
    %186 = vector.broadcast %185 : vector<4x1x1xf32> to vector<4x1x256xf32>
    %187 = arith.maximumf %184, %186 : vector<4x1x256xf32>
    %188 = arith.addf %175, %187 : vector<4x1x256xf32>
    %189 = vector.extract_strided_slice %0 {offsets = [2, 0, 0], sizes = [1, 1, 256], strides = [1, 1, 1]} : vector<4x1x256xi32> to vector<1x1x256xi32>
    %190 = vector.broadcast %189 : vector<1x1x256xi32> to vector<1x16x256xi32>
    %191 = arith.cmpi eq, %163, %190 : vector<1x16x256xi32>
    %cst_30 = arith.constant 0.000000e+00 : f32
    %192 = vector.shape_cast %191 : vector<1x16x256xi1> to vector<1x16x256xi1>
    %193 = vector.broadcast %192 : vector<1x16x256xi1> to vector<4x16x256xi1>
    %194 = vector.broadcast %cst_30 : f32 to vector<4x16x256xf32>
    %195 = arith.select %193, %162, %194 : vector<4x16x256xi1>, vector<4x16x256xf32>
    %cst_31 = arith.constant dense<0.000000e+00> : vector<4x256xf32>
    %196 = vector.multi_reduction <add>, %195, %cst_31 [1] : vector<4x16x256xf32> to vector<4x256xf32>
    %197 = vector.shape_cast %196 : vector<4x256xf32> to vector<4x1x256xf32>
    %198 = vector.extract_strided_slice %3 {offsets = [0, 2, 0], sizes = [4, 1, 1], strides = [1, 1, 1]} : vector<4x4x1xf32> to vector<4x1x1xf32>
    %199 = vector.broadcast %198 : vector<4x1x1xf32> to vector<4x1x256xf32>
    %200 = arith.maximumf %197, %199 : vector<4x1x256xf32>
    %201 = arith.addf %188, %200 : vector<4x1x256xf32>
    %202 = vector.extract_strided_slice %0 {offsets = [3, 0, 0], sizes = [1, 1, 256], strides = [1, 1, 1]} : vector<4x1x256xi32> to vector<1x1x256xi32>
    %203 = vector.broadcast %202 : vector<1x1x256xi32> to vector<1x16x256xi32>
    %204 = arith.cmpi eq, %163, %203 : vector<1x16x256xi32>
    %cst_32 = arith.constant 0.000000e+00 : f32
    %205 = vector.shape_cast %204 : vector<1x16x256xi1> to vector<1x16x256xi1>
    %206 = vector.broadcast %205 : vector<1x16x256xi1> to vector<4x16x256xi1>
    %207 = vector.broadcast %cst_32 : f32 to vector<4x16x256xf32>
    %208 = arith.select %206, %162, %207 : vector<4x16x256xi1>, vector<4x16x256xf32>
    %cst_33 = arith.constant dense<0.000000e+00> : vector<4x256xf32>
    %209 = vector.multi_reduction <add>, %208, %cst_33 [1] : vector<4x16x256xf32> to vector<4x256xf32>
    %210 = vector.shape_cast %209 : vector<4x256xf32> to vector<4x1x256xf32>
    %211 = vector.extract_strided_slice %3 {offsets = [0, 3, 0], sizes = [4, 1, 1], strides = [1, 1, 1]} : vector<4x4x1xf32> to vector<4x1x1xf32>
    %212 = vector.broadcast %211 : vector<4x1x1xf32> to vector<4x1x256xf32>
    %213 = arith.maximumf %210, %212 : vector<4x1x256xf32>
    %214 = arith.addf %201, %213 : vector<4x1x256xf32>
    %215 = math.rsqrt %214 : vector<4x1x256xf32>
    %216 = vector.broadcast %215 : vector<4x1x256xf32> to vector<4x4x256xf32>
    %217 = arith.mulf %2, %216 : vector<4x4x256xf32>
    %218 = vector.extract_strided_slice %217 {offsets = [0, 0, 0], sizes = [1, 4, 256], strides = [1, 1, 1]} : vector<4x4x256xf32> to vector<1x4x256xf32>
    %219 = vector.broadcast %175 : vector<4x1x256xf32> to vector<4x4x256xf32>
    %220 = vector.broadcast %218 : vector<1x4x256xf32> to vector<4x4x256xf32>
    %221 = arith.mulf %219, %220 : vector<4x4x256xf32>
    %222 = vector.extract_strided_slice %217 {offsets = [1, 0, 0], sizes = [1, 4, 256], strides = [1, 1, 1]} : vector<4x4x256xf32> to vector<1x4x256xf32>
    %223 = vector.broadcast %187 : vector<4x1x256xf32> to vector<4x4x256xf32>
    %224 = vector.broadcast %222 : vector<1x4x256xf32> to vector<4x4x256xf32>
    %225 = arith.mulf %223, %224 : vector<4x4x256xf32>
    %226 = arith.addf %221, %225 : vector<4x4x256xf32>
    %227 = vector.extract_strided_slice %217 {offsets = [2, 0, 0], sizes = [1, 4, 256], strides = [1, 1, 1]} : vector<4x4x256xf32> to vector<1x4x256xf32>
    %228 = vector.broadcast %200 : vector<4x1x256xf32> to vector<4x4x256xf32>
    %229 = vector.broadcast %227 : vector<1x4x256xf32> to vector<4x4x256xf32>
    %230 = arith.mulf %228, %229 : vector<4x4x256xf32>
    %231 = arith.addf %226, %230 : vector<4x4x256xf32>
    %232 = vector.extract_strided_slice %217 {offsets = [3, 0, 0], sizes = [1, 4, 256], strides = [1, 1, 1]} : vector<4x4x256xf32> to vector<1x4x256xf32>
    %233 = vector.broadcast %213 : vector<4x1x256xf32> to vector<4x4x256xf32>
    %234 = vector.broadcast %232 : vector<1x4x256xf32> to vector<4x4x256xf32>
    %235 = arith.mulf %233, %234 : vector<4x4x256xf32>
    %236 = arith.addf %231, %235 : vector<4x4x256xf32>
    %237 = vector.broadcast %215 : vector<4x1x256xf32> to vector<4x4x256xf32>
    %238 = arith.mulf %236, %237 : vector<4x4x256xf32>
    %c0_34 = arith.constant 0 : index
    %c0_35 = arith.constant 0 : index
    %c0_36 = arith.constant 0 : index
    %239 = vector.load %arg5[%c0_34, %c0_35, %c0_36] : memref<4x4x256xf32, #tpu.memory_space<vmem>>, vector<4x4x256xf32>
    tpu.vector_store %arg5[%c0_34, %c0_35, %c0_36], %238 {strides = array<i32>} : memref<4x4x256xf32, #tpu.memory_space<vmem>>, vector<4x4x256xf32>,
    return
  }
  func.func @transform_0(%arg0: i32) -> (i32, i32, i32) {
    %c0_i32 = arith.constant 0 : i32
    %c0_i32_0 = arith.constant 0 : i32
    %c0_i32_1 = arith.constant 0 : i32
    return %c0_i32, %c0_i32_0, %arg0 : i32, i32, i32
  }
  func.func @transform_1(%arg0: i32) -> (i32, i32, i32) {
    %c0_i32 = arith.constant 0 : i32
    %c0_i32_0 = arith.constant 0 : i32
    %c0_i32_1 = arith.constant 0 : i32
    return %c0_i32, %c0_i32_0, %arg0 : i32, i32, i32
  }
  func.func @transform_2(%arg0: i32) -> (i32, i32, i32) {
    %c0_i32 = arith.constant 0 : i32
    %c0_i32_0 = arith.constant 0 : i32
    %c0_i32_1 = arith.constant 0 : i32
    return %c0_i32, %c0_i32_0, %arg0 : i32, i32, i32
  }
  func.func @transform_3(%arg0: i32) -> (i32, i32, i32) {
    %c0_i32 = arith.constant 0 : i32
    %c0_i32_0 = arith.constant 0 : i32
    %c0_i32_1 = arith.constant 0 : i32
    %c0_i32_2 = arith.constant 0 : i32
    return %c0_i32, %c0_i32_0, %c0_i32_1 : i32, i32, i32
  }
  func.func @transform_4(%arg0: i32) -> (i32, i32, i32) {
    %c0_i32 = arith.constant 0 : i32
    %c0_i32_0 = arith.constant 0 : i32
    %c0_i32_1 = arith.constant 0 : i32
    return %c0_i32, %c0_i32_0, %arg0 : i32, i32, i32
  }
}

</mosaic_0001>

<bundles_post_ra>
// kernel: agent_graph_forward_batched.1
= control target key start
LH: loop header
LB: loop body
LE: loop exit
PB: predicated region body
PF: predicated region fallthrough
CT: control target
= control target key end

     0   :  { %s2893_s15 = smov 0   ;;  %s2895_s16 = smov 0   ;;  %s5625_s0 = inlined_call_operand.vmem [shape: s32[4,1,512], index: 0, kind: input, shape index: {}]   ;;  %s5626_s1 = inlined_call_operand.vmem [shape: f32[16,16,512], index: 1, kind: input, shape index: {}]   ;;  %s5627_s2 = inlined_call_operand.vmem [shape: f32[4,4,512], index: 2, kind: input, shape index: {}]   ;;  %s5628_s3 = inlined_call_operand.vmem [shape: f32[4,4,1], index: 3, kind: input, shape index: {}]   ;;  %s5629_s4 = inlined_call_operand.vmem [shape: f32[4,4,512], index: 4, kind: output, shape index: {}]  }
   0x1   :  { %s2897_s17 = smov 0  }
   0x2 LB: > { %s2771_s18 = sadd.s32 4294967295, %s2865_s17   ;;  %s2910_s19 = sadd.s32 1, %s2865_s17   ;;  %s2865_s17 = sphi %s2897_s17, %s5985_s17   ;;  %s2861_s16 = sphi %s2895_s16, %s5984_s16   ;;  %s2857_s15 = sphi %s2893_s15, %s5983_s15  }
   0x3   : > { %s18_s20 = ssub.s32 %s2865_s17, %s2910_s19  ;;  %s21_s21 = sadd.s32 1, %s2861_s16 }
   0x4   : > { %p19_p0 = scmp.eq.s32.totalorder %s18_s20, 0  ;;  %p28_p1 = scmp.ne.s32.totalorder %s2861_s16, %s2857_s15 }
   0x5   : > { %p29_p2 = scmp.eq.s32.totalorder %s2865_s17, 0  ;;  %p131_p3 = scmp.eq.s32.totalorder %s2771_s18, 1 }
   0x6   : > { %s2921_s22 = scalar_select %p19_p0, %s2861_s16, %s21_s21  }
   0x7   : > { %p2923_p4 = por %p29_p2, %p28_p1  ;;  %p2927_p5 = por %p131_p3, %p28_p1 }
   0x8   : > { %p2774_p6 = scmp.ge.s32.totalorder %s2865_s17, 2 }
   0xa   : > { %156 = sbr.rel (%p2774_p6) target bundleno = 67 (0x43), region = 20 }
  0x11   : > { %159 = sbr.rel (!%p2923_p4) target bundleno = 24 (0x18), region = 24  ;;  %s161_s25 = sand.u32 (%p2923_p4), 1, %s2861_s16  }
  0x12   : > { %s2776_s26 = sshll.u32 (%p2923_p4), %s2865_s17, 1  ;;  %s2775_s27 = sshll.u32 (%p2923_p4), %s161_s25, 3 }
  0x13   : > { %s165_s30 = scalar_lea.vmem (%p2923_p4), %s5625_s0, %s2776_s26  ;;  %s163_s5 = scalar_lea.vmem (%p2923_p4), [#allocation2], %s2775_s27 }
  0x14   : > { %v181_v0 = vld [vmem:[%s165_s30] sm:$0x3] (%p2923_p4)  ;;  %v183_v1 = vld [vmem:[%s165_s30 + $0x4] sm:$0x3] (%p2923_p4)  ;;  %v185_v2 = vld [vmem:[%s165_s30 + $0x8] sm:$0x3] (%p2923_p4) }
  0x15   : > { %182 = vst [vmem:[%s163_s5] sm:$0x3] (%p2923_p4), %v181_v0  ;;  %184 = vst [vmem:[%s163_s5 + $0x2] sm:$0x3] (%p2923_p4), %v183_v1  ;;  %v187_v3 = vld [vmem:[%s165_s30 + $0xc] sm:$0x3] (%p2923_p4) }
  0x16   : > { %186 = vst [vmem:[%s163_s5 + $0x4] sm:$0x3] (%p2923_p4), %v185_v2  ;;  %188 = vst [vmem:[%s163_s5 + $0x6] sm:$0x3] (%p2923_p4), %v187_v3 }
  0x18 PF: > { %219 = sbr.rel (!%p2923_p4) target bundleno = 60 (0x3c), region = 65  ;;  %s221_s6 = sand.u32 (%p2923_p4), 1, %s2861_s16  }
  0x19   : > { %s2793_s7 = sshll.u32 (%p2923_p4), %s2865_s17, 4  ;;  %s2777_s8 = sshll.u32 (%p2923_p4), %s221_s6, 9 }
  0x1a   : > { %s2946_s11 = scalar_lea.vmem (%p2923_p4), %s5626_s1, %s2793_s7  ;;  %s2951_s12 = scalar_lea.vmem (%p2923_p4), [#allocation3], %s2777_s8 }
  0x1b   : > { %v239_v4 = vld [vmem:[%s2946_s11] sm:$0xff] (%p2923_p4)  ;;  %v241_v5 = vld [vmem:[%s2946_s11 + $0x8] sm:$0xff] (%p2923_p4) }
  0x1c   : > { %v243_v6 = vld [vmem:[%s2946_s11 + $0x20] sm:$0xff] (%p2923_p4)  ;;  %240 = vst [vmem:[%s2951_s12] sm:$0xff] (%p2923_p4), %v239_v4  ;;  %242 = vst [vmem:[%s2951_s12 + $0x8] sm:$0xff] (%p2923_p4), %v241_v5  ;;  %v245_v7 = vld [vmem:[%s2946_s11 + $0x28] sm:$0xff] (%p2923_p4) }
  0x1d   : > { %244 = vst [vmem:[%s2951_s12 + $0x10] sm:$0xff] (%p2923_p4), %v243_v6  ;;  %v247_v8 = vld [vmem:[%s2946_s11 + $0x40] sm:$0xff] (%p2923_p4)  ;;  %v249_v9 = vld [vmem:[%s2946_s11 + $0x48] sm:$0xff] (%p2923_p4)  ;;  %246 = vst [vmem:[%s2951_s12 + $0x18] sm:$0xff] (%p2923_p4), %v245_v7 }
  0x1e   : > { %248 = vst [vmem:[%s2951_s12 + $0x20] sm:$0xff] (%p2923_p4), %v247_v8  ;;  %250 = vst [vmem:[%s2951_s12 + $0x28] sm:$0xff] (%p2923_p4), %v249_v9  ;;  %v251_v10 = vld [vmem:[%s2946_s11 + $0x60] sm:$0xff] (%p2923_p4)  ;;  %v253_v11 = vld [vmem:[%s2946_s11 + $0x68] sm:$0xff] (%p2923_p4) }
  0x1f   : > { %v255_v12 = vld [vmem:[%s2946_s11 + $0x80] sm:$0xff]  ;;  %252 = vst [vmem:[%s2951_s12 + $0x30] sm:$0xff] %v251_v10  ;;  %254 = vst [vmem:[%s2951_s12 + $0x38] sm:$0xff] %v253_v11  ;;  %v257_v13 = vld [vmem:[%s2946_s11 + $0x88] sm:$0xff] }
  0x20   : > { %256 = vst [vmem:[%s2951_s12 + $0x40] sm:$0xff] %v255_v12  ;;  %v259_v14 = vld [vmem:[%s2946_s11 + $0xa0] sm:$0xff]  ;;  %v261_v15 = vld [vmem:[%s2946_s11 + $0xa8] sm:$0xff]  ;;  %258 = vst [vmem:[%s2951_s12 + $0x48] sm:$0xff] %v257_v13 }
  0x21   : > { %260 = vst [vmem:[%s2951_s12 + $0x50] sm:$0xff] %v259_v14  ;;  %262 = vst [vmem:[%s2951_s12 + $0x58] sm:$0xff] %v261_v15  ;;  %v263_v16 = vld [vmem:[%s2946_s11 + $0xc0] sm:$0xff]  ;;  %v265_v17 = vld [vmem:[%s2946_s11 + $0xc8] sm:$0xff] }
  0x22   : > { %v267_v18 = vld [vmem:[%s2946_s11 + $0xe0] sm:$0xff]  ;;  %264 = vst [vmem:[%s2951_s12 + $0x60] sm:$0xff] %v263_v16  ;;  %266 = vst [vmem:[%s2951_s12 + $0x68] sm:$0xff] %v265_v17  ;;  %v269_v19 = vld [vmem:[%s2946_s11 + $0xe8] sm:$0xff] }
  0x23   : > { %268 = vst [vmem:[%s2951_s12 + $0x70] sm:$0xff] %v267_v18  ;;  %v271_v20 = vld [vmem:[%s2946_s11 + $0x100] sm:$0xff]  ;;  %v273_v21 = vld [vmem:[%s2946_s11 + $0x108] sm:$0xff]  ;;  %270 = vst [vmem:[%s2951_s12 + $0x78] sm:$0xff] %v269_v19 }
  0x24   : > { %272 = vst [vmem:[%s2951_s12 + $0x80] sm:$0xff] %v271_v20  ;;  %274 = vst [vmem:[%s2951_s12 + $0x88] sm:$0xff] %v273_v21  ;;  %v275_v22 = vld [vmem:[%s2946_s11 + $0x120] sm:$0xff]  ;;  %v277_v23 = vld [vmem:[%s2946_s11 + $0x128] sm:$0xff] }
  0x25   : > { %v279_v24 = vld [vmem:[%s2946_s11 + $0x140] sm:$0xff]  ;;  %276 = vst [vmem:[%s2951_s12 + $0x90] sm:$0xff] %v275_v22  ;;  %278 = vst [vmem:[%s2951_s12 + $0x98] sm:$0xff] %v277_v23  ;;  %v281_v25 = vld [vmem:[%s2946_s11 + $0x148] sm:$0xff] }
  0x26   : > { %280 = vst [vmem:[%s2951_s12 + $0xa0] sm:$0xff] %v279_v24  ;;  %v283_v26 = vld [vmem:[%s2946_s11 + $0x160] sm:$0xff]  ;;  %v285_v27 = vld [vmem:[%s2946_s11 + $0x168] sm:$0xff]  ;;  %282 = vst [vmem:[%s2951_s12 + $0xa8] sm:$0xff] %v281_v25 }
  0x27   : > { %284 = vst [vmem:[%s2951_s12 + $0xb0] sm:$0xff] %v283_v26  ;;  %286 = vst [vmem:[%s2951_s12 + $0xb8] sm:$0xff] %v285_v27  ;;  %v287_v28 = vld [vmem:[%s2946_s11 + $0x180] sm:$0xff]  ;;  %v289_v29 = vld [vmem:[%s2946_s11 + $0x188] sm:$0xff] }
  0x28   : > { %v291_v30 = vld [vmem:[%s2946_s11 + $0x1a0] sm:$0xff]  ;;  %288 = vst [vmem:[%s2951_s12 + $0xc0] sm:$0xff] %v287_v28  ;;  %290 = vst [vmem:[%s2951_s12 + $0xc8] sm:$0xff] %v289_v29  ;;  %v293_v31 = vld [vmem:[%s2946_s11 + $0x1a8] sm:$0xff] }
  0x29   : > { %292 = vst [vmem:[%s2951_s12 + $0xd0] sm:$0xff] %v291_v30  ;;  %v295_v32 = vld [vmem:[%s2946_s11 + $0x1c0] sm:$0xff]  ;;  %v297_v33 = vld [vmem:[%s2946_s11 + $0x1c8] sm:$0xff]  ;;  %294 = vst [vmem:[%s2951_s12 + $0xd8] sm:$0xff] %v293_v31 }
  0x2a   : > { %296 = vst [vmem:[%s2951_s12 + $0xe0] sm:$0xff] %v295_v32  ;;  %298 = vst [vmem:[%s2951_s12 + $0xe8] sm:$0xff] %v297_v33  ;;  %v299_v34 = vld [vmem:[%s2946_s11 + $0x1e0] sm:$0xff]  ;;  %v301_v35 = vld [vmem:[%s2946_s11 + $0x1e8] sm:$0xff] }
  0x2b   : > { %v303_v36 = vld [vmem:[%s2946_s11 + $0x200] sm:$0xff]  ;;  %300 = vst [vmem:[%s2951_s12 + $0xf0] sm:$0xff] %v299_v34  ;;  %302 = vst [vmem:[%s2951_s12 + $0xf8] sm:$0xff] %v301_v35  ;;  %v305_v37 = vld [vmem:[%s2946_s11 + $0x208] sm:$0xff] }
  0x2c   : > { %304 = vst [vmem:[%s2951_s12 + $0x100] sm:$0xff] %v303_v36  ;;  %v307_v38 = vld [vmem:[%s2946_s11 + $0x220] sm:$0xff]  ;;  %v309_v39 = vld [vmem:[%s2946_s11 + $0x228] sm:$0xff]  ;;  %306 = vst [vmem:[%s2951_s12 + $0x108] sm:$0xff] %v305_v37 }
  0x2d   : > { %308 = vst [vmem:[%s2951_s12 + $0x110] sm:$0xff] %v307_v38  ;;  %310 = vst [vmem:[%s2951_s12 + $0x118] sm:$0xff] %v309_v39  ;;  %v311_v40 = vld [vmem:[%s2946_s11 + $0x240] sm:$0xff]  ;;  %v313_v41 = vld [vmem:[%s2946_s11 + $0x248] sm:$0xff] }
  0x2e   : > { %v315_v42 = vld [vmem:[%s2946_s11 + $0x260] sm:$0xff]  ;;  %312 = vst [vmem:[%s2951_s12 + $0x120] sm:$0xff] %v311_v40  ;;  %314 = vst [vmem:[%s2951_s12 + $0x128] sm:$0xff] %v313_v41  ;;  %v317_v43 = vld [vmem:[%s2946_s11 + $0x268] sm:$0xff] }
  0x2f   : > { %316 = vst [vmem:[%s2951_s12 + $0x130] sm:$0xff] %v315_v42  ;;  %v319_v44 = vld [vmem:[%s2946_s11 + $0x280] sm:$0xff]  ;;  %v321_v45 = vld [vmem:[%s2946_s11 + $0x288] sm:$0xff]  ;;  %318 = vst [vmem:[%s2951_s12 + $0x138] sm:$0xff] %v317_v43 }
  0x30   : > { %320 = vst [vmem:[%s2951_s12 + $0x140] sm:$0xff] %v319_v44  ;;  %322 = vst [vmem:[%s2951_s12 + $0x148] sm:$0xff] %v321_v45  ;;  %v323_v46 = vld [vmem:[%s2946_s11 + $0x2a0] sm:$0xff]  ;;  %v325_v47 = vld [vmem:[%s2946_s11 + $0x2a8] sm:$0xff] }
  0x31   : > { %v327_v48 = vld [vmem:[%s2946_s11 + $0x2c0] sm:$0xff]  ;;  %324 = vst [vmem:[%s2951_s12 + $0x150] sm:$0xff] %v323_v46  ;;  %326 = vst [vmem:[%s2951_s12 + $0x158] sm:$0xff] %v325_v47  ;;  %v329_v49 = vld [vmem:[%s2946_s11 + $0x2c8] sm:$0xff] }
  0x32   : > { %328 = vst [vmem:[%s2951_s12 + $0x160] sm:$0xff] %v327_v48  ;;  %v331_v50 = vld [vmem:[%s2946_s11 + $0x2e0] sm:$0xff]  ;;  %v333_v51 = vld [vmem:[%s2946_s11 + $0x2e8] sm:$0xff]  ;;  %330 = vst [vmem:[%s2951_s12 + $0x168] sm:$0xff] %v329_v49 }
  0x33   : > { %332 = vst [vmem:[%s2951_s12 + $0x170] sm:$0xff] %v331_v50  ;;  %334 = vst [vmem:[%s2951_s12 + $0x178] sm:$0xff] %v333_v51  ;;  %v335_v52 = vld [vmem:[%s2946_s11 + $0x300] sm:$0xff]  ;;  %v337_v53 = vld [vmem:[%s2946_s11 + $0x308] sm:$0xff] }
  0x34   : > { %v339_v54 = vld [vmem:[%s2946_s11 + $0x320] sm:$0xff]  ;;  %336 = vst [vmem:[%s2951_s12 + $0x180] sm:$0xff] %v335_v52  ;;  %338 = vst [vmem:[%s2951_s12 + $0x188] sm:$0xff] %v337_v53  ;;  %v341_v55 = vld [vmem:[%s2946_s11 + $0x328] sm:$0xff] }
  0x35   : > { %340 = vst [vmem:[%s2951_s12 + $0x190] sm:$0xff] %v339_v54  ;;  %v343_v56 = vld [vmem:[%s2946_s11 + $0x340] sm:$0xff]  ;;  %v345_v57 = vld [vmem:[%s2946_s11 + $0x348] sm:$0xff]  ;;  %342 = vst [vmem:[%s2951_s12 + $0x198] sm:$0xff] %v341_v55 }
  0x36   : > { %344 = vst [vmem:[%s2951_s12 + $0x1a0] sm:$0xff] %v343_v56  ;;  %346 = vst [vmem:[%s2951_s12 + $0x1a8] sm:$0xff] %v345_v57  ;;  %v347_v58 = vld [vmem:[%s2946_s11 + $0x360] sm:$0xff]  ;;  %v349_v59 = vld [vmem:[%s2946_s11 + $0x368] sm:$0xff] }
  0x37   : > { %v351_v60 = vld [vmem:[%s2946_s11 + $0x380] sm:$0xff]  ;;  %348 = vst [vmem:[%s2951_s12 + $0x1b0] sm:$0xff] %v347_v58  ;;  %350 = vst [vmem:[%s2951_s12 + $0x1b8] sm:$0xff] %v349_v59  ;;  %v353_v61 = vld [vmem:[%s2946_s11 + $0x388] sm:$0xff] }
  0x38   : > { %352 = vst [vmem:[%s2951_s12 + $0x1c0] sm:$0xff] %v351_v60  ;;  %v355_v62 = vld [vmem:[%s2946_s11 + $0x3a0] sm:$0xff]  ;;  %v357_v63 = vld [vmem:[%s2946_s11 + $0x3a8] sm:$0xff]  ;;  %354 = vst [vmem:[%s2951_s12 + $0x1c8] sm:$0xff] %v353_v61 }
  0x39   : > { %356 = vst [vmem:[%s2951_s12 + $0x1d0] sm:$0xff] %v355_v62  ;;  %358 = vst [vmem:[%s2951_s12 + $0x1d8] sm:$0xff] %v357_v63  ;;  %v359_v0 = vld [vmem:[%s2946_s11 + $0x3c0] sm:$0xff]  ;;  %v361_v1 = vld [vmem:[%s2946_s11 + $0x3c8] sm:$0xff] }
  0x3a   : > { %v363_v2 = vld [vmem:[%s2946_s11 + $0x3e0] sm:$0xff]  ;;  %360 = vst [vmem:[%s2951_s12 + $0x1e0] sm:$0xff] %v359_v0  ;;  %362 = vst [vmem:[%s2951_s12 + $0x1e8] sm:$0xff] %v361_v1  ;;  %v365_v3 = vld [vmem:[%s2946_s11 + $0x3e8] sm:$0xff] }
  0x3b   : > { %364 = vst [vmem:[%s2951_s12 + $0x1f0] sm:$0xff] %v363_v2  ;;  %366 = vst [vmem:[%s2951_s12 + $0x1f8] sm:$0xff] %v365_v3 }
  0x3c PF: > { %372 = sbr.rel (!%p2923_p4) target bundleno = 67 (0x43), region = 88  ;;  %s374_s13 = sand.u32 (%p2923_p4), 1, %s2861_s16  }
  0x3d   : > { %s2794_s14 = sshll.u32 (%p2923_p4), %s2865_s17, 3  ;;  %s2780_s20 = sshll.u32 (%p2923_p4), %s374_s13, 5 }
  0x3e   : > { %s379_s26 = scalar_lea.vmem (%p2923_p4), %s5627_s2, %s2794_s14  ;;  %s376_s27 = scalar_lea.vmem (%p2923_p4), [#allocation4], %s2780_s20 }
  0x3f   : > { %v413_v4 = vld [vmem:[%s379_s26] sm:$0xff] (%p2923_p4)  ;;  %v415_v5 = vld [vmem:[%s379_s26 + $0x10] sm:$0xff] (%p2923_p4) }
  0x40   : > { %v417_v6 = vld [vmem:[%s379_s26 + $0x20] sm:$0xff] (%p2923_p4)  ;;  %414 = vst [vmem:[%s376_s27] sm:$0xff] (%p2923_p4), %v413_v4  ;;  %416 = vst [vmem:[%s376_s27 + $0x8] sm:$0xff] (%p2923_p4), %v415_v5  ;;  %v419_v7 = vld [vmem:[%s379_s26 + $0x30] sm:$0xff] (%p2923_p4) }
  0x41   : > { %418 = vst [vmem:[%s376_s27 + $0x10] sm:$0xff] (%p2923_p4), %v417_v6  ;;  %420 = vst [vmem:[%s376_s27 + $0x18] sm:$0xff] (%p2923_p4), %v419_v7 }
  0x43 PF: > { %p2783_p7 = scmp.ge.s32.totalorder %s2865_s17, 1  ;;  %p425_p8 = scmp.lt.s32.totalorder %s2865_s17, 3 }
  0x45   : > { %p426_p9 = pnand %p2783_p7, %p425_p8 }
  0x47   : > { %429 = sbr.rel (%p426_p9) target bundleno = 450 (0x1c2), region = 126 }
  0x4e   : > { %v556_v8 = vld [vmem:[%s5628_s3 + $0x8] sm:$0xf]  ;;  %v554_v9 = vld [vmem:[%s5628_s3] sm:$0xf]  ;;  %s3094_s5 = sand.u32 1, %s2857_s15   ;;  %v566_v10 = vlaneseq  ;;  %v2867_v11 = vmov 0  }
  0x4f   : > { %2822 = vset.pattern.permute.xlu1 %v2867_v11  ;;  %2821 = vset.pattern.permute.xlu0 %v2867_v11  ;;  %s2784_s6 = sshll.u32 %s3094_s5, 3  ;;  %v557_v12 = vld [vmem:[%s5628_s3 + $0xc] sm:$0xf]  ;;  %v555_v13 = vld [vmem:[%s5628_s3 + $0x4] sm:$0xf]  ;;  %s2785_s11 = sshll.u32 %s3094_s5, 9 }
  0x50   : > { %1929 = vperm.xlu1 %2822, %v556_v8   ;;  %1919 = vperm.xlu0 %2821, %v554_v9   ;;  %s3105_s15 = scalar_lea.vmem [#allocation2], %s2784_s6  ;;  %v3120_v18 = vshrl.u32 %v566_v10, 7  ;;  %s3144_s12 = scalar_lea.vmem [#allocation3], %s2785_s11 }
  0x51   : > { %v3108_v14 = vld [vmem:[%s3105_s15] sm:$0x3]  ;;  %v3111_v15 = vld [vmem:[%s3105_s15 + $0x2] sm:$0x3]  ;;  %v3114_v16 = vld [vmem:[%s3105_s15 + $0x4] sm:$0x3] }
  0x52   : > { %v3117_v17 = vld [vmem:[%s3105_s15 + $0x6] sm:$0x3]  ;;  %vm558_vm0 = vcmp.eq.s32.totalorder %v3108_v14, 0  ;;  %vm559_vm1 = vcmp.eq.s32.totalorder %v3111_v15, 0  ;;  %vm560_vm2 = vcmp.eq.s32.totalorder %v3114_v16, 0  ;;  %v3129_v21 = vsub.s32 0, %v3120_v18 }
  0x53   : > { %vm561_vm3 = vcmp.eq.s32.totalorder %v3117_v17, 0  ;;  %v562_v19 = vsel %vm558_vm0, 1, %v2867_v11  ;;  %v563_v20 = vsel %vm559_vm1, 1, %v2867_v11  ;;  %v3132_v22 = vsub.s32 1, %v3120_v18  ;;  %v3147_v33 = vld [vmem:[%s3144_s12] sm:$0xff]  ;;  %v3150_v34 = vld [vmem:[%s3144_s12 + $0x8] sm:$0xff] }
  0x54   : > { %1934 = vperm.xlu1 %2822, %v557_v12   ;;  %1924 = vperm.xlu0 %2821, %v555_v13   ;;  %5665 = vst [vmem:[#allocation6_spill] sm:$0xff] %v3129_v21  ;;  %v564_v23 = vsel %vm560_vm2, 1, %v2867_v11  ;;  %v565_v24 = vsel %vm561_vm3, 1, %v2867_v11  ;;  %v569_v25 = vrot.slane %v562_v19, %v3129_v21  ;;  %v577_v27 = vrot.slane %v563_v20, %v3129_v21  ;;  %v3157_v36 = vld [vmem:[%s3144_s12 + $0x10] sm:$0xff]  ;;  %v3160_v37 = vld [vmem:[%s3144_s12 + $0x18] sm:$0xff]  ;;  %v3240_v62 = vld [vmem:[%s3144_s12 + $0x20] sm:$0xff] }
  0x55   : > { %5666 = vst [vmem:[#allocation7_spill] sm:$0xff] %v3132_v22  ;;  %v573_v26 = vrot.slane %v562_v19, %v3132_v22  ;;  %v581_v28 = vrot.slane %v563_v20, %v3132_v22  ;;  %v585_v29 = vrot.slane %v564_v23, %v3129_v21  ;;  %v589_v30 = vrot.slane %v564_v23, %v3132_v22  ;;  %v3247_v3 = vld [vmem:[%s3144_s12 + $0x28] sm:$0xff]  ;;  %v3261_v8 = vld [vmem:[%s3144_s12 + $0x30] sm:$0xff]  ;;  %v3264_v9 = vld [vmem:[%s3144_s12 + $0x38] sm:$0xff]  ;;  %s2786_s13 = sshll.u32 %s3094_s5, 5  ;;  %s2795_s21 = sshll.u32 (%p2927_p5), %s2771_s18, 3 }
  0x56   : > { %v593_v31 = vrot.slane %v565_v24, %v3129_v21  ;;  %v597_v32 = vrot.slane %v565_v24, %v3132_v22  ;;  %vm3152_vm4 = vcmp.eq.s32.totalorder %v569_v25, 1  ;;  %vm3166_vm6 = vcmp.eq.s32.totalorder %v577_v27, 1  ;;  %v3380_v7 = vld [vmem:[%s3144_s12 + $0x48] sm:$0xff]  ;;  %s5491_s14 = scalar_lea.vmem [#allocation4], %s2786_s13  ;;  %s477_s20 = scalar_lea.vmem [#allocation5], %s2786_s13 }
  0x57   : > { %vm3162_vm5 = vcmp.eq.s32.totalorder %v573_v26, 1  ;;  %vm622_vm7 = vcmp.eq.s32.totalorder %v3108_v14, 1  ;;  %vm623_vm8 = vcmp.eq.s32.totalorder %v3111_v15, 1  ;;  %vm3172_vm9 = vcmp.eq.s32.totalorder %v581_v28, 1  ;;  %s2634_s27 = scalar_lea.vmem (%p2927_p5), %s5629_s4, %s2795_s21 }
  0x58   : > { %vm3176_vm10 = vcmp.eq.s32.totalorder %v585_v29, 1  ;;  %vm624_vm11 = vcmp.eq.s32.totalorder %v3114_v16, 1  ;;  %vm625_vm12 = vcmp.eq.s32.totalorder %v3117_v17, 1  ;;  %vm3182_vm13 = vcmp.eq.s32.totalorder %v589_v30, 1 }
  0x59   : > { %vm3186_vm14 = vcmp.eq.s32.totalorder %v593_v31, 1  ;;  %vm3190_vm15 = vcmp.eq.s32.totalorder %v597_v32, 1  ;;  %v606_v45 = vsel %vm3152_vm4, %v3147_v33, 0.0  ;;  %v607_v46 = vsel %vm3162_vm5, %v3150_v34, 0.0 }
  0x5a   : > { %v608_v47 = vsel %vm3152_vm4, %v3157_v36, 0.0  ;;  %v609_v48 = vsel %vm3162_vm5, %v3160_v37, 0.0  ;;  %v610_v49 = vsel %vm3166_vm6, %v3147_v33, 0.0  ;;  %v611_v50 = vsel %vm3172_vm9, %v3150_v34, 0.0 }
  0x5b   : > { %v612_v51 = vsel %vm3166_vm6, %v3157_v36, 0.0  ;;  %v613_v52 = vsel %vm3172_vm9, %v3160_v37, 0.0  ;;  %v614_v53 = vsel %vm3176_vm10, %v3147_v33, 0.0  ;;  %v615_v54 = vsel %vm3182_vm13, %v3150_v34, 0.0 }
  0x5c   : > { %v626_v55 = vsel %vm622_vm7, 1, %v2867_v11  ;;  %v627_v56 = vsel %vm623_vm8, 1, %v2867_v11  ;;  %v628_v57 = vsel %vm624_vm11, 1, %v2867_v11  ;;  %v629_v58 = vsel %vm625_vm12, 1, %v2867_v11 }
  0x5d   : > { %v633_v59 = vrot.slane %v626_v55, %v3129_v21  ;;  %v637_v60 = vrot.slane %v626_v55, %v3132_v22  ;;  %v641_v61 = vrot.slane %v627_v56, %v3129_v21  ;;  %v645_v63 = vrot.slane %v627_v56, %v3132_v22 }
  0x5e   : > { %v649_v0 = vrot.slane %v628_v57, %v3129_v21  ;;  %v653_v1 = vrot.slane %v628_v57, %v3132_v22  ;;  %v657_v2 = vrot.slane %v629_v58, %v3129_v21  ;;  %v616_v4 = vsel %vm3176_vm10, %v3157_v36, 0.0 }
  0x5f   : > { %v617_v5 = vsel %vm3182_vm13, %v3160_v37, 0.0  ;;  %v661_v6 = vrot.slane %v629_v58, %v3132_v22  ;;  %vm3256_vm0 = vcmp.eq.s32.totalorder %v633_v59, 1  ;;  %v618_v10 = vsel %vm3186_vm14, %v3147_v33, 0.0 }
  0x60   : > { %v619_v12 = vsel %vm3190_vm15, %v3150_v34, 0.0  ;;  %v620_v13 = vsel %vm3186_vm14, %v3157_v36, 0.0  ;;  %vm3275_vm1 = vcmp.eq.s32.totalorder %v637_v60, 1  ;;  %v621_v20 = vsel %vm3190_vm15, %v3160_v37, 0.0 }
  0x61   : > { %vm3282_vm2 = vcmp.eq.s32.totalorder %v641_v61, 1  ;;  %vm3286_vm3 = vcmp.eq.s32.totalorder %v645_v63, 1  ;;  %v670_v25 = vsel %vm3256_vm0, %v3240_v62, 0.0  ;;  %vm3293_vm4 = vcmp.eq.s32.totalorder %v649_v0, 1 }
  0x62   : > { %vm3297_vm5 = vcmp.eq.s32.totalorder %v653_v1, 1  ;;  %vm3301_vm6 = vcmp.eq.s32.totalorder %v657_v2, 1  ;;  %vm3305_vm7 = vcmp.eq.s32.totalorder %v661_v6, 1  ;;  %v671_v30 = vsel %vm3275_vm1, %v3247_v3, 0.0  ;;  %v3370_v2 = vld [vmem:[%s3144_s12 + $0x40] sm:$0xff] }
  0x63   : > { %v672_v31 = vsel %vm3256_vm0, %v3261_v8, 0.0  ;;  %v673_v32 = vsel %vm3275_vm1, %v3264_v9, 0.0  ;;  %v3318_v33 = vadd.f32 %v670_v25, %v606_v45  ;;  %v674_v34 = vsel %vm3282_vm2, %v3240_v62, 0.0 }
  0x64   : > { %v675_v35 = vsel %vm3286_vm3, %v3247_v3, 0.0  ;;  %v676_v36 = vsel %vm3282_vm2, %v3261_v8, 0.0  ;;  %v677_v37 = vsel %vm3286_vm3, %v3264_v9, 0.0  ;;  %v678_v38 = vsel %vm3293_vm4, %v3240_v62, 0.0 }
  0x65   : > { %v679_v39 = vsel %vm3297_vm5, %v3247_v3, 0.0  ;;  %v680_v40 = vsel %vm3293_vm4, %v3261_v8, 0.0  ;;  %v681_v41 = vsel %vm3297_vm5, %v3264_v9, 0.0  ;;  %v682_v42 = vsel %vm3301_vm6, %v3240_v62, 0.0 }
  0x66   : > { %v683_v43 = vsel %vm3305_vm7, %v3247_v3, 0.0  ;;  %v684_v44 = vsel %vm3301_vm6, %v3261_v8, 0.0  ;;  %v685_v45 = vsel %vm3305_vm7, %v3264_v9, 0.0  ;;  %v687_v55 = vadd.f32 %v671_v30, %v607_v46  ;;  %v3383_v8 = vld [vmem:[%s3144_s12 + $0x50] sm:$0xff]  ;;  %v3386_v9 = vld [vmem:[%s3144_s12 + $0x58] sm:$0xff] }
  0x67   : > { %v688_v56 = vadd.f32 %v672_v31, %v608_v47  ;;  %v689_v57 = vadd.f32 %v673_v32, %v609_v48  ;;  %v690_v58 = vadd.f32 %v674_v34, %v610_v49  ;;  %v691_v59 = vadd.f32 %v675_v35, %v611_v50 }
  0x68   : > { %v692_v60 = vadd.f32 %v676_v36, %v612_v51  ;;  %v693_v61 = vadd.f32 %v677_v37, %v613_v52  ;;  %v694_v62 = vadd.f32 %v678_v38, %v614_v53  ;;  %v695_v63 = vadd.f32 %v679_v39, %v615_v54 }
  0x69   : > { %v696_v0 = vadd.f32 %v680_v40, %v616_v4  ;;  %v697_v1 = vadd.f32 %v681_v41, %v617_v5  ;;  %vm702_vm8 = vcmp.eq.s32.totalorder %v3108_v14, 2  ;;  %vm703_vm9 = vcmp.eq.s32.totalorder %v3111_v15, 2 }
  0x6a   : > { %vm704_vm10 = vcmp.eq.s32.totalorder %v3114_v16, 2  ;;  %vm705_vm11 = vcmp.eq.s32.totalorder %v3117_v17, 2  ;;  %v706_v46 = vsel %vm702_vm8, 1, %v2867_v11  ;;  %v707_v47 = vsel %vm703_vm9, 1, %v2867_v11 }
  0x6b   : > { %v708_v48 = vsel %vm704_vm10, 1, %v2867_v11  ;;  %v709_v49 = vsel %vm705_vm11, 1, %v2867_v11  ;;  %v713_v50 = vrot.slane %v706_v46, %v3129_v21  ;;  %v717_v51 = vrot.slane %v706_v46, %v3132_v22 }
  0x6c   : > { %v721_v52 = vrot.slane %v707_v47, %v3129_v21  ;;  %v725_v53 = vrot.slane %v707_v47, %v3132_v22  ;;  %v729_v54 = vrot.slane %v708_v48, %v3129_v21  ;;  %v733_v3 = vrot.slane %v708_v48, %v3132_v22 }
  0x6d   : > { %v737_v4 = vrot.slane %v709_v49, %v3129_v21  ;;  %v741_v5 = vrot.slane %v709_v49, %v3132_v22  ;;  %vm3375_vm12 = vcmp.eq.s32.totalorder %v713_v50, 1  ;;  %v698_v19 = vadd.f32 %v682_v42, %v618_v10 }
  0x6e   : > { %v699_v23 = vadd.f32 %v683_v43, %v619_v12  ;;  %vm3388_vm13 = vcmp.eq.s32.totalorder %v717_v51, 1  ;;  %vm3392_vm14 = vcmp.eq.s32.totalorder %v721_v52, 1  ;;  %v700_v26 = vadd.f32 %v684_v44, %v620_v13 }
  0x6f   : > { %v701_v27 = vadd.f32 %v685_v45, %v621_v20  ;;  %vm3396_vm15 = vcmp.eq.s32.totalorder %v725_v53, 1  ;;  %vm3400_vm0 = vcmp.eq.s32.totalorder %v729_v54, 1  ;;  %vm3404_vm1 = vcmp.eq.s32.totalorder %v733_v3, 1 }
  0x70   : > { %vm3408_vm2 = vcmp.eq.s32.totalorder %v737_v4, 1  ;;  %vm3412_vm3 = vcmp.eq.s32.totalorder %v741_v5, 1  ;;  %v750_v13 = vsel %vm3375_vm12, %v3370_v2, 0.0  ;;  %v751_v20 = vsel %vm3388_vm13, %v3380_v7, 0.0 }
  0x71   : > { %v752_v31 = vsel %vm3375_vm12, %v3383_v8, 0.0  ;;  %v753_v32 = vsel %vm3388_vm13, %v3386_v9, 0.0  ;;  %v754_v34 = vsel %vm3392_vm14, %v3370_v2, 0.0  ;;  %v755_v35 = vsel %vm3396_vm15, %v3380_v7, 0.0 }
  0x72   : > { %v756_v36 = vsel %vm3392_vm14, %v3383_v8, 0.0  ;;  %v757_v37 = vsel %vm3396_vm15, %v3386_v9, 0.0  ;;  %v758_v38 = vsel %vm3400_vm0, %v3370_v2, 0.0  ;;  %v759_v39 = vsel %vm3404_vm1, %v3380_v7, 0.0 }
  0x73   : > { %v760_v40 = vsel %vm3400_vm0, %v3383_v8, 0.0  ;;  %v761_v41 = vsel %vm3404_vm1, %v3386_v9, 0.0  ;;  %v762_v42 = vsel %vm3408_vm2, %v3370_v2, 0.0  ;;  %v763_v43 = vsel %vm3412_vm3, %v3380_v7, 0.0  ;;  %v3489_v7 = vld [vmem:[%s3144_s12 + $0x68] sm:$0xff] }
  0x74   : > { %v764_v44 = vsel %vm3408_vm2, %v3383_v8, 0.0  ;;  %v765_v45 = vsel %vm3412_vm3, %v3386_v9, 0.0  ;;  %v766_v46 = vadd.f32 %v750_v13, %v3318_v33  ;;  %v767_v47 = vadd.f32 %v751_v20, %v687_v55  ;;  %v3492_v8 = vld [vmem:[%s3144_s12 + $0x70] sm:$0xff]  ;;  %v3495_v9 = vld [vmem:[%s3144_s12 + $0x78] sm:$0xff] }
  0x75   : > { %v768_v48 = vadd.f32 %v752_v31, %v688_v56  ;;  %v769_v49 = vadd.f32 %v753_v32, %v689_v57  ;;  %v770_v50 = vadd.f32 %v754_v34, %v690_v58  ;;  %v771_v51 = vadd.f32 %v755_v35, %v691_v59 }
  0x76   : > { %v772_v52 = vadd.f32 %v756_v36, %v692_v60  ;;  %v773_v53 = vadd.f32 %v757_v37, %v693_v61  ;;  %v774_v54 = vadd.f32 %v758_v38, %v694_v62  ;;  %v775_v2 = vadd.f32 %v759_v39, %v695_v63  ;;  %v3479_v63 = vld [vmem:[%s3144_s12 + $0x60] sm:$0xff] }
  0x77   : > { %v776_v3 = vadd.f32 %v760_v40, %v696_v0  ;;  %v777_v4 = vadd.f32 %v761_v41, %v697_v1  ;;  %vm782_vm4 = vcmp.eq.s32.totalorder %v3108_v14, 3  ;;  %vm783_vm5 = vcmp.eq.s32.totalorder %v3111_v15, 3 }
  0x78   : > { %vm784_vm6 = vcmp.eq.s32.totalorder %v3114_v16, 3  ;;  %vm785_vm7 = vcmp.eq.s32.totalorder %v3117_v17, 3  ;;  %v786_v33 = vsel %vm782_vm4, 1, %v2867_v11  ;;  %v787_v55 = vsel %vm783_vm5, 1, %v2867_v11 }
  0x79   : > { %v788_v56 = vsel %vm784_vm6, 1, %v2867_v11  ;;  %v789_v57 = vsel %vm785_vm7, 1, %v2867_v11  ;;  %v793_v58 = vrot.slane %v786_v33, %v3129_v21  ;;  %v797_v59 = vrot.slane %v786_v33, %v3132_v22 }
  0x7a   : > { %v801_v60 = vrot.slane %v787_v55, %v3129_v21  ;;  %v805_v61 = vrot.slane %v787_v55, %v3132_v22  ;;  %v809_v62 = vrot.slane %v788_v56, %v3129_v21  ;;  %v813_v0 = vrot.slane %v788_v56, %v3132_v22 }
  0x7b   : > { %v817_v1 = vrot.slane %v789_v57, %v3129_v21  ;;  %v821_v5 = vrot.slane %v789_v57, %v3132_v22  ;;  %vm3484_vm8 = vcmp.eq.s32.totalorder %v793_v58, 1  ;;  %v778_v24 = vadd.f32 %v762_v42, %v698_v19 }
  0x7c   : > { %v779_v25 = vadd.f32 %v763_v43, %v699_v23  ;;  %vm3497_vm9 = vcmp.eq.s32.totalorder %v797_v59, 1  ;;  %vm3501_vm10 = vcmp.eq.s32.totalorder %v801_v60, 1  ;;  %v780_v10 = vadd.f32 %v764_v44, %v700_v26 }
  0x7d   : > { %v781_v12 = vadd.f32 %v765_v45, %v701_v27  ;;  %vm3505_vm11 = vcmp.eq.s32.totalorder %v805_v61, 1  ;;  %vm3509_vm12 = vcmp.eq.s32.totalorder %v809_v62, 1  ;;  %vm3513_vm13 = vcmp.eq.s32.totalorder %v813_v0, 1 }
  0x7e   : > { %vm3517_vm14 = vcmp.eq.s32.totalorder %v817_v1, 1  ;;  %vm3521_vm15 = vcmp.eq.s32.totalorder %v821_v5, 1  ;;  %v830_v26 = vsel %vm3484_vm8, %v3479_v63, 0.0  ;;  %v831_v27 = vsel %vm3497_vm9, %v3489_v7, 0.0 }
  0x7f   : > { %v832_v31 = vsel %vm3484_vm8, %v3492_v8, 0.0  ;;  %v833_v32 = vsel %vm3497_vm9, %v3495_v9, 0.0  ;;  %v834_v34 = vsel %vm3501_vm10, %v3479_v63, 0.0  ;;  %v835_v35 = vsel %vm3505_vm11, %v3489_v7, 0.0 }
  0x80   : > { %v836_v36 = vsel %vm3501_vm10, %v3492_v8, 0.0  ;;  %v837_v37 = vsel %vm3505_vm11, %v3495_v9, 0.0  ;;  %v838_v38 = vsel %vm3509_vm12, %v3479_v63, 0.0  ;;  %v839_v39 = vsel %vm3513_vm13, %v3489_v7, 0.0 }
  0x81   : > { %v840_v40 = vsel %vm3509_vm12, %v3492_v8, 0.0  ;;  %v841_v41 = vsel %vm3513_vm13, %v3495_v9, 0.0  ;;  %v842_v42 = vsel %vm3517_vm14, %v3479_v63, 0.0  ;;  %v843_v43 = vsel %vm3521_vm15, %v3489_v7, 0.0  ;;  %v3597_v7 = vld [vmem:[%s3144_s12 + $0x88] sm:$0xff] }
  0x82   : > { %v844_v44 = vsel %vm3517_vm14, %v3492_v8, 0.0  ;;  %v845_v45 = vsel %vm3521_vm15, %v3495_v9, 0.0  ;;  %v846_v33 = vadd.f32 %v830_v26, %v766_v46  ;;  %v847_v55 = vadd.f32 %v831_v27, %v767_v47  ;;  %v3600_v8 = vld [vmem:[%s3144_s12 + $0x90] sm:$0xff]  ;;  %v3603_v9 = vld [vmem:[%s3144_s12 + $0x98] sm:$0xff] }
  0x83   : > { %v848_v56 = vadd.f32 %v832_v31, %v768_v48  ;;  %v849_v57 = vadd.f32 %v833_v32, %v769_v49  ;;  %v850_v58 = vadd.f32 %v834_v34, %v770_v50  ;;  %v851_v59 = vadd.f32 %v835_v35, %v771_v51 }
  0x84   : > { %v852_v60 = vadd.f32 %v836_v36, %v772_v52  ;;  %v853_v61 = vadd.f32 %v837_v37, %v773_v53  ;;  %v854_v62 = vadd.f32 %v838_v38, %v774_v54  ;;  %v855_v63 = vadd.f32 %v839_v39, %v775_v2  ;;  %v3587_v2 = vld [vmem:[%s3144_s12 + $0x80] sm:$0xff] }
  0x85   : > { %v856_v0 = vadd.f32 %v840_v40, %v776_v3  ;;  %v857_v1 = vadd.f32 %v841_v41, %v777_v4  ;;  %vm862_vm0 = vcmp.eq.s32.totalorder %v3108_v14, 4  ;;  %vm863_vm1 = vcmp.eq.s32.totalorder %v3111_v15, 4 }
  0x86   : > { %vm864_vm2 = vcmp.eq.s32.totalorder %v3114_v16, 4  ;;  %vm865_vm3 = vcmp.eq.s32.totalorder %v3117_v17, 4  ;;  %v866_v46 = vsel %vm862_vm0, 1, %v2867_v11  ;;  %v867_v47 = vsel %vm863_vm1, 1, %v2867_v11 }
  0x87   : > { %v868_v48 = vsel %vm864_vm2, 1, %v2867_v11  ;;  %v869_v49 = vsel %vm865_vm3, 1, %v2867_v11  ;;  %v873_v50 = vrot.slane %v866_v46, %v3129_v21  ;;  %v877_v51 = vrot.slane %v866_v46, %v3132_v22 }
  0x88   : > { %v881_v52 = vrot.slane %v867_v47, %v3129_v21  ;;  %v885_v53 = vrot.slane %v867_v47, %v3132_v22  ;;  %v889_v54 = vrot.slane %v868_v48, %v3129_v21  ;;  %v893_v3 = vrot.slane %v868_v48, %v3132_v22 }
  0x89   : > { %v897_v4 = vrot.slane %v869_v49, %v3129_v21  ;;  %v901_v5 = vrot.slane %v869_v49, %v3132_v22  ;;  %vm3592_vm4 = vcmp.eq.s32.totalorder %v873_v50, 1  ;;  %v858_v28 = vadd.f32 %v842_v42, %v778_v24 }
  0x8a   : > { %v859_v29 = vadd.f32 %v843_v43, %v779_v25  ;;  %vm3605_vm5 = vcmp.eq.s32.totalorder %v877_v51, 1  ;;  %vm3609_vm6 = vcmp.eq.s32.totalorder %v881_v52, 1  ;;  %v860_v19 = vadd.f32 %v844_v44, %v780_v10 }
  0x8b   : > { %v861_v23 = vadd.f32 %v845_v45, %v781_v12  ;;  %vm3613_vm7 = vcmp.eq.s32.totalorder %v885_v53, 1  ;;  %vm3617_vm8 = vcmp.eq.s32.totalorder %v889_v54, 1  ;;  %vm3621_vm9 = vcmp.eq.s32.totalorder %v893_v3, 1 }
  0x8c   : > { %vm3625_vm10 = vcmp.eq.s32.totalorder %v897_v4, 1  ;;  %vm3629_vm11 = vcmp.eq.s32.totalorder %v901_v5, 1  ;;  %v910_v10 = vsel %vm3592_vm4, %v3587_v2, 0.0  ;;  %v911_v12 = vsel %vm3605_vm5, %v3597_v7, 0.0 }
  0x8d   : > { %v912_v31 = vsel %vm3592_vm4, %v3600_v8, 0.0  ;;  %v913_v32 = vsel %vm3605_vm5, %v3603_v9, 0.0  ;;  %v914_v34 = vsel %vm3609_vm6, %v3587_v2, 0.0  ;;  %v915_v35 = vsel %vm3613_vm7, %v3597_v7, 0.0 }
  0x8e   : > { %v916_v36 = vsel %vm3609_vm6, %v3600_v8, 0.0  ;;  %v917_v37 = vsel %vm3613_vm7, %v3603_v9, 0.0  ;;  %v918_v38 = vsel %vm3617_vm8, %v3587_v2, 0.0  ;;  %v919_v39 = vsel %vm3621_vm9, %v3597_v7, 0.0 }
  0x8f   : > { %v920_v40 = vsel %vm3617_vm8, %v3600_v8, 0.0  ;;  %v921_v41 = vsel %vm3621_vm9, %v3603_v9, 0.0  ;;  %v922_v42 = vsel %vm3625_vm10, %v3587_v2, 0.0  ;;  %v923_v43 = vsel %vm3629_vm11, %v3597_v7, 0.0  ;;  %v3705_v7 = vld [vmem:[%s3144_s12 + $0xa8] sm:$0xff] }
  0x90   : > { %v924_v44 = vsel %vm3625_vm10, %v3600_v8, 0.0  ;;  %v925_v45 = vsel %vm3629_vm11, %v3603_v9, 0.0  ;;  %v926_v46 = vadd.f32 %v910_v10, %v846_v33  ;;  %v927_v47 = vadd.f32 %v911_v12, %v847_v55  ;;  %v3708_v8 = vld [vmem:[%s3144_s12 + $0xb0] sm:$0xff]  ;;  %v3711_v9 = vld [vmem:[%s3144_s12 + $0xb8] sm:$0xff] }
  0x91   : > { %v928_v48 = vadd.f32 %v912_v31, %v848_v56  ;;  %v929_v49 = vadd.f32 %v913_v32, %v849_v57  ;;  %v930_v50 = vadd.f32 %v914_v34, %v850_v58  ;;  %v931_v51 = vadd.f32 %v915_v35, %v851_v59 }
  0x92   : > { %v932_v52 = vadd.f32 %v916_v36, %v852_v60  ;;  %v933_v53 = vadd.f32 %v917_v37, %v853_v61  ;;  %v934_v54 = vadd.f32 %v918_v38, %v854_v62  ;;  %v935_v2 = vadd.f32 %v919_v39, %v855_v63  ;;  %v3695_v63 = vld [vmem:[%s3144_s12 + $0xa0] sm:$0xff] }
  0x93   : > { %v936_v3 = vadd.f32 %v920_v40, %v856_v0  ;;  %v937_v4 = vadd.f32 %v921_v41, %v857_v1  ;;  %vm942_vm12 = vcmp.eq.s32.totalorder %v3108_v14, 5  ;;  %vm943_vm13 = vcmp.eq.s32.totalorder %v3111_v15, 5 }
  0x94   : > { %vm944_vm14 = vcmp.eq.s32.totalorder %v3114_v16, 5  ;;  %vm945_vm15 = vcmp.eq.s32.totalorder %v3117_v17, 5  ;;  %v946_v33 = vsel %vm942_vm12, 1, %v2867_v11  ;;  %v947_v55 = vsel %vm943_vm13, 1, %v2867_v11 }
  0x95   : > { %v948_v56 = vsel %vm944_vm14, 1, %v2867_v11  ;;  %v949_v57 = vsel %vm945_vm15, 1, %v2867_v11  ;;  %v953_v58 = vrot.slane %v946_v33, %v3129_v21  ;;  %v957_v59 = vrot.slane %v946_v33, %v3132_v22 }
  0x96   : > { %v961_v60 = vrot.slane %v947_v55, %v3129_v21  ;;  %v965_v61 = vrot.slane %v947_v55, %v3132_v22  ;;  %v969_v62 = vrot.slane %v948_v56, %v3129_v21  ;;  %v973_v0 = vrot.slane %v948_v56, %v3132_v22 }
  0x97   : > { %v977_v1 = vrot.slane %v949_v57, %v3129_v21  ;;  %v981_v5 = vrot.slane %v949_v57, %v3132_v22  ;;  %vm3700_vm0 = vcmp.eq.s32.totalorder %v953_v58, 1  ;;  %v938_v30 = vadd.f32 %v922_v42, %v858_v28 }
  0x98   : > { %v939_v13 = vadd.f32 %v923_v43, %v859_v29  ;;  %vm3713_vm1 = vcmp.eq.s32.totalorder %v957_v59, 1  ;;  %vm3717_vm2 = vcmp.eq.s32.totalorder %v961_v60, 1  ;;  %v940_v24 = vadd.f32 %v924_v44, %v860_v19 }
  0x99   : > { %v941_v25 = vadd.f32 %v925_v45, %v861_v23  ;;  %vm3721_vm3 = vcmp.eq.s32.totalorder %v965_v61, 1  ;;  %vm3725_vm4 = vcmp.eq.s32.totalorder %v969_v62, 1  ;;  %vm3729_vm5 = vcmp.eq.s32.totalorder %v973_v0, 1 }
  0x9a   : > { %vm3733_vm6 = vcmp.eq.s32.totalorder %v977_v1, 1  ;;  %vm3737_vm7 = vcmp.eq.s32.totalorder %v981_v5, 1  ;;  %v990_v19 = vsel %vm3700_vm0, %v3695_v63, 0.0  ;;  %v991_v23 = vsel %vm3713_vm1, %v3705_v7, 0.0 }
  0x9b   : > { %v992_v31 = vsel %vm3700_vm0, %v3708_v8, 0.0  ;;  %v993_v32 = vsel %vm3713_vm1, %v3711_v9, 0.0  ;;  %v994_v34 = vsel %vm3717_vm2, %v3695_v63, 0.0  ;;  %v995_v35 = vsel %vm3721_vm3, %v3705_v7, 0.0 }
  0x9c   : > { %v996_v36 = vsel %vm3717_vm2, %v3708_v8, 0.0  ;;  %v997_v37 = vsel %vm3721_vm3, %v3711_v9, 0.0  ;;  %v998_v38 = vsel %vm3725_vm4, %v3695_v63, 0.0  ;;  %v999_v39 = vsel %vm3729_vm5, %v3705_v7, 0.0 }
  0x9d   : > { %v1000_v40 = vsel %vm3725_vm4, %v3708_v8, 0.0  ;;  %v1001_v41 = vsel %vm3729_vm5, %v3711_v9, 0.0  ;;  %v1002_v42 = vsel %vm3733_vm6, %v3695_v63, 0.0  ;;  %v1003_v43 = vsel %vm3737_vm7, %v3705_v7, 0.0  ;;  %v3813_v7 = vld [vmem:[%s3144_s12 + $0xc8] sm:$0xff] }
  0x9e   : > { %v1004_v44 = vsel %vm3733_vm6, %v3708_v8, 0.0  ;;  %v1005_v45 = vsel %vm3737_vm7, %v3711_v9, 0.0  ;;  %v1006_v33 = vadd.f32 %v990_v19, %v926_v46  ;;  %v1007_v55 = vadd.f32 %v991_v23, %v927_v47  ;;  %v3816_v8 = vld [vmem:[%s3144_s12 + $0xd0] sm:$0xff]  ;;  %v3819_v9 = vld [vmem:[%s3144_s12 + $0xd8] sm:$0xff] }
  0x9f   : > { %v1008_v56 = vadd.f32 %v992_v31, %v928_v48  ;;  %v1009_v57 = vadd.f32 %v993_v32, %v929_v49  ;;  %v1010_v58 = vadd.f32 %v994_v34, %v930_v50  ;;  %v1011_v59 = vadd.f32 %v995_v35, %v931_v51 }
  0xa0   : > { %v1012_v60 = vadd.f32 %v996_v36, %v932_v52  ;;  %v1013_v61 = vadd.f32 %v997_v37, %v933_v53  ;;  %v1014_v62 = vadd.f32 %v998_v38, %v934_v54  ;;  %v1015_v63 = vadd.f32 %v999_v39, %v935_v2  ;;  %v3803_v2 = vld [vmem:[%s3144_s12 + $0xc0] sm:$0xff] }
  0xa1   : > { %v1016_v0 = vadd.f32 %v1000_v40, %v936_v3  ;;  %v1017_v1 = vadd.f32 %v1001_v41, %v937_v4  ;;  %vm1022_vm8 = vcmp.eq.s32.totalorder %v3108_v14, 6  ;;  %vm1023_vm9 = vcmp.eq.s32.totalorder %v3111_v15, 6 }
  0xa2   : > { %vm1024_vm10 = vcmp.eq.s32.totalorder %v3114_v16, 6  ;;  %vm1025_vm11 = vcmp.eq.s32.totalorder %v3117_v17, 6  ;;  %v1026_v46 = vsel %vm1022_vm8, 1, %v2867_v11  ;;  %v1027_v47 = vsel %vm1023_vm9, 1, %v2867_v11 }
  0xa3   : > { %v1028_v48 = vsel %vm1024_vm10, 1, %v2867_v11  ;;  %v1029_v49 = vsel %vm1025_vm11, 1, %v2867_v11  ;;  %v1033_v50 = vrot.slane %v1026_v46, %v3129_v21  ;;  %v1037_v51 = vrot.slane %v1026_v46, %v3132_v22 }
  0xa4   : > { %v1041_v52 = vrot.slane %v1027_v47, %v3129_v21  ;;  %v1045_v53 = vrot.slane %v1027_v47, %v3132_v22  ;;  %v1049_v54 = vrot.slane %v1028_v48, %v3129_v21  ;;  %v1053_v3 = vrot.slane %v1028_v48, %v3132_v22 }
  0xa5   : > { %v1057_v4 = vrot.slane %v1029_v49, %v3129_v21  ;;  %v1061_v5 = vrot.slane %v1029_v49, %v3132_v22  ;;  %vm3808_vm12 = vcmp.eq.s32.totalorder %v1033_v50, 1  ;;  %v1018_v20 = vadd.f32 %v1002_v42, %v938_v30 }
  0xa6   : > { %v1019_v26 = vadd.f32 %v1003_v43, %v939_v13  ;;  %vm3821_vm13 = vcmp.eq.s32.totalorder %v1037_v51, 1  ;;  %vm3825_vm14 = vcmp.eq.s32.totalorder %v1041_v52, 1  ;;  %v1020_v28 = vadd.f32 %v1004_v44, %v940_v24 }
  0xa7   : > { %v1021_v29 = vadd.f32 %v1005_v45, %v941_v25  ;;  %vm3829_vm15 = vcmp.eq.s32.totalorder %v1045_v53, 1  ;;  %vm3833_vm0 = vcmp.eq.s32.totalorder %v1049_v54, 1  ;;  %vm3837_vm1 = vcmp.eq.s32.totalorder %v1053_v3, 1 }
  0xa8   : > { %vm3841_vm2 = vcmp.eq.s32.totalorder %v1057_v4, 1  ;;  %vm3845_vm3 = vcmp.eq.s32.totalorder %v1061_v5, 1  ;;  %v1070_v24 = vsel %vm3808_vm12, %v3803_v2, 0.0  ;;  %v1071_v25 = vsel %vm3821_vm13, %v3813_v7, 0.0 }
  0xa9   : > { %v1072_v31 = vsel %vm3808_vm12, %v3816_v8, 0.0  ;;  %v1073_v32 = vsel %vm3821_vm13, %v3819_v9, 0.0  ;;  %v1074_v34 = vsel %vm3825_vm14, %v3803_v2, 0.0  ;;  %v1075_v35 = vsel %vm3829_vm15, %v3813_v7, 0.0 }
  0xaa   : > { %v1076_v36 = vsel %vm3825_vm14, %v3816_v8, 0.0  ;;  %v1077_v37 = vsel %vm3829_vm15, %v3819_v9, 0.0  ;;  %v1078_v38 = vsel %vm3833_vm0, %v3803_v2, 0.0  ;;  %v1079_v39 = vsel %vm3837_vm1, %v3813_v7, 0.0 }
  0xab   : > { %v1080_v40 = vsel %vm3833_vm0, %v3816_v8, 0.0  ;;  %v1081_v41 = vsel %vm3837_vm1, %v3819_v9, 0.0  ;;  %v1082_v42 = vsel %vm3841_vm2, %v3803_v2, 0.0  ;;  %v1083_v43 = vsel %vm3845_vm3, %v3813_v7, 0.0  ;;  %v3921_v7 = vld [vmem:[%s3144_s12 + $0xe8] sm:$0xff] }
  0xac   : > { %v1084_v44 = vsel %vm3841_vm2, %v3816_v8, 0.0  ;;  %v1085_v45 = vsel %vm3845_vm3, %v3819_v9, 0.0  ;;  %v1086_v46 = vadd.f32 %v1070_v24, %v1006_v33  ;;  %v1087_v47 = vadd.f32 %v1071_v25, %v1007_v55  ;;  %v3924_v8 = vld [vmem:[%s3144_s12 + $0xf0] sm:$0xff]  ;;  %v3927_v9 = vld [vmem:[%s3144_s12 + $0xf8] sm:$0xff] }
  0xad   : > { %v1088_v48 = vadd.f32 %v1072_v31, %v1008_v56  ;;  %v1089_v49 = vadd.f32 %v1073_v32, %v1009_v57  ;;  %v1090_v50 = vadd.f32 %v1074_v34, %v1010_v58  ;;  %v1091_v51 = vadd.f32 %v1075_v35, %v1011_v59 }
  0xae   : > { %v1092_v52 = vadd.f32 %v1076_v36, %v1012_v60  ;;  %v1093_v53 = vadd.f32 %v1077_v37, %v1013_v61  ;;  %v1094_v54 = vadd.f32 %v1078_v38, %v1014_v62  ;;  %v1095_v2 = vadd.f32 %v1079_v39, %v1015_v63  ;;  %v3911_v63 = vld [vmem:[%s3144_s12 + $0xe0] sm:$0xff] }
  0xaf   : > { %v1096_v3 = vadd.f32 %v1080_v40, %v1016_v0  ;;  %v1097_v4 = vadd.f32 %v1081_v41, %v1017_v1  ;;  %vm1102_vm4 = vcmp.eq.s32.totalorder %v3108_v14, 7  ;;  %vm1103_vm5 = vcmp.eq.s32.totalorder %v3111_v15, 7 }
  0xb0   : > { %vm1104_vm6 = vcmp.eq.s32.totalorder %v3114_v16, 7  ;;  %vm1105_vm7 = vcmp.eq.s32.totalorder %v3117_v17, 7  ;;  %v1106_v33 = vsel %vm1102_vm4, 1, %v2867_v11  ;;  %v1107_v55 = vsel %vm1103_vm5, 1, %v2867_v11 }
  0xb1   : > { %v1108_v56 = vsel %vm1104_vm6, 1, %v2867_v11  ;;  %v1109_v57 = vsel %vm1105_vm7, 1, %v2867_v11  ;;  %v1113_v58 = vrot.slane %v1106_v33, %v3129_v21  ;;  %v1117_v59 = vrot.slane %v1106_v33, %v3132_v22 }
  0xb2   : > { %v1121_v60 = vrot.slane %v1107_v55, %v3129_v21  ;;  %v1125_v61 = vrot.slane %v1107_v55, %v3132_v22  ;;  %v1129_v62 = vrot.slane %v1108_v56, %v3129_v21  ;;  %v1133_v0 = vrot.slane %v1108_v56, %v3132_v22 }
  0xb3   : > { %v1137_v1 = vrot.slane %v1109_v57, %v3129_v21  ;;  %v1141_v5 = vrot.slane %v1109_v57, %v3132_v22  ;;  %vm3916_vm8 = vcmp.eq.s32.totalorder %v1113_v58, 1  ;;  %v1098_v27 = vadd.f32 %v1082_v42, %v1018_v20 }
  0xb4   : > { %v1099_v10 = vadd.f32 %v1083_v43, %v1019_v26  ;;  %vm3929_vm9 = vcmp.eq.s32.totalorder %v1117_v59, 1  ;;  %vm3933_vm10 = vcmp.eq.s32.totalorder %v1121_v60, 1  ;;  %v1100_v30 = vadd.f32 %v1084_v44, %v1020_v28 }
  0xb5   : > { %v1101_v13 = vadd.f32 %v1085_v45, %v1021_v29  ;;  %vm3937_vm11 = vcmp.eq.s32.totalorder %v1125_v61, 1  ;;  %vm3941_vm12 = vcmp.eq.s32.totalorder %v1129_v62, 1  ;;  %vm3945_vm13 = vcmp.eq.s32.totalorder %v1133_v0, 1 }
  0xb6   : > { %vm3949_vm14 = vcmp.eq.s32.totalorder %v1137_v1, 1  ;;  %vm3953_vm15 = vcmp.eq.s32.totalorder %v1141_v5, 1  ;;  %v1150_v28 = vsel %vm3916_vm8, %v3911_v63, 0.0  ;;  %v1151_v29 = vsel %vm3929_vm9, %v3921_v7, 0.0  ;;  %v4035_v5 = vld [vmem:[%s3144_s12 + $0x118] sm:$0xff] }
  0xb7   : > { %v1152_v31 = vsel %vm3916_vm8, %v3924_v8, 0.0  ;;  %v1153_v32 = vsel %vm3929_vm9, %v3927_v9, 0.0  ;;  %v1154_v34 = vsel %vm3933_vm10, %v3911_v63, 0.0  ;;  %v1155_v35 = vsel %vm3937_vm11, %v3921_v7, 0.0 }
  0xb8   : > { %v1156_v36 = vsel %vm3933_vm10, %v3924_v8, 0.0  ;;  %v1157_v37 = vsel %vm3937_vm11, %v3927_v9, 0.0  ;;  %v1158_v38 = vsel %vm3941_vm12, %v3911_v63, 0.0  ;;  %v1159_v39 = vsel %vm3945_vm13, %v3921_v7, 0.0 }
  0xb9   : > { %v1160_v40 = vsel %vm3941_vm12, %v3924_v8, 0.0  ;;  %v1161_v41 = vsel %vm3945_vm13, %v3927_v9, 0.0  ;;  %v1162_v42 = vsel %vm3949_vm14, %v3911_v63, 0.0  ;;  %v1163_v43 = vsel %vm3953_vm15, %v3921_v7, 0.0 }
  0xba   : > { %v1164_v44 = vsel %vm3949_vm14, %v3924_v8, 0.0  ;;  %v1165_v45 = vsel %vm3953_vm15, %v3927_v9, 0.0  ;;  %v1166_v33 = vadd.f32 %v1150_v28, %v1086_v46  ;;  %v1167_v55 = vadd.f32 %v1151_v29, %v1087_v47 }
  0xbb   : > { %v1168_v56 = vadd.f32 %v1152_v31, %v1088_v48  ;;  %v1169_v57 = vadd.f32 %v1153_v32, %v1089_v49  ;;  %v1170_v58 = vadd.f32 %v1154_v34, %v1090_v50  ;;  %v1171_v59 = vadd.f32 %v1155_v35, %v1091_v51  ;;  %v4019_v51 = vld [vmem:[%s3144_s12 + $0x100] sm:$0xff] }
  0xbc   : > { %v1172_v60 = vadd.f32 %v1156_v36, %v1092_v52  ;;  %v1173_v61 = vadd.f32 %v1157_v37, %v1093_v53  ;;  %v1174_v62 = vadd.f32 %v1158_v38, %v1094_v54  ;;  %v1175_v63 = vadd.f32 %v1159_v39, %v1095_v2 }
  0xbd   : > { %v1176_v0 = vadd.f32 %v1160_v40, %v1096_v3  ;;  %v1177_v1 = vadd.f32 %v1161_v41, %v1097_v4  ;;  %vm1182_vm0 = vcmp.eq.s32.totalorder %v3108_v14, 8  ;;  %vm1183_vm1 = vcmp.eq.s32.totalorder %v3111_v15, 8  ;;  %v4029_v3 = vld [vmem:[%s3144_s12 + $0x108] sm:$0xff]  ;;  %v4032_v4 = vld [vmem:[%s3144_s12 + $0x110] sm:$0xff] }
  0xbe   : > { %vm1184_vm2 = vcmp.eq.s32.totalorder %v3114_v16, 8  ;;  %vm1185_vm3 = vcmp.eq.s32.totalorder %v3117_v17, 8  ;;  %v1186_v46 = vsel %vm1182_vm0, 1, %v2867_v11  ;;  %v1187_v47 = vsel %vm1183_vm1, 1, %v2867_v11 }
  0xbf   : > { %v1188_v48 = vsel %vm1184_vm2, 1, %v2867_v11  ;;  %v1189_v49 = vsel %vm1185_vm3, 1, %v2867_v11  ;;  %v1193_v50 = vrot.slane %v1186_v46, %v3129_v21  ;;  %v1197_v14 = vrot.slane %v1186_v46, %v3132_v22 }
  0xc0   : > { %v1201_v15 = vrot.slane %v1187_v47, %v3129_v21  ;;  %v1205_v16 = vrot.slane %v1187_v47, %v3132_v22  ;;  %v1209_v17 = vrot.slane %v1188_v48, %v3129_v21  ;;  %v1213_v52 = vrot.slane %v1188_v48, %v3132_v22 }
  0xc1   : > { %v1217_v53 = vrot.slane %v1189_v49, %v3129_v21  ;;  %v1221_v54 = vrot.slane %v1189_v49, %v3132_v22  ;;  %vm4024_vm4 = vcmp.eq.s32.totalorder %v1193_v50, 1  ;;  %v4037_v6 = vadd.f32 %v1162_v42, %v1098_v27 }
  0xc2   : > { %v4039_v7 = vadd.f32 %v1163_v43, %v1099_v10  ;;  %vm4041_vm5 = vcmp.eq.s32.totalorder %v1197_v14, 1  ;;  %vm4045_vm6 = vcmp.eq.s32.totalorder %v1201_v15, 1  ;;  %v4049_v12 = vadd.f32 %v1164_v44, %v1100_v30 }
  0xc3   : > { %v4051_v19 = vadd.f32 %v1165_v45, %v1101_v13  ;;  %vm4053_vm7 = vcmp.eq.s32.totalorder %v1205_v16, 1  ;;  %vm4057_vm8 = vcmp.eq.s32.totalorder %v1209_v17, 1  ;;  %vm4061_vm9 = vcmp.eq.s32.totalorder %v1213_v52, 1 }
  0xc4   : > { %vm4065_vm10 = vcmp.eq.s32.totalorder %v1217_v53, 1  ;;  %vm4069_vm11 = vcmp.eq.s32.totalorder %v1221_v54, 1  ;;  %v1230_v13 = vsel %vm4024_vm4, %v4019_v51, 0.0  ;;  %v1231_v20 = vsel %vm4041_vm5, %v4029_v3, 0.0 }
  0xc5   : > { %v1232_v26 = vsel %vm4024_vm4, %v4032_v4, 0.0  ;;  %v1233_v25 = vsel %vm4041_vm5, %v4035_v5, 0.0  ;;  %v1234_v28 = vsel %vm4045_vm6, %v4019_v51, 0.0  ;;  %v1235_v29 = vsel %vm4053_vm7, %v4029_v3, 0.0 }
  0xc6   : > { %v1236_v31 = vsel %vm4045_vm6, %v4032_v4, 0.0  ;;  %v1237_v32 = vsel %vm4053_vm7, %v4035_v5, 0.0  ;;  %v1238_v34 = vsel %vm4057_vm8, %v4019_v51, 0.0  ;;  %v1239_v35 = vsel %vm4061_vm9, %v4029_v3, 0.0 }
  0xc7   : > { %v1240_v36 = vsel %vm4057_vm8, %v4032_v4, 0.0  ;;  %v1241_v37 = vsel %vm4061_vm9, %v4035_v5, 0.0  ;;  %v1242_v38 = vsel %vm4065_vm10, %v4019_v51, 0.0  ;;  %v1243_v39 = vsel %vm4069_vm11, %v4029_v3, 0.0  ;;  %v4171_v51 = vld [vmem:[%s3144_s12 + $0x120] sm:$0xff]  ;;  %v4181_v3 = vld [vmem:[%s3144_s12 + $0x128] sm:$0xff] }
  0xc8   : > { %v1244_v40 = vsel %vm4065_vm10, %v4032_v4, 0.0  ;;  %v1245_v41 = vsel %vm4069_vm11, %v4035_v5, 0.0  ;;  %v4121_v42 = vadd.f32 %v1230_v13, %v1166_v33  ;;  %v4123_v43 = vadd.f32 %v1231_v20, %v1167_v55  ;;  %v4184_v4 = vld [vmem:[%s3144_s12 + $0x130] sm:$0xff]  ;;  %v4187_v5 = vld [vmem:[%s3144_s12 + $0x138] sm:$0xff] }
  0xc9   : > { %v4125_v44 = vadd.f32 %v1232_v26, %v1168_v56  ;;  %v4127_v45 = vadd.f32 %v1233_v25, %v1169_v57  ;;  %v4129_v46 = vadd.f32 %v1234_v28, %v1170_v58  ;;  %v4131_v47 = vadd.f32 %v1235_v29, %v1171_v59  ;;  %v4146_v56 = vld [vmem:[%s3105_s15] sm:$0x3]  ;;  %v4150_v57 = vld [vmem:[%s3105_s15 + $0x2] sm:$0x3]  ;;  %v4154_v58 = vld [vmem:[%s3105_s15 + $0x4] sm:$0x3] }
  0xca   : > { %v4133_v48 = vadd.f32 %v1236_v31, %v1172_v60  ;;  %v4135_v49 = vadd.f32 %v1237_v32, %v1173_v61  ;;  %v4137_v50 = vadd.f32 %v1238_v34, %v1174_v62  ;;  %v4139_v33 = vadd.f32 %v1239_v35, %v1175_v63  ;;  %v4158_v59 = vld [vmem:[%s3105_s15 + $0x6] sm:$0x3] }
  0xcb   : > { %v4141_v14 = vadd.f32 %v1240_v36, %v1176_v0  ;;  %v4143_v55 = vadd.f32 %v1241_v37, %v1177_v1  ;;  %vm1262_vm12 = vcmp.eq.s32.totalorder %v4146_v56, 9  ;;  %vm1263_vm13 = vcmp.eq.s32.totalorder %v4150_v57, 9 }
  0xcc   : > { %vm1264_vm14 = vcmp.eq.s32.totalorder %v4154_v58, 9  ;;  %vm1265_vm15 = vcmp.eq.s32.totalorder %v4158_v59, 9  ;;  %v1266_v60 = vsel %vm1262_vm12, 1, %v2867_v11  ;;  %v1267_v61 = vsel %vm1263_vm13, 1, %v2867_v11 }
  0xcd   : > { %v1268_v62 = vsel %vm1264_vm14, 1, %v2867_v11  ;;  %v1269_v63 = vsel %vm1265_vm15, 1, %v2867_v11  ;;  %v1273_v0 = vrot.slane %v1266_v60, %v3129_v21  ;;  %v1277_v1 = vrot.slane %v1266_v60, %v3132_v22 }
  0xce   : > { %v1281_v15 = vrot.slane %v1267_v61, %v3129_v21  ;;  %v1285_v16 = vrot.slane %v1267_v61, %v3132_v22  ;;  %v1289_v17 = vrot.slane %v1268_v62, %v3129_v21  ;;  %v1293_v52 = vrot.slane %v1268_v62, %v3132_v22 }
  0xcf   : > { %v1297_v53 = vrot.slane %v1269_v63, %v3129_v21  ;;  %v1301_v54 = vrot.slane %v1269_v63, %v3132_v22  ;;  %vm4176_vm0 = vcmp.eq.s32.totalorder %v1273_v0, 1  ;;  %v1258_v8 = vadd.f32 %v1242_v38, %v4037_v6 }
  0xd0   : > { %v1259_v9 = vadd.f32 %v1243_v39, %v4039_v7  ;;  %vm4191_vm1 = vcmp.eq.s32.totalorder %v1277_v1, 1  ;;  %vm4195_vm2 = vcmp.eq.s32.totalorder %v1281_v15, 1  ;;  %v1260_v10 = vadd.f32 %v1244_v40, %v4049_v12 }
  0xd1   : > { %v1261_v24 = vadd.f32 %v1245_v41, %v4051_v19  ;;  %vm4201_vm3 = vcmp.eq.s32.totalorder %v1285_v16, 1  ;;  %vm4205_vm4 = vcmp.eq.s32.totalorder %v1289_v17, 1  ;;  %vm4209_vm5 = vcmp.eq.s32.totalorder %v1293_v52, 1 }
  0xd2   : > { %vm4213_vm6 = vcmp.eq.s32.totalorder %v1297_v53, 1  ;;  %vm4217_vm7 = vcmp.eq.s32.totalorder %v1301_v54, 1  ;;  %v1310_v19 = vsel %vm4176_vm0, %v4171_v51, 0.0  ;;  %v1311_v20 = vsel %vm4191_vm1, %v4181_v3, 0.0 }
  0xd3   : > { %v1312_v26 = vsel %vm4176_vm0, %v4184_v4, 0.0  ;;  %v1313_v25 = vsel %vm4191_vm1, %v4187_v5, 0.0  ;;  %v1314_v28 = vsel %vm4195_vm2, %v4171_v51, 0.0  ;;  %v1315_v29 = vsel %vm4201_vm3, %v4181_v3, 0.0 }
  0xd4   : > { %v1316_v31 = vsel %vm4195_vm2, %v4184_v4, 0.0  ;;  %v1317_v32 = vsel %vm4201_vm3, %v4187_v5, 0.0  ;;  %v1318_v34 = vsel %vm4205_vm4, %v4171_v51, 0.0  ;;  %v1319_v35 = vsel %vm4209_vm5, %v4181_v3, 0.0 }
  0xd5   : > { %v1320_v36 = vsel %vm4205_vm4, %v4184_v4, 0.0  ;;  %v1321_v37 = vsel %vm4209_vm5, %v4187_v5, 0.0  ;;  %v1322_v38 = vsel %vm4213_vm6, %v4171_v51, 0.0  ;;  %v1323_v39 = vsel %vm4217_vm7, %v4181_v3, 0.0  ;;  %v4305_v3 = vld [vmem:[%s3144_s12 + $0x148] sm:$0xff] }
  0xd6   : > { %v1324_v40 = vsel %vm4213_vm6, %v4184_v4, 0.0  ;;  %v1325_v41 = vsel %vm4217_vm7, %v4187_v5, 0.0  ;;  %v1326_v60 = vadd.f32 %v1310_v19, %v4121_v42  ;;  %v1327_v61 = vadd.f32 %v1311_v20, %v4123_v43  ;;  %v4308_v4 = vld [vmem:[%s3144_s12 + $0x150] sm:$0xff]  ;;  %v4311_v5 = vld [vmem:[%s3144_s12 + $0x158] sm:$0xff] }
  0xd7   : > { %v1328_v62 = vadd.f32 %v1312_v26, %v4125_v44  ;;  %v1329_v63 = vadd.f32 %v1313_v25, %v4127_v45  ;;  %v1330_v0 = vadd.f32 %v1314_v28, %v4129_v46  ;;  %v1331_v1 = vadd.f32 %v1315_v29, %v4131_v47 }
  0xd8   : > { %v1332_v15 = vadd.f32 %v1316_v31, %v4133_v48  ;;  %v1333_v16 = vadd.f32 %v1317_v32, %v4135_v49  ;;  %v1334_v17 = vadd.f32 %v1318_v34, %v4137_v50  ;;  %v1335_v51 = vadd.f32 %v1319_v35, %v4139_v33 }
  0xd9   : > { %v1336_v42 = vadd.f32 %v1320_v36, %v4141_v14  ;;  %v1337_v43 = vadd.f32 %v1321_v37, %v4143_v55  ;;  %vm1342_vm8 = vcmp.eq.s32.totalorder %v4146_v56, 10  ;;  %vm1343_vm9 = vcmp.eq.s32.totalorder %v4150_v57, 10  ;;  %v4295_v55 = vld [vmem:[%s3144_s12 + $0x140] sm:$0xff] }
  0xda   : > { %vm1344_vm10 = vcmp.eq.s32.totalorder %v4154_v58, 10  ;;  %vm1345_vm11 = vcmp.eq.s32.totalorder %v4158_v59, 10  ;;  %v1346_v44 = vsel %vm1342_vm8, 1, %v2867_v11  ;;  %v1347_v45 = vsel %vm1343_vm9, 1, %v2867_v11 }
  0xdb   : > { %v1348_v46 = vsel %vm1344_vm10, 1, %v2867_v11  ;;  %v1349_v47 = vsel %vm1345_vm11, 1, %v2867_v11  ;;  %v1353_v48 = vrot.slane %v1346_v44, %v3129_v21  ;;  %v1357_v49 = vrot.slane %v1346_v44, %v3132_v22 }
  0xdc   : > { %v1361_v50 = vrot.slane %v1347_v45, %v3129_v21  ;;  %v1365_v33 = vrot.slane %v1347_v45, %v3132_v22  ;;  %v1369_v14 = vrot.slane %v1348_v46, %v3129_v21  ;;  %v1373_v52 = vrot.slane %v1348_v46, %v3132_v22 }
  0xdd   : > { %v1377_v53 = vrot.slane %v1349_v47, %v3129_v21  ;;  %v1381_v54 = vrot.slane %v1349_v47, %v3132_v22  ;;  %vm4300_vm12 = vcmp.eq.s32.totalorder %v1353_v48, 1  ;;  %v1338_v23 = vadd.f32 %v1322_v38, %v1258_v8 }
  0xde   : > { %v1339_v27 = vadd.f32 %v1323_v39, %v1259_v9  ;;  %vm4313_vm13 = vcmp.eq.s32.totalorder %v1357_v49, 1  ;;  %vm4317_vm14 = vcmp.eq.s32.totalorder %v1361_v50, 1  ;;  %v1340_v7 = vadd.f32 %v1324_v40, %v1260_v10 }
  0xdf   : > { %v1341_v13 = vadd.f32 %v1325_v41, %v1261_v24  ;;  %vm4321_vm15 = vcmp.eq.s32.totalorder %v1365_v33, 1  ;;  %vm4325_vm0 = vcmp.eq.s32.totalorder %v1369_v14, 1  ;;  %vm4329_vm1 = vcmp.eq.s32.totalorder %v1373_v52, 1 }
  0xe0   : > { %vm4333_vm2 = vcmp.eq.s32.totalorder %v1377_v53, 1  ;;  %vm4337_vm3 = vcmp.eq.s32.totalorder %v1381_v54, 1  ;;  %v1390_v10 = vsel %vm4300_vm12, %v4295_v55, 0.0  ;;  %v1391_v24 = vsel %vm4313_vm13, %v4305_v3, 0.0 }
  0xe1   : > { %v1392_v26 = vsel %vm4300_vm12, %v4308_v4, 0.0  ;;  %v1393_v25 = vsel %vm4313_vm13, %v4311_v5, 0.0  ;;  %v1394_v28 = vsel %vm4317_vm14, %v4295_v55, 0.0  ;;  %v1395_v29 = vsel %vm4321_vm15, %v4305_v3, 0.0 }
  0xe2   : > { %v1396_v31 = vsel %vm4317_vm14, %v4308_v4, 0.0  ;;  %v1397_v32 = vsel %vm4321_vm15, %v4311_v5, 0.0  ;;  %v1398_v34 = vsel %vm4325_vm0, %v4295_v55, 0.0  ;;  %v1399_v35 = vsel %vm4329_vm1, %v4305_v3, 0.0 }
  0xe3   : > { %v1400_v36 = vsel %vm4325_vm0, %v4308_v4, 0.0  ;;  %v1401_v37 = vsel %vm4329_vm1, %v4311_v5, 0.0  ;;  %v1402_v38 = vsel %vm4333_vm2, %v4295_v55, 0.0  ;;  %v1403_v39 = vsel %vm4337_vm3, %v4305_v3, 0.0  ;;  %v4413_v3 = vld [vmem:[%s3144_s12 + $0x168] sm:$0xff] }
  0xe4   : > { %v1404_v40 = vsel %vm4333_vm2, %v4308_v4, 0.0  ;;  %v1405_v41 = vsel %vm4337_vm3, %v4311_v5, 0.0  ;;  %v1406_v44 = vadd.f32 %v1390_v10, %v1326_v60  ;;  %v1407_v45 = vadd.f32 %v1391_v24, %v1327_v61  ;;  %v4416_v4 = vld [vmem:[%s3144_s12 + $0x170] sm:$0xff]  ;;  %v4419_v5 = vld [vmem:[%s3144_s12 + $0x178] sm:$0xff] }
  0xe5   : > { %v1408_v46 = vadd.f32 %v1392_v26, %v1328_v62  ;;  %v1409_v47 = vadd.f32 %v1393_v25, %v1329_v63  ;;  %v1410_v48 = vadd.f32 %v1394_v28, %v1330_v0  ;;  %v1411_v49 = vadd.f32 %v1395_v29, %v1331_v1 }
  0xe6   : > { %v1412_v50 = vadd.f32 %v1396_v31, %v1332_v15  ;;  %v1413_v33 = vadd.f32 %v1397_v32, %v1333_v16  ;;  %v1414_v14 = vadd.f32 %v1398_v34, %v1334_v17  ;;  %v1415_v55 = vadd.f32 %v1399_v35, %v1335_v51  ;;  %v4403_v51 = vld [vmem:[%s3144_s12 + $0x160] sm:$0xff] }
  0xe7   : > { %v1416_v52 = vadd.f32 %v1400_v36, %v1336_v42  ;;  %v1417_v53 = vadd.f32 %v1401_v37, %v1337_v43  ;;  %vm1422_vm4 = vcmp.eq.s32.totalorder %v4146_v56, 11  ;;  %vm1423_vm5 = vcmp.eq.s32.totalorder %v4150_v57, 11 }
  0xe8   : > { %vm1424_vm6 = vcmp.eq.s32.totalorder %v4154_v58, 11  ;;  %vm1425_vm7 = vcmp.eq.s32.totalorder %v4158_v59, 11  ;;  %v1426_v60 = vsel %vm1422_vm4, 1, %v2867_v11  ;;  %v1427_v61 = vsel %vm1423_vm5, 1, %v2867_v11 }
  0xe9   : > { %v1428_v62 = vsel %vm1424_vm6, 1, %v2867_v11  ;;  %v1429_v63 = vsel %vm1425_vm7, 1, %v2867_v11  ;;  %v1433_v0 = vrot.slane %v1426_v60, %v3129_v21  ;;  %v1437_v1 = vrot.slane %v1426_v60, %v3132_v22 }
  0xea   : > { %v1441_v15 = vrot.slane %v1427_v61, %v3129_v21  ;;  %v1445_v16 = vrot.slane %v1427_v61, %v3132_v22  ;;  %v1449_v17 = vrot.slane %v1428_v62, %v3129_v21  ;;  %v1453_v42 = vrot.slane %v1428_v62, %v3132_v22 }
  0xeb   : > { %v1457_v43 = vrot.slane %v1429_v63, %v3129_v21  ;;  %v1461_v54 = vrot.slane %v1429_v63, %v3132_v22  ;;  %vm4408_vm8 = vcmp.eq.s32.totalorder %v1433_v0, 1  ;;  %v1418_v30 = vadd.f32 %v1402_v38, %v1338_v23 }
  0xec   : > { %v1419_v6 = vadd.f32 %v1403_v39, %v1339_v27  ;;  %vm4421_vm9 = vcmp.eq.s32.totalorder %v1437_v1, 1  ;;  %vm4425_vm10 = vcmp.eq.s32.totalorder %v1441_v15, 1  ;;  %v1420_v8 = vadd.f32 %v1404_v40, %v1340_v7 }
  0xed   : > { %v1421_v9 = vadd.f32 %v1405_v41, %v1341_v13  ;;  %vm4429_vm11 = vcmp.eq.s32.totalorder %v1445_v16, 1  ;;  %vm4433_vm12 = vcmp.eq.s32.totalorder %v1449_v17, 1  ;;  %vm4437_vm13 = vcmp.eq.s32.totalorder %v1453_v42, 1 }
  0xee   : > { %vm4441_vm14 = vcmp.eq.s32.totalorder %v1457_v43, 1  ;;  %vm4445_vm15 = vcmp.eq.s32.totalorder %v1461_v54, 1  ;;  %v1470_v7 = vsel %vm4408_vm8, %v4403_v51, 0.0  ;;  %v1471_v13 = vsel %vm4421_vm9, %v4413_v3, 0.0 }
  0xef   : > { %v1472_v26 = vsel %vm4408_vm8, %v4416_v4, 0.0  ;;  %v1473_v25 = vsel %vm4421_vm9, %v4419_v5, 0.0  ;;  %v1474_v28 = vsel %vm4425_vm10, %v4403_v51, 0.0  ;;  %v1475_v29 = vsel %vm4429_vm11, %v4413_v3, 0.0 }
  0xf0   : > { %v1476_v31 = vsel %vm4425_vm10, %v4416_v4, 0.0  ;;  %v1477_v32 = vsel %vm4429_vm11, %v4419_v5, 0.0  ;;  %v1478_v34 = vsel %vm4433_vm12, %v4403_v51, 0.0  ;;  %v1479_v35 = vsel %vm4437_vm13, %v4413_v3, 0.0 }
  0xf1   : > { %v1480_v36 = vsel %vm4433_vm12, %v4416_v4, 0.0  ;;  %v1481_v37 = vsel %vm4437_vm13, %v4419_v5, 0.0  ;;  %v1482_v38 = vsel %vm4441_vm14, %v4403_v51, 0.0  ;;  %v1483_v39 = vsel %vm4445_vm15, %v4413_v3, 0.0  ;;  %v4521_v3 = vld [vmem:[%s3144_s12 + $0x188] sm:$0xff] }
  0xf2   : > { %v1484_v40 = vsel %vm4441_vm14, %v4416_v4, 0.0  ;;  %v1485_v41 = vsel %vm4445_vm15, %v4419_v5, 0.0  ;;  %v1486_v60 = vadd.f32 %v1470_v7, %v1406_v44  ;;  %v1487_v61 = vadd.f32 %v1471_v13, %v1407_v45  ;;  %v4524_v4 = vld [vmem:[%s3144_s12 + $0x190] sm:$0xff]  ;;  %v4527_v5 = vld [vmem:[%s3144_s12 + $0x198] sm:$0xff] }
  0xf3   : > { %v1488_v62 = vadd.f32 %v1472_v26, %v1408_v46  ;;  %v1489_v63 = vadd.f32 %v1473_v25, %v1409_v47  ;;  %v1490_v0 = vadd.f32 %v1474_v28, %v1410_v48  ;;  %v1491_v1 = vadd.f32 %v1475_v29, %v1411_v49 }
  0xf4   : > { %v1492_v15 = vadd.f32 %v1476_v31, %v1412_v50  ;;  %v1493_v16 = vadd.f32 %v1477_v32, %v1413_v33  ;;  %v1494_v17 = vadd.f32 %v1478_v34, %v1414_v14  ;;  %v1495_v51 = vadd.f32 %v1479_v35, %v1415_v55  ;;  %v4511_v55 = vld [vmem:[%s3144_s12 + $0x180] sm:$0xff] }
  0xf5   : > { %v1496_v42 = vadd.f32 %v1480_v36, %v1416_v52  ;;  %v1497_v43 = vadd.f32 %v1481_v37, %v1417_v53  ;;  %vm1502_vm0 = vcmp.eq.s32.totalorder %v4146_v56, 12  ;;  %vm1503_vm1 = vcmp.eq.s32.totalorder %v4150_v57, 12 }
  0xf6   : > { %vm1504_vm2 = vcmp.eq.s32.totalorder %v4154_v58, 12  ;;  %vm1505_vm3 = vcmp.eq.s32.totalorder %v4158_v59, 12  ;;  %v1506_v44 = vsel %vm1502_vm0, 1, %v2867_v11  ;;  %v1507_v45 = vsel %vm1503_vm1, 1, %v2867_v11 }
  0xf7   : > { %v1508_v46 = vsel %vm1504_vm2, 1, %v2867_v11  ;;  %v1509_v47 = vsel %vm1505_vm3, 1, %v2867_v11  ;;  %v1513_v48 = vrot.slane %v1506_v44, %v3129_v21  ;;  %v1517_v49 = vrot.slane %v1506_v44, %v3132_v22 }
  0xf8   : > { %v1521_v50 = vrot.slane %v1507_v45, %v3129_v21  ;;  %v1525_v33 = vrot.slane %v1507_v45, %v3132_v22  ;;  %v1529_v14 = vrot.slane %v1508_v46, %v3129_v21  ;;  %v1533_v52 = vrot.slane %v1508_v46, %v3132_v22 }
  0xf9   : > { %v1537_v53 = vrot.slane %v1509_v47, %v3129_v21  ;;  %v1541_v54 = vrot.slane %v1509_v47, %v3132_v22  ;;  %vm4516_vm4 = vcmp.eq.s32.totalorder %v1513_v48, 1  ;;  %v1498_v12 = vadd.f32 %v1482_v38, %v1418_v30 }
  0xfa   : > { %v1499_v19 = vadd.f32 %v1483_v39, %v1419_v6  ;;  %vm4529_vm5 = vcmp.eq.s32.totalorder %v1517_v49, 1  ;;  %vm4533_vm6 = vcmp.eq.s32.totalorder %v1521_v50, 1  ;;  %v1500_v23 = vadd.f32 %v1484_v40, %v1420_v8 }
  0xfb   : > { %v1501_v27 = vadd.f32 %v1485_v41, %v1421_v9  ;;  %vm4537_vm7 = vcmp.eq.s32.totalorder %v1525_v33, 1  ;;  %vm4541_vm8 = vcmp.eq.s32.totalorder %v1529_v14, 1  ;;  %vm4545_vm9 = vcmp.eq.s32.totalorder %v1533_v52, 1 }
  0xfc   : > { %vm4549_vm10 = vcmp.eq.s32.totalorder %v1537_v53, 1  ;;  %vm4553_vm11 = vcmp.eq.s32.totalorder %v1541_v54, 1  ;;  %v1550_v8 = vsel %vm4516_vm4, %v4511_v55, 0.0  ;;  %v1551_v9 = vsel %vm4529_vm5, %v4521_v3, 0.0 }
  0xfd   : > { %v1552_v26 = vsel %vm4516_vm4, %v4524_v4, 0.0  ;;  %v1553_v25 = vsel %vm4529_vm5, %v4527_v5, 0.0  ;;  %v1554_v28 = vsel %vm4533_vm6, %v4511_v55, 0.0  ;;  %v1555_v29 = vsel %vm4537_vm7, %v4521_v3, 0.0 }
  0xfe   : > { %v1556_v31 = vsel %vm4533_vm6, %v4524_v4, 0.0  ;;  %v1557_v32 = vsel %vm4537_vm7, %v4527_v5, 0.0  ;;  %v1558_v34 = vsel %vm4541_vm8, %v4511_v55, 0.0  ;;  %v1559_v35 = vsel %vm4545_vm9, %v4521_v3, 0.0 }
  0xff   : > { %v1560_v36 = vsel %vm4541_vm8, %v4524_v4, 0.0  ;;  %v1561_v37 = vsel %vm4545_vm9, %v4527_v5, 0.0  ;;  %v1562_v38 = vsel %vm4549_vm10, %v4511_v55, 0.0  ;;  %v1563_v39 = vsel %vm4553_vm11, %v4521_v3, 0.0  ;;  %v4629_v3 = vld [vmem:[%s3144_s12 + $0x1a8] sm:$0xff] }
 0x100   : > { %v1564_v40 = vsel %vm4549_vm10, %v4524_v4, 0.0  ;;  %v1565_v41 = vsel %vm4553_vm11, %v4527_v5, 0.0  ;;  %v1566_v44 = vadd.f32 %v1550_v8, %v1486_v60  ;;  %v1567_v45 = vadd.f32 %v1551_v9, %v1487_v61  ;;  %v4632_v4 = vld [vmem:[%s3144_s12 + $0x1b0] sm:$0xff]  ;;  %v4635_v5 = vld [vmem:[%s3144_s12 + $0x1b8] sm:$0xff] }
 0x101   : > { %v1568_v46 = vadd.f32 %v1552_v26, %v1488_v62  ;;  %v1569_v47 = vadd.f32 %v1553_v25, %v1489_v63  ;;  %v1570_v48 = vadd.f32 %v1554_v28, %v1490_v0  ;;  %v1571_v49 = vadd.f32 %v1555_v29, %v1491_v1 }
 0x102   : > { %v1572_v50 = vadd.f32 %v1556_v31, %v1492_v15  ;;  %v1573_v33 = vadd.f32 %v1557_v32, %v1493_v16  ;;  %v1574_v14 = vadd.f32 %v1558_v34, %v1494_v17  ;;  %v1575_v55 = vadd.f32 %v1559_v35, %v1495_v51  ;;  %v4619_v51 = vld [vmem:[%s3144_s12 + $0x1a0] sm:$0xff] }
 0x103   : > { %v1576_v52 = vadd.f32 %v1560_v36, %v1496_v42  ;;  %v1577_v53 = vadd.f32 %v1561_v37, %v1497_v43  ;;  %vm1582_vm12 = vcmp.eq.s32.totalorder %v4146_v56, 13  ;;  %vm1583_vm13 = vcmp.eq.s32.totalorder %v4150_v57, 13 }
 0x104   : > { %vm1584_vm14 = vcmp.eq.s32.totalorder %v4154_v58, 13  ;;  %vm1585_vm15 = vcmp.eq.s32.totalorder %v4158_v59, 13  ;;  %v1586_v60 = vsel %vm1582_vm12, 1, %v2867_v11  ;;  %v1587_v61 = vsel %vm1583_vm13, 1, %v2867_v11 }
 0x105   : > { %v1588_v62 = vsel %vm1584_vm14, 1, %v2867_v11  ;;  %v1589_v63 = vsel %vm1585_vm15, 1, %v2867_v11  ;;  %v1593_v0 = vrot.slane %v1586_v60, %v3129_v21  ;;  %v1597_v1 = vrot.slane %v1586_v60, %v3132_v22 }
 0x106   : > { %v1601_v15 = vrot.slane %v1587_v61, %v3129_v21  ;;  %v1605_v16 = vrot.slane %v1587_v61, %v3132_v22  ;;  %v1609_v17 = vrot.slane %v1588_v62, %v3129_v21  ;;  %v1613_v42 = vrot.slane %v1588_v62, %v3132_v22 }
 0x107   : > { %v1617_v43 = vrot.slane %v1589_v63, %v3129_v21  ;;  %v1621_v54 = vrot.slane %v1589_v63, %v3132_v22  ;;  %vm4624_vm0 = vcmp.eq.s32.totalorder %v1593_v0, 1  ;;  %v1578_v20 = vadd.f32 %v1562_v38, %v1498_v12 }
 0x108   : > { %v1579_v10 = vadd.f32 %v1563_v39, %v1499_v19  ;;  %vm4637_vm1 = vcmp.eq.s32.totalorder %v1597_v1, 1  ;;  %vm4641_vm2 = vcmp.eq.s32.totalorder %v1601_v15, 1  ;;  %v1580_v30 = vadd.f32 %v1564_v40, %v1500_v23 }
 0x109   : > { %v1581_v6 = vadd.f32 %v1565_v41, %v1501_v27  ;;  %vm4645_vm3 = vcmp.eq.s32.totalorder %v1605_v16, 1  ;;  %vm4649_vm4 = vcmp.eq.s32.totalorder %v1609_v17, 1  ;;  %vm4653_vm5 = vcmp.eq.s32.totalorder %v1613_v42, 1 }
 0x10a   : > { %vm4657_vm6 = vcmp.eq.s32.totalorder %v1617_v43, 1  ;;  %vm4661_vm7 = vcmp.eq.s32.totalorder %v1621_v54, 1  ;;  %v1630_v23 = vsel %vm4624_vm0, %v4619_v51, 0.0  ;;  %v1631_v27 = vsel %vm4637_vm1, %v4629_v3, 0.0 }
 0x10b   : > { %v1632_v26 = vsel %vm4624_vm0, %v4632_v4, 0.0  ;;  %v1633_v25 = vsel %vm4637_vm1, %v4635_v5, 0.0  ;;  %v1634_v28 = vsel %vm4641_vm2, %v4619_v51, 0.0  ;;  %v1635_v29 = vsel %vm4645_vm3, %v4629_v3, 0.0 }
 0x10c   : > { %v1636_v31 = vsel %vm4641_vm2, %v4632_v4, 0.0  ;;  %v1637_v32 = vsel %vm4645_vm3, %v4635_v5, 0.0  ;;  %v1638_v34 = vsel %vm4649_vm4, %v4619_v51, 0.0  ;;  %v1639_v35 = vsel %vm4653_vm5, %v4629_v3, 0.0 }
 0x10d   : > { %v1640_v36 = vsel %vm4649_vm4, %v4632_v4, 0.0  ;;  %v1641_v37 = vsel %vm4653_vm5, %v4635_v5, 0.0  ;;  %v1642_v38 = vsel %vm4657_vm6, %v4619_v51, 0.0  ;;  %v1643_v39 = vsel %vm4661_vm7, %v4629_v3, 0.0  ;;  %v4737_v3 = vld [vmem:[%s3144_s12 + $0x1c8] sm:$0xff] }
 0x10e   : > { %v1644_v40 = vsel %vm4657_vm6, %v4632_v4, 0.0  ;;  %v1645_v41 = vsel %vm4661_vm7, %v4635_v5, 0.0  ;;  %v1646_v60 = vadd.f32 %v1630_v23, %v1566_v44  ;;  %v1647_v61 = vadd.f32 %v1631_v27, %v1567_v45  ;;  %v4740_v4 = vld [vmem:[%s3144_s12 + $0x1d0] sm:$0xff]  ;;  %v4743_v5 = vld [vmem:[%s3144_s12 + $0x1d8] sm:$0xff] }
 0x10f   : > { %v1648_v62 = vadd.f32 %v1632_v26, %v1568_v46  ;;  %v1649_v63 = vadd.f32 %v1633_v25, %v1569_v47  ;;  %v1650_v0 = vadd.f32 %v1634_v28, %v1570_v48  ;;  %v1651_v1 = vadd.f32 %v1635_v29, %v1571_v49 }
 0x110   : > { %v1652_v15 = vadd.f32 %v1636_v31, %v1572_v50  ;;  %v1653_v16 = vadd.f32 %v1637_v32, %v1573_v33  ;;  %v1654_v17 = vadd.f32 %v1638_v34, %v1574_v14  ;;  %v1655_v51 = vadd.f32 %v1639_v35, %v1575_v55  ;;  %v4727_v55 = vld [vmem:[%s3144_s12 + $0x1c0] sm:$0xff] }
 0x111   : > { %v1656_v42 = vadd.f32 %v1640_v36, %v1576_v52  ;;  %v1657_v43 = vadd.f32 %v1641_v37, %v1577_v53  ;;  %vm1662_vm8 = vcmp.eq.s32.totalorder %v4146_v56, 14  ;;  %vm1663_vm9 = vcmp.eq.s32.totalorder %v4150_v57, 14 }
 0x112   : > { %vm1664_vm10 = vcmp.eq.s32.totalorder %v4154_v58, 14  ;;  %vm1665_vm11 = vcmp.eq.s32.totalorder %v4158_v59, 14  ;;  %v1666_v44 = vsel %vm1662_vm8, 1, %v2867_v11  ;;  %v1667_v45 = vsel %vm1663_vm9, 1, %v2867_v11 }
 0x113   : > { %v1668_v46 = vsel %vm1664_vm10, 1, %v2867_v11  ;;  %v1669_v47 = vsel %vm1665_vm11, 1, %v2867_v11  ;;  %v1673_v48 = vrot.slane %v1666_v44, %v3129_v21  ;;  %v1677_v49 = vrot.slane %v1666_v44, %v3132_v22 }
 0x114   : > { %v1681_v50 = vrot.slane %v1667_v45, %v3129_v21  ;;  %v1685_v33 = vrot.slane %v1667_v45, %v3132_v22  ;;  %v1689_v14 = vrot.slane %v1668_v46, %v3129_v21  ;;  %v1693_v52 = vrot.slane %v1668_v46, %v3132_v22 }
 0x115   : > { %v1697_v53 = vrot.slane %v1669_v47, %v3129_v21  ;;  %v1701_v54 = vrot.slane %v1669_v47, %v3132_v22  ;;  %vm4732_vm12 = vcmp.eq.s32.totalorder %v1673_v48, 1  ;;  %v1658_v24 = vadd.f32 %v1642_v38, %v1578_v20 }
 0x116   : > { %v1659_v7 = vadd.f32 %v1643_v39, %v1579_v10  ;;  %vm4745_vm13 = vcmp.eq.s32.totalorder %v1677_v49, 1  ;;  %vm4749_vm14 = vcmp.eq.s32.totalorder %v1681_v50, 1  ;;  %v1660_v12 = vadd.f32 %v1644_v40, %v1580_v30 }
 0x117   : > { %v1661_v19 = vadd.f32 %v1645_v41, %v1581_v6  ;;  %vm4753_vm15 = vcmp.eq.s32.totalorder %v1685_v33, 1  ;;  %vm4757_vm0 = vcmp.eq.s32.totalorder %v1689_v14, 1  ;;  %vm4761_vm1 = vcmp.eq.s32.totalorder %v1693_v52, 1 }
 0x118   : > { %vm4765_vm2 = vcmp.eq.s32.totalorder %v1697_v53, 1  ;;  %vm4769_vm3 = vcmp.eq.s32.totalorder %v1701_v54, 1  ;;  %v1710_v30 = vsel %vm4732_vm12, %v4727_v55, 0.0  ;;  %v1711_v6 = vsel %vm4745_vm13, %v4737_v3, 0.0 }
 0x119   : > { %v1712_v26 = vsel %vm4732_vm12, %v4740_v4, 0.0  ;;  %v1713_v25 = vsel %vm4745_vm13, %v4743_v5, 0.0  ;;  %v1714_v28 = vsel %vm4749_vm14, %v4727_v55, 0.0  ;;  %v1715_v29 = vsel %vm4753_vm15, %v4737_v3, 0.0 }
 0x11a   : > { %v1716_v31 = vsel %vm4749_vm14, %v4740_v4, 0.0  ;;  %v1717_v32 = vsel %vm4753_vm15, %v4743_v5, 0.0  ;;  %v1718_v34 = vsel %vm4757_vm0, %v4727_v55, 0.0  ;;  %v1719_v35 = vsel %vm4761_vm1, %v4737_v3, 0.0 }
 0x11b   : > { %v1720_v36 = vsel %vm4757_vm0, %v4740_v4, 0.0  ;;  %v1721_v37 = vsel %vm4761_vm1, %v4743_v5, 0.0  ;;  %v1722_v38 = vsel %vm4765_vm2, %v4727_v55, 0.0  ;;  %v1723_v39 = vsel %vm4769_vm3, %v4737_v3, 0.0  ;;  %v548_v3 = vld [vmem:[%s3144_s12 + $0x1f0] sm:$0xff] }
 0x11c   : > { %v1724_v40 = vsel %vm4765_vm2, %v4740_v4, 0.0  ;;  %v1725_v41 = vsel %vm4769_vm3, %v4743_v5, 0.0  ;;  %v1726_v44 = vadd.f32 %v1710_v30, %v1646_v60  ;;  %v1727_v45 = vadd.f32 %v1711_v6, %v1647_v61  ;;  %v549_v4 = vld [vmem:[%s3144_s12 + $0x1f8] sm:$0xff] }
 0x11d   : > { %v1728_v46 = vadd.f32 %v1712_v26, %v1648_v62  ;;  %v1729_v47 = vadd.f32 %v1713_v25, %v1649_v63  ;;  %v1730_v48 = vadd.f32 %v1714_v28, %v1650_v0  ;;  %v1731_v49 = vadd.f32 %v1715_v29, %v1651_v1 }
 0x11e   : > { %v1732_v50 = vadd.f32 %v1716_v31, %v1652_v15  ;;  %v1733_v33 = vadd.f32 %v1717_v32, %v1653_v16  ;;  %v1734_v14 = vadd.f32 %v1718_v34, %v1654_v17  ;;  %v1735_v55 = vadd.f32 %v1719_v35, %v1655_v51  ;;  %v546_v51 = vld [vmem:[%s3144_s12 + $0x1e0] sm:$0xff] }
 0x11f   : > { %v1736_v52 = vadd.f32 %v1720_v36, %v1656_v42  ;;  %v1737_v53 = vadd.f32 %v1721_v37, %v1657_v43  ;;  %vm1742_vm4 = vcmp.eq.s32.totalorder %v4146_v56, 15  ;;  %vm1743_vm5 = vcmp.eq.s32.totalorder %v4150_v57, 15 }
 0x120   : > { %vm1744_vm6 = vcmp.eq.s32.totalorder %v4154_v58, 15  ;;  %vm1745_vm7 = vcmp.eq.s32.totalorder %v4158_v59, 15  ;;  %v1746_v60 = vsel %vm1742_vm4, 1, %v2867_v11  ;;  %v1747_v61 = vsel %vm1743_vm5, 1, %v2867_v11 }
 0x121   : > { %v1748_v62 = vsel %vm1744_vm6, 1, %v2867_v11  ;;  %v1749_v63 = vsel %vm1745_vm7, 1, %v2867_v11  ;;  %v1753_v0 = vrot.slane %v1746_v60, %v3129_v21  ;;  %v1757_v1 = vrot.slane %v1746_v60, %v3132_v22  ;;  %v547_v11 = vld [vmem:[%s3144_s12 + $0x1e8] sm:$0xff] }
 0x122   : > { %v1761_v15 = vrot.slane %v1747_v61, %v3129_v21  ;;  %v1765_v16 = vrot.slane %v1747_v61, %v3132_v22  ;;  %v1769_v17 = vrot.slane %v1748_v62, %v3129_v21  ;;  %v1773_v42 = vrot.slane %v1748_v62, %v3132_v22 }
 0x123   : > { %v1777_v43 = vrot.slane %v1749_v63, %v3129_v21  ;;  %v1781_v54 = vrot.slane %v1749_v63, %v3132_v22  ;;  %vm4838_vm8 = vcmp.eq.s32.totalorder %v1753_v0, 1  ;;  %v1738_v5 = vadd.f32 %v1722_v38, %v1658_v24 }
 0x124   : > { %v1739_v13 = vadd.f32 %v1723_v39, %v1659_v7  ;;  %vm4845_vm9 = vcmp.eq.s32.totalorder %v1757_v1, 1  ;;  %vm4849_vm10 = vcmp.eq.s32.totalorder %v1761_v15, 1  ;;  %v1740_v23 = vadd.f32 %v1724_v40, %v1660_v12 }
 0x125   : > { %v1741_v20 = vadd.f32 %v1725_v41, %v1661_v19  ;;  %vm4853_vm11 = vcmp.eq.s32.totalorder %v1765_v16, 1  ;;  %vm4857_vm12 = vcmp.eq.s32.totalorder %v1769_v17, 1  ;;  %vm4861_vm13 = vcmp.eq.s32.totalorder %v1773_v42, 1 }
 0x126   : > { %vm4865_vm14 = vcmp.eq.s32.totalorder %v1777_v43, 1  ;;  %vm4869_vm15 = vcmp.eq.s32.totalorder %v1781_v54, 1  ;;  %v1790_v12 = vsel %vm4838_vm8, %v546_v51, 0.0  ;;  %v1791_v19 = vsel %vm4845_vm9, %v547_v11, 0.0 }
 0x127   : > { %v1792_v6 = vsel %vm4838_vm8, %v548_v3, 0.0  ;;  %v1793_v26 = vsel %vm4845_vm9, %v549_v4, 0.0  ;;  %v1794_v25 = vsel %vm4849_vm10, %v546_v51, 0.0  ;;  %v1795_v28 = vsel %vm4853_vm11, %v547_v11, 0.0 }
 0x128   : > { %v1796_v29 = vsel %vm4849_vm10, %v548_v3, 0.0  ;;  %v1797_v31 = vsel %vm4853_vm11, %v549_v4, 0.0  ;;  %v1798_v32 = vsel %vm4857_vm12, %v546_v51, 0.0  ;;  %v1799_v34 = vsel %vm4861_vm13, %v547_v11, 0.0 }
 0x129   : > { %v1800_v35 = vsel %vm4857_vm12, %v548_v3, 0.0  ;;  %v1801_v36 = vsel %vm4861_vm13, %v549_v4, 0.0  ;;  %v1802_v37 = vsel %vm4865_vm14, %v546_v51, 0.0  ;;  %v1803_v38 = vsel %vm4869_vm15, %v547_v11, 0.0 }
 0x12a   : > { %v1804_v39 = vsel %vm4865_vm14, %v548_v3, 0.0  ;;  %v1805_v40 = vsel %vm4869_vm15, %v549_v4, 0.0  ;;  %v4905_v41 = vadd.f32 %v1790_v12, %v1726_v44  ;;  %v4907_v60 = vadd.f32 %v1791_v19, %v1727_v45 }
 0x12b   : > { %v4909_v61 = vadd.f32 %v1792_v6, %v1728_v46  ;;  %v4911_v62 = vadd.f32 %v1793_v26, %v1729_v47  ;;  %v4913_v63 = vadd.f32 %v1794_v25, %v1730_v48  ;;  %v4915_v0 = vadd.f32 %v1795_v28, %v1731_v49 }
 0x12c   : > { %v4917_v1 = vadd.f32 %v1796_v29, %v1732_v50  ;;  %v4919_v15 = vadd.f32 %v1797_v31, %v1733_v33  ;;  %v4921_v16 = vadd.f32 %v1798_v32, %v1734_v14  ;;  %v4923_v17 = vadd.f32 %v1799_v34, %v1735_v55 }
 0x12d   : > { %v4925_v44 = vadd.f32 %v1800_v35, %v1736_v52  ;;  %v4927_v45 = vadd.f32 %v1801_v36, %v1737_v53  ;;  %v4930_v46 = vadd.s32 8, %v3120_v18  ;;  %v4932_v47 = vadd.f32 %v1802_v37, %v1738_v5 }
 0x12e   : > { %v4934_v48 = vadd.f32 %v1803_v38, %v1739_v13  ;;  %v1828_v49 = vrot.slane %v4146_v56, %v3129_v21  ;;  %v1832_v50 = vrot.slane %v4146_v56, %v3132_v22  ;;  %v4940_v33 = vadd.f32 %v1804_v39, %v1740_v23 }
 0x12f   : > { %5923 = vst [vmem:[#allocation8_spill] sm:$0xff] %v4925_v44  ;;  %5924 = vst [vmem:[#allocation9_spill] sm:$0xff] %v4927_v45  ;;  %v4942_v14 = vadd.f32 %v1805_v40, %v1741_v20  ;;  %v4946_v55 = vrot.slane %v4150_v57, %v3129_v21  ;;  %v4950_v52 = vrot.slane %v4150_v57, %v3132_v22 }
 0x130   : > { %5925 = vst [vmem:[#allocation10_spill] sm:$0xff] %v4932_v47  ;;  %5926 = vst [vmem:[#allocation11_spill] sm:$0xff] %v4934_v48  ;;  %vm1833_vm0 = vcmp.eq.s32.totalorder %v3120_v18, %v1828_v49  ;;  %vm1834_vm1 = vcmp.eq.s32.totalorder %v3120_v18, %v1832_v50  ;;  %vm1835_vm2 = vcmp.eq.s32.totalorder %v4930_v46, %v1828_v49 }
 0x131   : > { %5927 = vst [vmem:[#allocation12_spill] sm:$0xff] %v4940_v33  ;;  %5928 = vst [vmem:[#allocation13_spill] sm:$0xff] %v4942_v14  ;;  %vm1836_vm3 = vcmp.eq.s32.totalorder %v4930_v46, %v1832_v50  ;;  %v1845_v56 = vsel %vm1833_vm0, %v4905_v41, 0.0  ;;  %v1846_v53 = vsel %vm1834_vm1, %v4907_v60, 0.0  ;;  %v1847_v57 = vsel %vm1835_vm2, %v4909_v61, 0.0 }
 0x132   : > { %v1848_v51 = vsel %vm1836_vm3, %v4911_v62, 0.0  ;;  %v1849_v42 = vsel %vm1833_vm0, %v4913_v63, 0.0  ;;  %v1850_v43 = vsel %vm1834_vm1, %v4915_v0, 0.0  ;;  %v1851_v54 = vsel %vm1835_vm2, %v4917_v1, 0.0 }
 0x133   : > { %v1852_v2 = vsel %vm1836_vm3, %v4919_v15, 0.0  ;;  %v1853_v11 = vsel %vm1833_vm0, %v4921_v16, 0.0  ;;  %v1854_v3 = vsel %vm1834_vm1, %v4923_v17, 0.0  ;;  %v1855_v4 = vsel %vm1835_vm2, %v4925_v44, 0.0 }
 0x134   : > { %v1856_v5 = vsel %vm1836_vm3, %v4927_v45, 0.0  ;;  %v1857_v13 = vsel %vm1833_vm0, %v4932_v47, 0.0  ;;  %v1858_v8 = vsel %vm1834_vm1, %v4934_v48, 0.0  ;;  %v1859_v9 = vsel %vm1835_vm2, %v4940_v33, 0.0 }
 0x135   : > { %v1860_v23 = vsel %vm1836_vm3, %v4942_v14, 0.0  ;;  %v1861_v20 = vadd.f32 %v1847_v57, %v1845_v56  ;;  %v1868_v10 = vadd.f32 %v1848_v51, %v1846_v53  ;;  %v1875_v27 = vadd.f32 %v1851_v54, %v1849_v42  ;;  %v5004_v56 = vpop.permute.xlu0 %1919 }
 0x136   : > { %v1882_v24 = vadd.f32 %v1852_v2, %v1850_v43  ;;  %v1889_v7 = vadd.f32 %v1855_v4, %v1853_v11  ;;  %v1896_v30 = vadd.f32 %v1856_v5, %v1854_v3  ;;  %v1903_v12 = vadd.f32 %v1859_v9, %v1857_v13 }
 0x137   : > { %v1910_v19 = vadd.f32 %v1860_v23, %v1858_v8  ;;  %v1862_v6 = vrot.slane %v1861_v20, 4  ;;  %v1869_v26 = vrot.slane %v1868_v10, 4  ;;  %v1876_v25 = vrot.slane %v1875_v27, 4 }
 0x138   : > { %v1883_v28 = vrot.slane %v1882_v24, 4  ;;  %v1890_v29 = vrot.slane %v1889_v7, 4  ;;  %v1897_v31 = vrot.slane %v1896_v30, 4  ;;  %v1904_v32 = vrot.slane %v1903_v12, 4 }
 0x139   : > { %v1911_v34 = vrot.slane %v1910_v19, 4  ;;  %v1863_v35 = vadd.f32 %v1862_v6, %v1861_v20  ;;  %v1870_v36 = vadd.f32 %v1869_v26, %v1868_v10  ;;  %v1877_v37 = vadd.f32 %v1876_v25, %v1875_v27  ;;  %v5006_v26 = vpop.permute.xlu0 %1924 }
 0x13a   : > { %v1884_v38 = vadd.f32 %v1883_v28, %v1882_v24  ;;  %v1891_v39 = vadd.f32 %v1890_v29, %v1889_v7  ;;  %v1898_v40 = vadd.f32 %v1897_v31, %v1896_v30  ;;  %v1905_v49 = vadd.f32 %v1904_v32, %v1903_v12 }
 0x13b   : > { %v1912_v50 = vadd.f32 %v1911_v34, %v1910_v19  ;;  %v1864_v53 = vrot.slane %v1863_v35, 2  ;;  %v1871_v57 = vrot.slane %v1870_v36, 2  ;;  %v1878_v51 = vrot.slane %v1877_v37, 2 }
 0x13c   : > { %v1885_v42 = vrot.slane %v1884_v38, 2  ;;  %v1892_v43 = vrot.slane %v1891_v39, 2  ;;  %v1899_v54 = vrot.slane %v1898_v40, 2  ;;  %v1906_v2 = vrot.slane %v1905_v49, 2 }
 0x13d   : > { %v1913_v11 = vrot.slane %v1912_v50, 2  ;;  %v1865_v3 = vadd.f32 %v1864_v53, %v1863_v35  ;;  %v1872_v4 = vadd.f32 %v1871_v57, %v1870_v36  ;;  %v1879_v5 = vadd.f32 %v1878_v51, %v1877_v37 }
 0x13e   : > { %v1886_v13 = vadd.f32 %v1885_v42, %v1884_v38  ;;  %v1893_v8 = vadd.f32 %v1892_v43, %v1891_v39  ;;  %v1900_v9 = vadd.f32 %v1899_v54, %v1898_v40  ;;  %v1907_v23 = vadd.f32 %v1906_v2, %v1905_v49 }
 0x13f   : > { %v1914_v20 = vadd.f32 %v1913_v11, %v1912_v50  ;;  %v1866_v10 = vrot.slane %v1865_v3, 1  ;;  %v1873_v27 = vrot.slane %v1872_v4, 1  ;;  %v1880_v24 = vrot.slane %v1879_v5, 1 }
 0x140   : > { %v1887_v7 = vrot.slane %v1886_v13, 1  ;;  %v1894_v30 = vrot.slane %v1893_v8, 1  ;;  %v1901_v12 = vrot.slane %v1900_v9, 1  ;;  %v1908_v19 = vrot.slane %v1907_v23, 1 }
 0x141   : > { %v1915_v6 = vrot.slane %v1914_v20, 1  ;;  %v1867_v25 = vadd.f32 %v1866_v10, %v1865_v3  ;;  %v1874_v28 = vadd.f32 %v1873_v27, %v1872_v4  ;;  %v1881_v29 = vadd.f32 %v1880_v24, %v1879_v5 }
 0x142   : > { %v1888_v31 = vadd.f32 %v1887_v7, %v1886_v13  ;;  %v5010_v32 = vrot.slane %v4154_v58, %v3129_v21  ;;  %v5014_v34 = vrot.slane %v4154_v58, %v3132_v22  ;;  %v5018_v35 = vrot.slane %v4158_v59, %v3129_v21 }
 0x143   : > { %v5022_v36 = vrot.slane %v4158_v59, %v3132_v22  ;;  %v5024_v37 = vadd.f32 %v1894_v30, %v1893_v8  ;;  %v5026_v38 = vadd.f32 %v1901_v12, %v1900_v9  ;;  %v5028_v39 = vadd.f32 %v1908_v19, %v1907_v23 }
 0x144   : > { %5929 = vst [vmem:[#allocation14_spill] sm:$0xff] %v5018_v35  ;;  %v5030_v40 = vadd.f32 %v1915_v6, %v1914_v20  ;;  %v5033_v49 = vmax.f32 %v1867_v25, %v5004_v56  ;;  %v5036_v58 = vmax.f32 %v1874_v28, %v5004_v56  ;;  %v5039_v50 = vmax.f32 %v1881_v29, %v5006_v26 }
 0x145   : > { %5930 = vst [vmem:[#allocation15_spill] sm:$0xff] %v5022_v36  ;;  %v5042_v59 = vmax.f32 %v1888_v31, %v5006_v26  ;;  %vm1953_vm4 = vcmp.eq.s32.totalorder %v3120_v18, %v4946_v55  ;;  %vm1954_vm5 = vcmp.eq.s32.totalorder %v3120_v18, %v4950_v52  ;;  %vm1955_vm6 = vcmp.eq.s32.totalorder %v4930_v46, %v4946_v55 }
 0x146   : > { %5931 = vst [vmem:[#allocation16_spill] sm:$0xff] %v5033_v49  ;;  %5932 = vst [vmem:[#allocation17_spill] sm:$0xff] %v5036_v58  ;;  %vm1956_vm7 = vcmp.eq.s32.totalorder %v4930_v46, %v4950_v52  ;;  %v1965_v53 = vsel %vm1953_vm4, %v4905_v41, 0.0  ;;  %v1966_v57 = vsel %vm1954_vm5, %v4907_v60, 0.0  ;;  %v1967_v51 = vsel %vm1955_vm6, %v4909_v61, 0.0 }
 0x147   : > { %5933 = vst [vmem:[#allocation18_spill] sm:$0xff] %v5039_v50  ;;  %5934 = vst [vmem:[#allocation19_spill] sm:$0xff] %v5042_v59  ;;  %v1968_v42 = vsel %vm1956_vm7, %v4911_v62, 0.0  ;;  %v1969_v43 = vsel %vm1953_vm4, %v4913_v63, 0.0  ;;  %v1970_v54 = vsel %vm1954_vm5, %v4915_v0, 0.0  ;;  %v1971_v2 = vsel %vm1955_vm6, %v4917_v1, 0.0 }
 0x148   : > { %v1972_v11 = vsel %vm1956_vm7, %v4919_v15, 0.0  ;;  %v1973_v3 = vsel %vm1953_vm4, %v4921_v16, 0.0  ;;  %v1974_v4 = vsel %vm1954_vm5, %v4923_v17, 0.0  ;;  %v1975_v5 = vsel %vm1955_vm6, %v4925_v44, 0.0 }
 0x149   : > { %v1976_v13 = vsel %vm1956_vm7, %v4927_v45, 0.0  ;;  %v1977_v8 = vsel %vm1953_vm4, %v4932_v47, 0.0  ;;  %v1978_v9 = vsel %vm1954_vm5, %v4934_v48, 0.0  ;;  %v1979_v23 = vsel %vm1955_vm6, %v4940_v33, 0.0 }
 0x14a   : > { %v1980_v20 = vsel %vm1956_vm7, %v4942_v14, 0.0  ;;  %v1981_v10 = vadd.f32 %v1967_v51, %v1965_v53  ;;  %v1988_v27 = vadd.f32 %v1968_v42, %v1966_v57  ;;  %v1995_v24 = vadd.f32 %v1971_v2, %v1969_v43  ;;  %v5116_v43 = vpop.permute.xlu1 %1929 }
 0x14b   : > { %v2002_v7 = vadd.f32 %v1972_v11, %v1970_v54  ;;  %v2009_v30 = vadd.f32 %v1975_v5, %v1973_v3  ;;  %v2016_v12 = vadd.f32 %v1976_v13, %v1974_v4  ;;  %v2023_v19 = vadd.f32 %v1979_v23, %v1977_v8 }
 0x14c   : > { %v2030_v6 = vadd.f32 %v1980_v20, %v1978_v9  ;;  %v1982_v25 = vrot.slane %v1981_v10, 4  ;;  %v1989_v28 = vrot.slane %v1988_v27, 4  ;;  %v1996_v29 = vrot.slane %v1995_v24, 4 }
 0x14d   : > { %v2003_v31 = vrot.slane %v2002_v7, 4  ;;  %v2010_v22 = vrot.slane %v2009_v30, 4  ;;  %v2017_v55 = vrot.slane %v2016_v12, 4  ;;  %v2024_v21 = vrot.slane %v2023_v19, 4 }
 0x14e   : > { %v2031_v36 = vrot.slane %v2030_v6, 4  ;;  %v1983_v35 = vadd.f32 %v1982_v25, %v1981_v10  ;;  %v1990_v33 = vadd.f32 %v1989_v28, %v1988_v27  ;;  %v1997_v52 = vadd.f32 %v1996_v29, %v1995_v24  ;;  %v5118_v29 = vpop.permute.xlu1 %1934 }
 0x14f   : > { %v2004_v14 = vadd.f32 %v2003_v31, %v2002_v7  ;;  %v2011_v53 = vadd.f32 %v2010_v22, %v2009_v30  ;;  %v2018_v57 = vadd.f32 %v2017_v55, %v2016_v12  ;;  %v2025_v51 = vadd.f32 %v2024_v21, %v2023_v19 }
 0x150   : > { %v2032_v42 = vadd.f32 %v2031_v36, %v2030_v6  ;;  %v1984_v54 = vrot.slane %v1983_v35, 2  ;;  %v1991_v2 = vrot.slane %v1990_v33, 2  ;;  %v1998_v11 = vrot.slane %v1997_v52, 2 }
 0x151   : > { %v2005_v3 = vrot.slane %v2004_v14, 2  ;;  %v2012_v4 = vrot.slane %v2011_v53, 2  ;;  %v2019_v5 = vrot.slane %v2018_v57, 2  ;;  %v2026_v13 = vrot.slane %v2025_v51, 2 }
 0x152   : > { %v2033_v8 = vrot.slane %v2032_v42, 2  ;;  %v1985_v9 = vadd.f32 %v1984_v54, %v1983_v35  ;;  %v1992_v23 = vadd.f32 %v1991_v2, %v1990_v33  ;;  %v1999_v20 = vadd.f32 %v1998_v11, %v1997_v52 }
 0x153   : > { %v2006_v10 = vadd.f32 %v2005_v3, %v2004_v14  ;;  %v2013_v27 = vadd.f32 %v2012_v4, %v2011_v53  ;;  %v2020_v24 = vadd.f32 %v2019_v5, %v2018_v57  ;;  %v2027_v22 = vadd.f32 %v2026_v13, %v2025_v51 }
 0x154   : > { %v2034_v7 = vadd.f32 %v2033_v8, %v2032_v42  ;;  %v1986_v21 = vrot.slane %v1985_v9, 1  ;;  %v1993_v36 = vrot.slane %v1992_v23, 1  ;;  %v2000_v30 = vrot.slane %v1999_v20, 1 }
 0x155   : > { %v2007_v12 = vrot.slane %v2006_v10, 1  ;;  %v2014_v19 = vrot.slane %v2013_v27, 1  ;;  %v2021_v6 = vrot.slane %v2020_v24, 1  ;;  %v2028_v25 = vrot.slane %v2027_v22, 1 }
 0x156   : > { %v2035_v28 = vrot.slane %v2034_v7, 1  ;;  %v1987_v31 = vadd.f32 %v1986_v21, %v1985_v9  ;;  %v1994_v55 = vadd.f32 %v1993_v36, %v1992_v23  ;;  %v2001_v35 = vadd.f32 %v2000_v30, %v1999_v20 }
 0x157   : > { %v2008_v33 = vadd.f32 %v2007_v12, %v2006_v10  ;;  %v2015_v52 = vadd.f32 %v2014_v19, %v2013_v27  ;;  %v2022_v14 = vadd.f32 %v2021_v6, %v2020_v24  ;;  %v2029_v53 = vadd.f32 %v2028_v25, %v2027_v22 }
 0x158   : > { %v2036_v57 = vadd.f32 %v2035_v28, %v2034_v7  ;;  %v5121_v51 = vmax.f32 %v1987_v31, %v5004_v56  ;;  %v5124_v42 = vmax.f32 %v1994_v55, %v5004_v56  ;;  %v5127_v54 = vmax.f32 %v2001_v35, %v5006_v26 }
 0x159   : > { %v5130_v2 = vmax.f32 %v2008_v33, %v5006_v26  ;;  %v5133_v11 = vmax.f32 %v2015_v52, %v5116_v43  ;;  %v5136_v3 = vmax.f32 %v2022_v14, %v5116_v43  ;;  %v5139_v4 = vmax.f32 %v2029_v53, %v5118_v29 }
 0x15a   : > { %5935 = vst [vmem:[#allocation20_spill] sm:$0xff] %v5121_v51  ;;  %5936 = vst [vmem:[#allocation21_spill] sm:$0xff] %v5124_v42  ;;  %v5142_v5 = vmax.f32 %v2036_v57, %v5118_v29  ;;  %v2053_v13 = vrot.slane %v5121_v51, 1  ;;  %v2054_v8 = vrot.slane %v5124_v42, 1  ;;  %v2055_v9 = vrot.slane %v5127_v54, 1 }
 0x15b   : > { %5937 = vst [vmem:[#allocation22_spill] sm:$0xff] %v5127_v54  ;;  %5938 = vst [vmem:[#allocation23_spill] sm:$0xff] %v5130_v2  ;;  %v2056_v23 = vrot.slane %v5130_v2, 1  ;;  %v5150_v20 = vmax.f32 %v5024_v37, %v5116_v43  ;;  %v5154_v10 = vmax.f32 %v5026_v38, %v5116_v43  ;;  %v5158_v27 = vmax.f32 %v5028_v39, %v5118_v29 }
 0x15c   : > { %v5162_v24 = vmax.f32 %v5030_v40, %v5118_v29  ;;  %v5169_v36 = vadd.f32 %v2053_v13, %v5033_v49  ;;  %v5172_v38 = vadd.f32 %v2054_v8, %v5036_v58  ;;  %v5175_v39 = vadd.f32 %v2055_v9, %v5039_v50  ;;  %v5939_v13 = vld [vmem:[#allocation12_spill] sm:$0xff]  ;;  %v5940_v9 = vld [vmem:[#allocation13_spill] sm:$0xff] }
 0x15d   : > { %v5178_v40 = vadd.f32 %v2056_v23, %v5042_v59  ;;  %vm2085_vm8 = vcmp.eq.s32.totalorder %v3120_v18, %v5010_v32  ;;  %vm2086_vm9 = vcmp.eq.s32.totalorder %v3120_v18, %v5014_v34  ;;  %vm2087_vm10 = vcmp.eq.s32.totalorder %v4930_v46, %v5010_v32 }
 0x15e   : > { %vm2088_vm11 = vcmp.eq.s32.totalorder %v4930_v46, %v5014_v34  ;;  %v2097_v30 = vsel %vm2085_vm8, %v4905_v41, 0.0  ;;  %v2098_v12 = vsel %vm2086_vm9, %v4907_v60, 0.0  ;;  %v2099_v19 = vsel %vm2087_vm10, %v4909_v61, 0.0 }
 0x15f   : > { %v2100_v6 = vsel %vm2088_vm11, %v4911_v62, 0.0  ;;  %v2101_v25 = vsel %vm2085_vm8, %v4913_v63, 0.0  ;;  %v2102_v28 = vsel %vm2086_vm9, %v4915_v0, 0.0  ;;  %v2103_v31 = vsel %vm2087_vm10, %v4917_v1, 0.0 }
 0x160   : > { %v2104_v55 = vsel %vm2088_vm11, %v4919_v15, 0.0  ;;  %v2105_v35 = vsel %vm2085_vm8, %v4921_v16, 0.0  ;;  %v2106_v33 = vsel %vm2086_vm9, %v4923_v17, 0.0  ;;  %v2107_v52 = vsel %vm2087_vm10, %v4925_v44, 0.0 }
 0x161   : > { %v2108_v14 = vsel %vm2088_vm11, %v4927_v45, 0.0  ;;  %v2109_v53 = vsel %vm2085_vm8, %v4932_v47, 0.0  ;;  %v2110_v57 = vsel %vm2086_vm9, %v4934_v48, 0.0  ;;  %v2111_v8 = vsel %vm2087_vm10, %v5939_v13, 0.0 }
 0x162   : > { %v2112_v23 = vsel %vm2088_vm11, %v5940_v9, 0.0  ;;  %v2113_v37 = vadd.f32 %v2099_v19, %v2097_v30  ;;  %v2120_v21 = vadd.f32 %v2100_v6, %v2098_v12  ;;  %v2127_v7 = vadd.f32 %v2103_v31, %v2101_v25 }
 0x163   : > { %v2134_v22 = vadd.f32 %v2104_v55, %v2102_v28  ;;  %v2141_v2 = vadd.f32 %v2107_v52, %v2105_v35  ;;  %v2148_v54 = vadd.f32 %v2108_v14, %v2106_v33  ;;  %v2155_v42 = vadd.f32 %v2111_v8, %v2109_v53 }
 0x164   : > { %v2162_v51 = vadd.f32 %v2112_v23, %v2110_v57  ;;  %v2114_v59 = vrot.slane %v2113_v37, 4  ;;  %v2121_v50 = vrot.slane %v2120_v21, 4  ;;  %v2128_v58 = vrot.slane %v2127_v7, 4 }
 0x165   : > { %v2135_v49 = vrot.slane %v2134_v22, 4  ;;  %v2142_v48 = vrot.slane %v2141_v2, 4  ;;  %v2149_v32 = vrot.slane %v2148_v54, 4  ;;  %v2156_v13 = vrot.slane %v2155_v42, 4 }
 0x166   : > { %v2163_v47 = vrot.slane %v2162_v51, 4  ;;  %v2115_v45 = vadd.f32 %v2114_v59, %v2113_v37  ;;  %v2122_v44 = vadd.f32 %v2121_v50, %v2120_v21  ;;  %v2129_v34 = vadd.f32 %v2128_v58, %v2127_v7 }
 0x167   : > { %v2136_v9 = vadd.f32 %v2135_v49, %v2134_v22  ;;  %v2143_v30 = vadd.f32 %v2142_v48, %v2141_v2  ;;  %v2150_v12 = vadd.f32 %v2149_v32, %v2148_v54  ;;  %v2157_v19 = vadd.f32 %v2156_v13, %v2155_v42 }
 0x168   : > { %v2164_v6 = vadd.f32 %v2163_v47, %v2162_v51  ;;  %v2116_v25 = vrot.slane %v2115_v45, 2  ;;  %v2123_v28 = vrot.slane %v2122_v44, 2  ;;  %v2130_v31 = vrot.slane %v2129_v34, 2 }
 0x169   : > { %v2137_v55 = vrot.slane %v2136_v9, 2  ;;  %v2144_v35 = vrot.slane %v2143_v30, 2  ;;  %v2151_v33 = vrot.slane %v2150_v12, 2  ;;  %v2158_v52 = vrot.slane %v2157_v19, 2 }
 0x16a   : > { %v2165_v14 = vrot.slane %v2164_v6, 2  ;;  %v2117_v53 = vadd.f32 %v2116_v25, %v2115_v45  ;;  %v2124_v57 = vadd.f32 %v2123_v28, %v2122_v44  ;;  %v2131_v8 = vadd.f32 %v2130_v31, %v2129_v34 }
 0x16b   : > { %v2138_v23 = vadd.f32 %v2137_v55, %v2136_v9  ;;  %v2145_v59 = vadd.f32 %v2144_v35, %v2143_v30  ;;  %v2152_v50 = vadd.f32 %v2151_v33, %v2150_v12  ;;  %v2159_v58 = vadd.f32 %v2158_v52, %v2157_v19 }
 0x16c   : > { %v2166_v49 = vadd.f32 %v2165_v14, %v2164_v6  ;;  %v2118_v48 = vrot.slane %v2117_v53, 1  ;;  %v2125_v54 = vrot.slane %v2124_v57, 1  ;;  %v2132_v42 = vrot.slane %v2131_v8, 1 }
 0x16d   : > { %v2139_v47 = vrot.slane %v2138_v23, 1  ;;  %v2146_v51 = vrot.slane %v2145_v59, 1  ;;  %v2153_v2 = vrot.slane %v2152_v50, 1  ;;  %v2160_v22 = vrot.slane %v2159_v58, 1 }
 0x16e   : > { %v2167_v7 = vrot.slane %v2166_v49, 1  ;;  %v2119_v21 = vadd.f32 %v2118_v48, %v2117_v53  ;;  %v2126_v37 = vadd.f32 %v2125_v54, %v2124_v57  ;;  %v2133_v13 = vadd.f32 %v2132_v42, %v2131_v8 }
 0x16f   : > { %v2140_v32 = vadd.f32 %v2139_v47, %v2138_v23  ;;  %v2147_v45 = vadd.f32 %v2146_v51, %v2145_v59  ;;  %v2154_v44 = vadd.f32 %v2153_v2, %v2152_v50  ;;  %v2161_v34 = vadd.f32 %v2160_v22, %v2159_v58 }
 0x170   : > { %v2168_v9 = vadd.f32 %v2167_v7, %v2166_v49  ;;  %v5253_v30 = vmax.f32 %v2119_v21, %v5004_v56  ;;  %v5256_v12 = vmax.f32 %v2126_v37, %v5004_v56  ;;  %v5259_v19 = vmax.f32 %v2133_v13, %v5006_v26  ;;  %v5947_v21 = vld [vmem:[#allocation14_spill] sm:$0xff]  ;;  %v5948_v37 = vld [vmem:[#allocation15_spill] sm:$0xff]  ;;  %v5949_v13 = vld [vmem:[#allocation8_spill] sm:$0xff] }
 0x171   : > { %v5262_v6 = vmax.f32 %v2140_v32, %v5006_v26  ;;  %v5265_v25 = vmax.f32 %v2147_v45, %v5116_v43  ;;  %v5268_v28 = vmax.f32 %v2154_v44, %v5116_v43  ;;  %v5271_v31 = vmax.f32 %v2161_v34, %v5118_v29  ;;  %v5950_v32 = vld [vmem:[#allocation9_spill] sm:$0xff]  ;;  %v5951_v45 = vld [vmem:[#allocation10_spill] sm:$0xff]  ;;  %v5952_v44 = vld [vmem:[#allocation11_spill] sm:$0xff] }
 0x172   : > { %5941 = vst [vmem:[#allocation24_spill] sm:$0xff] %v5259_v19  ;;  %v5274_v55 = vmax.f32 %v2168_v9, %v5118_v29  ;;  %v5943_v35 = vrot.slane %v5133_v11, 1  ;;  %v5944_v52 = vrot.slane %v5136_v3, 1  ;;  %v5945_v53 = vrot.slane %v5139_v4, 1  ;;  %v5953_v34 = vld [vmem:[#allocation12_spill] sm:$0xff] }
 0x173   : > { %5942 = vst [vmem:[#allocation25_spill] sm:$0xff] %v5262_v6  ;;  %v5946_v8 = vrot.slane %v5142_v5, 1  ;;  %v2185_v59 = vrot.slane %v5253_v30, 2  ;;  %v2186_v50 = vrot.slane %v5256_v12, 2  ;;  %v2187_v58 = vrot.slane %v5259_v19, 2 }
 0x174   : > { %v5279_v33 = vadd.f32 %v5943_v35, %v5150_v20  ;;  %v5284_v14 = vadd.f32 %v5944_v52, %v5154_v10  ;;  %v5289_v57 = vadd.f32 %v5945_v53, %v5158_v27  ;;  %v2188_v49 = vrot.slane %v5262_v6, 2  ;;  %v5954_v35 = vld [vmem:[#allocation13_spill] sm:$0xff] }
 0x175   : > { %v5294_v23 = vadd.f32 %v5946_v8, %v5162_v24  ;;  %v5305_v51 = vadd.f32 %v2185_v59, %v5169_v36  ;;  %v5308_v2 = vadd.f32 %v2186_v50, %v5172_v38  ;;  %v5311_v22 = vadd.f32 %v2187_v58, %v5175_v39 }
 0x176   : > { %v5314_v7 = vadd.f32 %v2188_v49, %v5178_v40  ;;  %vm2217_vm12 = vcmp.eq.s32.totalorder %v3120_v18, %v5947_v21  ;;  %vm2218_vm13 = vcmp.eq.s32.totalorder %v3120_v18, %v5948_v37  ;;  %vm2219_vm14 = vcmp.eq.s32.totalorder %v4930_v46, %v5947_v21 }
 0x177   : > { %vm2220_vm15 = vcmp.eq.s32.totalorder %v4930_v46, %v5948_v37  ;;  %v2229_v36 = vsel %vm2217_vm12, %v4905_v41, 0.0  ;;  %v2230_v38 = vsel %vm2218_vm13, %v4907_v60, 0.0  ;;  %v2231_v39 = vsel %vm2219_vm14, %v4909_v61, 0.0 }
 0x178   : > { %v2232_v40 = vsel %vm2220_vm15, %v4911_v62, 0.0  ;;  %v2233_v41 = vsel %vm2217_vm12, %v4913_v63, 0.0  ;;  %v2234_v60 = vsel %vm2218_vm13, %v4915_v0, 0.0  ;;  %v2235_v61 = vsel %vm2219_vm14, %v4917_v1, 0.0 }
 0x179   : > { %v2236_v62 = vsel %vm2220_vm15, %v4919_v15, 0.0  ;;  %v2237_v63 = vsel %vm2217_vm12, %v4921_v16, 0.0  ;;  %v2238_v0 = vsel %vm2218_vm13, %v4923_v17, 0.0  ;;  %v2239_v1 = vsel %vm2219_vm14, %v5949_v13, 0.0 }
 0x17a   : > { %v2240_v15 = vsel %vm2220_vm15, %v5950_v32, 0.0  ;;  %v2241_v16 = vsel %vm2217_vm12, %v5951_v45, 0.0  ;;  %v2242_v17 = vsel %vm2218_vm13, %v5952_v44, 0.0  ;;  %v2243_v9 = vsel %vm2219_vm14, %v5953_v34, 0.0 }
 0x17b   : > { %v2244_v52 = vsel %vm2220_vm15, %v5954_v35, 0.0  ;;  %v2245_v53 = vadd.f32 %v2231_v39, %v2229_v36  ;;  %v2252_v8 = vadd.f32 %v2232_v40, %v2230_v38  ;;  %v2259_v59 = vadd.f32 %v2235_v61, %v2233_v41 }
 0x17c   : > { %v2266_v50 = vadd.f32 %v2236_v62, %v2234_v60  ;;  %v2273_v58 = vadd.f32 %v2239_v1, %v2237_v63  ;;  %v2280_v49 = vadd.f32 %v2240_v15, %v2238_v0  ;;  %v2287_v13 = vadd.f32 %v2243_v9, %v2241_v16 }
 0x17d   : > { %v2294_v32 = vadd.f32 %v2244_v52, %v2242_v17  ;;  %v2246_v45 = vrot.slane %v2245_v53, 4  ;;  %v2253_v44 = vrot.slane %v2252_v8, 4  ;;  %v2260_v47 = vrot.slane %v2259_v59, 4 }
 0x17e   : > { %v2267_v42 = vrot.slane %v2266_v50, 4  ;;  %v2274_v54 = vrot.slane %v2273_v58, 4  ;;  %v2281_v21 = vrot.slane %v2280_v49, 4  ;;  %v2288_v34 = vrot.slane %v2287_v13, 4 }
 0x17f   : > { %v2295_v48 = vrot.slane %v2294_v32, 4  ;;  %v2247_v6 = vadd.f32 %v2246_v45, %v2245_v53  ;;  %v2254_v19 = vadd.f32 %v2253_v44, %v2252_v8  ;;  %v2261_v46 = vadd.f32 %v2260_v47, %v2259_v59 }
 0x180   : > { %v2268_v37 = vadd.f32 %v2267_v42, %v2266_v50  ;;  %v2275_v36 = vadd.f32 %v2274_v54, %v2273_v58  ;;  %v2282_v38 = vadd.f32 %v2281_v21, %v2280_v49  ;;  %v2289_v39 = vadd.f32 %v2288_v34, %v2287_v13 }
 0x181   : > { %v2296_v40 = vadd.f32 %v2295_v48, %v2294_v32  ;;  %v2248_v41 = vrot.slane %v2247_v6, 2  ;;  %v2255_v60 = vrot.slane %v2254_v19, 2  ;;  %v2262_v61 = vrot.slane %v2261_v46, 2 }
 0x182   : > { %v2269_v62 = vrot.slane %v2268_v37, 2  ;;  %v2276_v63 = vrot.slane %v2275_v36, 2  ;;  %v2283_v0 = vrot.slane %v2282_v38, 2  ;;  %v2290_v1 = vrot.slane %v2289_v39, 2 }
 0x183   : > { %v2297_v15 = vrot.slane %v2296_v40, 2  ;;  %v2249_v16 = vadd.f32 %v2248_v41, %v2247_v6  ;;  %v2256_v17 = vadd.f32 %v2255_v60, %v2254_v19  ;;  %v2263_v9 = vadd.f32 %v2262_v61, %v2261_v46 }
 0x184   : > { %v2270_v35 = vadd.f32 %v2269_v62, %v2268_v37  ;;  %v2277_v52 = vadd.f32 %v2276_v63, %v2275_v36  ;;  %v2284_v53 = vadd.f32 %v2283_v0, %v2282_v38  ;;  %v2291_v47 = vadd.f32 %v2290_v1, %v2289_v39 }
 0x185   : > { %v2298_v42 = vadd.f32 %v2297_v15, %v2296_v40  ;;  %v2250_v54 = vrot.slane %v2249_v16, 1  ;;  %v2257_v8 = vrot.slane %v2256_v17, 1  ;;  %v2264_v59 = vrot.slane %v2263_v9, 1 }
 0x186   : > { %v2271_v48 = vrot.slane %v2270_v35, 1  ;;  %v2278_v50 = vrot.slane %v2277_v52, 1  ;;  %v2285_v58 = vrot.slane %v2284_v53, 1  ;;  %v2292_v49 = vrot.slane %v2291_v47, 1 }
 0x187   : > { %v2299_v13 = vrot.slane %v2298_v42, 1  ;;  %v2251_v32 = vadd.f32 %v2250_v54, %v2249_v16  ;;  %v2258_v45 = vadd.f32 %v2257_v8, %v2256_v17  ;;  %v2265_v44 = vadd.f32 %v2264_v59, %v2263_v9 }
 0x188   : > { %v2272_v21 = vadd.f32 %v2271_v48, %v2270_v35  ;;  %v2279_v6 = vadd.f32 %v2278_v50, %v2277_v52  ;;  %v2286_v19 = vadd.f32 %v2285_v58, %v2284_v53  ;;  %v2293_v34 = vadd.f32 %v2292_v49, %v2291_v47  ;;  %v5962_v50 = vld [vmem:[#allocation18_spill] sm:$0xff] }
 0x189   : > { %v2300_v46 = vadd.f32 %v2299_v13, %v2298_v42  ;;  %v5389_v37 = vmax.f32 %v2251_v32, %v5004_v56  ;;  %v5392_v36 = vmax.f32 %v2258_v45, %v5004_v56  ;;  %v5395_v38 = vmax.f32 %v2265_v44, %v5006_v26  ;;  %v5963_v13 = vld [vmem:[#allocation19_spill] sm:$0xff] }
 0x18a   : > { %v5398_v39 = vmax.f32 %v2272_v21, %v5006_v26  ;;  %v5955_v40 = vrot.slane %v5265_v25, 2  ;;  %v5956_v60 = vrot.slane %v5268_v28, 2  ;;  %v5407_v62 = vmax.f32 %v2279_v6, %v5116_v43 }
 0x18b   : > { %v5410_v56 = vmax.f32 %v2286_v19, %v5116_v43  ;;  %v5413_v63 = vmax.f32 %v2293_v34, %v5118_v29  ;;  %v2317_v26 = vrot.slane %v5389_v37, 3  ;;  %v2318_v0 = vrot.slane %v5392_v36, 3  ;;  %v5964_v19 = vld [vmem:[#allocation7_spill] sm:$0xff]  ;;  %v5965_v34 = vld [vmem:[#allocation20_spill] sm:$0xff] }
 0x18c   : > { %v2205_v41 = vadd.f32 %v5955_v40, %v5279_v33  ;;  %v2206_v61 = vadd.f32 %v5956_v60, %v5284_v14  ;;  %v2319_v1 = vrot.slane %v5395_v38, 3  ;;  %v5419_v33 = vmax.f32 %v2300_v46, %v5118_v29  ;;  %v5966_v40 = vld [vmem:[#allocation21_spill] sm:$0xff]  ;;  %v5967_v60 = vld [vmem:[#allocation22_spill] sm:$0xff] }
 0x18d   : > { %v2320_v14 = vrot.slane %v5398_v39, 3  ;;  %v2321_v15 = vrot.slane %v5407_v62, 3  ;;  %v2322_v16 = vrot.slane %v5410_v56, 3  ;;  %v5957_v43 = vrot.slane %v5271_v31, 2 }
 0x18e   : > { %v2333_v9 = vadd.f32 %v2317_v26, %v5305_v51  ;;  %v2334_v35 = vadd.f32 %v2318_v0, %v5308_v2  ;;  %v2335_v52 = vadd.f32 %v2319_v1, %v5311_v22  ;;  %v5958_v29 = vrot.slane %v5274_v55, 2  ;;  %v5959_v22 = vld [vmem:[#allocation6_spill] sm:$0xff]  ;;  %v553_v0 = vld [vmem:[%s5491_s14 + $0x18] sm:$0xff] }
 0x18f   : > { %v2207_v17 = vadd.f32 %v5957_v43, %v5289_v57  ;;  %v2336_v47 = vadd.f32 %v2320_v14, %v5314_v7  ;;  %v2323_v42 = vrot.slane %v5413_v63, 3  ;;  %v2337_v54 = vadd.f32 %v2321_v15, %v2205_v41  ;;  %v5961_v7 = vld [vmem:[#allocation17_spill] sm:$0xff] }
 0x190   : > { %v2208_v53 = vadd.f32 %v5958_v29, %v5294_v23  ;;  %2823 = vrsqrt.f32 %v2333_v9  ;;  %v2324_v8 = vrot.slane %v5419_v33, 3  ;;  %v2338_v57 = vadd.f32 %v2322_v16, %v2206_v61  ;;  %v5960_v23 = vld [vmem:[#allocation16_spill] sm:$0xff]  ;;  %v5970_v29 = vld [vmem:[#allocation25_spill] sm:$0xff] }
 0x191   : > { %2825 = vrsqrt.f32 %v2334_v35  ;;  %v2339_v51 = vadd.f32 %v2323_v42, %v2207_v17  ;;  %v2404_v59 = vrot.slane %v5960_v23, %v5959_v22  ;;  %v2408_v48 = vrot.slane %v5961_v7, %v5959_v22  ;;  %v5969_v35 = vld [vmem:[#allocation24_spill] sm:$0xff] }
 0x192   : > { %2827 = vrsqrt.f32 %v2335_v52  ;;  %v2340_v2 = vadd.f32 %v2324_v8, %v2208_v53  ;;  %v2412_v58 = vrot.slane %v5962_v50, %v5959_v22  ;;  %v5444_v49 = vsub.s32 2, %v3120_v18 }
 0x193   : > { %2829 = vrsqrt.f32 %v2336_v47  ;;  %v2416_v32 = vrot.slane %v5963_v13, %v5959_v22  ;;  %v2420_v45 = vrot.slane %v5150_v20, %v5959_v22  ;;  %v2424_v44 = vrot.slane %v5154_v10, %v5959_v22  ;;  %v5968_v20 = vld [vmem:[#allocation23_spill] sm:$0xff] }
 0x194   : > { %2831 = vrsqrt.f32 %v2337_v54  ;;  %v2428_v21 = vrot.slane %v5158_v27, %v5959_v22  ;;  %v2432_v6 = vrot.slane %v5162_v24, %v5959_v22  ;;  %v2447_v46 = vrot.slane %v5965_v34, %v5964_v19 }
 0x195   : > { %2833 = vrsqrt.f32 %v2338_v57  ;;  %v2463_v27 = vrot.slane %v5133_v11, %v5964_v19  ;;  %v5469_v1 = vsub.s32 3, %v3120_v18  ;;  %v2471_v16 = vrot.slane %v5139_v4, %v5964_v19 }
 0x196   : > { %2835 = vrsqrt.f32 %v2339_v51  ;;  %v2475_v43 = vrot.slane %v5142_v5, %v5964_v19  ;;  %v550_v5 = vld [vmem:[%s5491_s14] sm:$0xff]  ;;  %v2514_v42 = vrot.slane %v5265_v25, %v5444_v49  ;;  %v2522_v8 = vrot.slane %v5271_v31, %v5444_v49  ;;  %v552_v31 = vld [vmem:[%s5491_s14 + $0x10] sm:$0xff] }
 0x197   : > { %2837 = vrsqrt.f32 %v2340_v2  ;;  %v2549_v25 = vrot.slane %v5389_v37, %v5469_v1  ;;  %v2573_v54 = vrot.slane %v5413_v63, %v5469_v1  ;;  %v5972_v13 = vrot.slane %v5966_v40, %v5964_v19 }
 0x198   : > { %v5973_v10 = vrot.slane %v5968_v20, %v5964_v19  ;;  %v5975_v40 = vrot.slane %v5253_v30, %v5444_v49  ;;  %v5976_v20 = vrot.slane %v5969_v35, %v5444_v49  ;;  %v5979_v30 = vrot.slane %v5268_v28, %v5444_v49 }
 0x199   : > { %v5980_v35 = vrot.slane %v5274_v55, %v5444_v49  ;;  %v5982_v28 = vrot.slane %v5398_v39, %v5469_v1 }
 0x19a   : > { %v2824_v26 = vpop.eup %2823 }
 0x19b   : > { %v2826_v14 = vpop.eup %2825  ;;  %v5472_v15 = vrot.slane %v2824_v26, %v5959_v22 }
 0x19c   : > { %v2828_v11 = vpop.eup %2827  ;;  %v5481_v9 = vrot.slane %v2826_v14, %v5959_v22  ;;  %v551_v14 = vld [vmem:[%s5491_s14 + $0x8] sm:$0xff] }
 0x19d   : > { %v2830_v4 = vpop.eup %2829  ;;  %v5495_v47 = vrot.slane %v2828_v11, %v5959_v22 }
 0x19e   : > { %v2832_v57 = vpop.eup %2831  ;;  %v5504_v51 = vrot.slane %v2830_v4, %v5959_v22  ;;  %v2389_v2 = vcombine.low %v5472_v15, %v5481_v9  ;;  %v2557_v4 = vrot.slane %v5395_v38, %v5469_v1  ;;  %v2569_v38 = vrot.slane %v5410_v56, %v5469_v1 }
 0x19f   : > { %v2834_v26 = vpop.eup %2833  ;;  %v5514_v11 = vrot.slane %v2832_v57, %v5959_v22  ;;  %v2565_v57 = vrot.slane %v5407_v62, %v5469_v1 }
 0x1a0   : > { %v2836_v53 = vpop.eup %2835  ;;  %v5523_v50 = vrot.slane %v2834_v26, %v5959_v22  ;;  %v2390_v37 = vcombine.low %v5495_v47, %v5504_v51  ;;  %v2397_v18 = vmul.f32 %v2389_v2, %v550_v5  ;;  %v2577_v26 = vrot.slane %v5419_v33, %v5469_v1 }
 0x1a1   : > { %v2838_v52 = vpop.eup %2837  ;;  %v5531_v17 = vrot.slane %v2836_v53, %v5959_v22 }
 0x1a2   : > { %v5540_v24 = vrot.slane %v2838_v52, %v5959_v22  ;;  %v2391_v62 = vcombine.low %v5514_v11, %v5523_v50  ;;  %v2398_v5 = vmul.f32 %v2390_v37, %v551_v14  ;;  %v2434_v2 = vcombine.high %v2397_v18, %v2397_v18 }
 0x1a3   : > { %v2436_v53 = vmul.f32 %v2404_v59, %v2397_v18  ;;  %v2438_v56 = vmul.f32 %v2412_v58, %v2397_v18  ;;  %v2440_v41 = vmul.f32 %v2420_v45, %v2397_v18  ;;  %v2442_v61 = vmul.f32 %v2428_v21, %v2397_v18 }
 0x1a4   : > { %v2392_v63 = vcombine.low %v5531_v17, %v5540_v24  ;;  %v2399_v33 = vmul.f32 %v2391_v62, %v552_v31  ;;  %v2437_v52 = vmul.f32 %v2434_v2, %v2408_v48  ;;  %v2439_v14 = vmul.f32 %v2434_v2, %v2416_v32 }
 0x1a5   : > { %v2441_v23 = vmul.f32 %v2434_v2, %v2424_v44  ;;  %v2443_v59 = vmul.f32 %v2434_v2, %v2432_v6  ;;  %v2477_v58 = vcombine.high %v2398_v5, %v2398_v5  ;;  %v2479_v45 = vmul.f32 %v2447_v46, %v2398_v5 }
 0x1a6   : > { %v2400_v21 = vmul.f32 %v2392_v63, %v553_v0  ;;  %v5971_v18 = vrot.slane %v5967_v60, %v5964_v19  ;;  %v2483_v48 = vmul.f32 %v2463_v27, %v2398_v5  ;;  %v2485_v31 = vmul.f32 %v2471_v16, %v2398_v5 }
 0x1a7   : > { %v2480_v32 = vmul.f32 %v2477_v58, %v5972_v13  ;;  %v2482_v22 = vmul.f32 %v2477_v58, %v5973_v10  ;;  %v5974_v44 = vrot.slane %v5136_v3, %v5964_v19  ;;  %v2486_v34 = vmul.f32 %v2477_v58, %v2475_v43 }
 0x1a8   : > { %v2481_v7 = vmul.f32 %v5971_v18, %v2398_v5  ;;  %v2487_v46 = vadd.f32 %v2479_v45, %v2436_v53  ;;  %v2491_v37 = vadd.f32 %v2483_v48, %v2440_v41  ;;  %v2493_v60 = vadd.f32 %v2485_v31, %v2442_v61 }
 0x1a9   : > { %v2484_v6 = vmul.f32 %v2477_v58, %v5974_v44  ;;  %v2488_v62 = vadd.f32 %v2480_v32, %v2437_v52  ;;  %v2490_v27 = vadd.f32 %v2482_v22, %v2439_v14  ;;  %v2494_v5 = vadd.f32 %v2486_v34, %v2443_v59 }
 0x1aa   : > { %v2489_v0 = vadd.f32 %v2481_v7, %v2438_v56  ;;  %v2528_v2 = vcombine.high %v2399_v33, %v2399_v33  ;;  %v2530_v63 = vmul.f32 %v5975_v40, %v2399_v33  ;;  %v2532_v18 = vmul.f32 %v5976_v20, %v2399_v33 }
 0x1ab   : > { %v2492_v16 = vadd.f32 %v2484_v6, %v2441_v23  ;;  %v2534_v3 = vmul.f32 %v2514_v42, %v2399_v33  ;;  %v2536_v19 = vmul.f32 %v2522_v8, %v2399_v33  ;;  %v2579_v43 = vcombine.high %v2400_v21, %v2400_v21 }
 0x1ac   : > { %v2581_v53 = vmul.f32 %v2549_v25, %v2400_v21  ;;  %v2583_v56 = vmul.f32 %v2557_v4, %v2400_v21  ;;  %v5977_v41 = vrot.slane %v5256_v12, %v5444_v49  ;;  %v5978_v52 = vrot.slane %v5970_v29, %v5444_v49 }
 0x1ad   : > { %v2535_v23 = vmul.f32 %v2528_v2, %v5979_v30  ;;  %v2537_v42 = vmul.f32 %v2528_v2, %v5980_v35  ;;  %v2538_v8 = vadd.f32 %v2530_v63, %v2487_v46  ;;  %v2540_v33 = vadd.f32 %v2532_v18, %v2489_v0 }
 0x1ae   : > { %v2531_v61 = vmul.f32 %v2528_v2, %v5977_v41  ;;  %v2533_v14 = vmul.f32 %v2528_v2, %v5978_v52  ;;  %v2542_v25 = vadd.f32 %v2534_v3, %v2491_v37  ;;  %v2544_v4 = vadd.f32 %v2536_v19, %v2493_v60 }
 0x1af   : > { %v2543_v12 = vadd.f32 %v2535_v23, %v2492_v16  ;;  %v2545_v45 = vadd.f32 %v2537_v42, %v2494_v5  ;;  %v5981_v29 = vrot.slane %v5392_v36, %v5469_v1  ;;  %v2584_v48 = vmul.f32 %v2579_v43, %v5982_v28 }
 0x1b0   : > { %v2539_v59 = vadd.f32 %v2531_v61, %v2488_v62  ;;  %v2541_v58 = vadd.f32 %v2533_v14, %v2490_v27  ;;  %v2585_v31 = vmul.f32 %v2565_v57, %v2400_v21  ;;  %v2586_v13 = vmul.f32 %v2579_v43, %v2569_v38 }
 0x1b1   : > { %v2582_v7 = vmul.f32 %v2579_v43, %v5981_v29  ;;  %v2587_v55 = vmul.f32 %v2573_v54, %v2400_v21  ;;  %v2588_v49 = vmul.f32 %v2579_v43, %v2577_v26  ;;  %v2589_v32 = vadd.f32 %v2581_v53, %v2538_v8 }
 0x1b2   : > { %v2591_v10 = vadd.f32 %v2583_v56, %v2540_v33  ;;  %v2592_v44 = vadd.f32 %v2584_v48, %v2541_v58  ;;  %v2593_v6 = vadd.f32 %v2585_v31, %v2542_v25  ;;  %v2594_v34 = vadd.f32 %v2586_v13, %v2543_v12 }
 0x1b3   : > { %v2590_v22 = vadd.f32 %v2582_v7, %v2539_v59  ;;  %v2595_v46 = vadd.f32 %v2587_v55, %v2544_v4  ;;  %v2596_v0 = vadd.f32 %v2588_v49, %v2545_v45  ;;  %v2597_v36 = vmul.f32 %v2589_v32, %v5472_v15  ;;  %2631 = sbr.rel (!%p2927_p5) target bundleno = 450 (0x1c2), region = 142 }
 0x1b4   : > { %v2599_v37 = vmul.f32 %v2591_v10, %v5495_v47  ;;  %v2600_v1 = vmul.f32 %v2592_v44, %v5504_v51  ;;  %v2601_v54 = vmul.f32 %v2593_v6, %v5514_v11  ;;  %v2602_v57 = vmul.f32 %v2594_v34, %v5523_v50 }
 0x1b5   : > { %v2598_v39 = vmul.f32 %v2590_v22, %v5481_v9  ;;  %v2603_v38 = vmul.f32 %v2595_v46, %v5531_v17  ;;  %v2604_v26 = vmul.f32 %v2596_v0, %v5540_v24 }
 0x1b6   : > { %v2614_v60 = vcombine.low %v2599_v37, %v2600_v1  ;;  %v2615_v62 = vcombine.low %v2601_v54, %v2602_v57 }
 0x1b7   : > { %v2613_v21 = vcombine.low %v2597_v36, %v2598_v39  ;;  %v2616_v27 = vcombine.low %v2603_v38, %v2604_v26 }
 0x1b8   : > { %2622 = vst [vmem:[%s477_s20 + $0x8] sm:$0xff] %v2614_v60  ;;  %2623 = vst [vmem:[%s477_s20 + $0x10] sm:$0xff] %v2615_v62 }
 0x1b9   : > { %2621 = vst [vmem:[%s477_s20] sm:$0xff] %v2613_v21  ;;  %2624 = vst [vmem:[%s477_s20 + $0x18] sm:$0xff] %v2616_v27 }
 0x1bf   : > { %v2670_v17 = vld [vmem:[%s477_s20 + $0x8] sm:$0xff]  ;;  %v2672_v9 = vld [vmem:[%s477_s20 + $0x10] sm:$0xff] }
 0x1c0   : > { %v2668_v15 = vld [vmem:[%s477_s20] sm:$0xff]  ;;  %v2674_v24 = vld [vmem:[%s477_s20 + $0x18] sm:$0xff]  ;;  %2671 = vst [vmem:[%s2634_s27 + $0x10] sm:$0xff] %v2670_v17  ;;  %2673 = vst [vmem:[%s2634_s27 + $0x20] sm:$0xff] %v2672_v9 }
 0x1c1   : > { %2669 = vst [vmem:[%s2634_s27] sm:$0xff] %v2668_v15  ;;  %2675 = vst [vmem:[%s2634_s27 + $0x30] sm:$0xff] %v2674_v24 }
 0x1c2 PF: > { %p11_p10 = scmp.ge.s32.totalorder %s2910_s19, 4   ;;  %s5983_s15 = smov %s2861_s16 }
 0x1c3   : > { %s5984_s16 = smov %s2921_s22  ;;  %s5985_s17 = smov %s2910_s19 }
 0x1c4   :  { %13 = sbr.rel (!%p11_p10) target bundleno = 2 (0x2), region = 227 }

</bundles_post_ra>
